<compile_context>
chip_gen: v7x
topology: tpu7x:2x2x1
jax: 0.10.0
libtpu: 0.0.40
codegen_flags: <defaults>
</compile_context>

<pallas_src>
import functools

import jax
import jax.numpy as jnp
from jax.experimental import pallas as pl
from jax.experimental.pallas import tpu as pltpu

_VMEM_LIMIT = 48 * 1024 * 1024  # fits v7x's 64 MiB physical VMEM with headroom


def _round_up(x, m):
    return (x + m - 1) // m * m


def _apply_act(x, act):
    if act == "relu":
        return jnp.maximum(x, 0.0)
    if act == "sigmoid":
        return jax.nn.sigmoid(x)
    return x


# ----------------------------------------------------------------------------
# Tiled matmul + bias + activation
# ----------------------------------------------------------------------------

def _matmul_kernel(a_ref, b_ref, bias_ref, o_ref, acc_ref, *, act):
    @pl.when(pl.program_id(2) == 0)
    def _():
        acc_ref[...] = jnp.zeros_like(acc_ref)

    acc_ref[...] += jnp.dot(a_ref[...], b_ref[...],
                            preferred_element_type=jnp.float32)

    @pl.when(pl.program_id(2) == pl.num_programs(2) - 1)
    def _():
        acc = acc_ref[...] + bias_ref[...].astype(jnp.float32)
        o_ref[...] = _apply_act(acc, act).astype(o_ref.dtype)


def matmul_bias_act(a, b, bias, act="none", out_dtype=jnp.bfloat16):
    """(M,K) @ (K,N) + bias, fused relu/sigmoid. bf16 MXU, f32 accumulation."""
    M, K = a.shape
    _, N = b.shape
    tm = min(256, _round_up(M, 8))
    tn = min(256, _round_up(N, 128))
    tk = min(512, _round_up(K, 128))
    Mp, Np, Kp = _round_up(M, tm), _round_up(N, tn), _round_up(K, tk)

    a_p = jnp.pad(a.astype(jnp.bfloat16), ((0, Mp - M), (0, Kp - K)))
    b_p = jnp.pad(b.astype(jnp.bfloat16), ((0, Kp - K), (0, Np - N)))
    bias_p = jnp.pad(bias.astype(jnp.float32), (0, Np - N)).reshape(1, Np)

    out = pl.pallas_call(
        functools.partial(_matmul_kernel, act=act),
        grid=(Mp // tm, Np // tn, Kp // tk),
        in_specs=[
            pl.BlockSpec((tm, tk), lambda i, j, k: (i, k)),
            pl.BlockSpec((tk, tn), lambda i, j, k: (k, j)),
            pl.BlockSpec((1, tn), lambda i, j, k: (0, j)),
        ],
        out_specs=pl.BlockSpec((tm, tn), lambda i, j, k: (i, j)),
        out_shape=jax.ShapeDtypeStruct((Mp, Np), out_dtype),
        scratch_shapes=[pltpu.VMEM((tm, tn), jnp.float32)],
        compiler_params=pltpu.CompilerParams(
            dimension_semantics=("parallel", "parallel", "arbitrary"),
            vmem_limit_bytes=_VMEM_LIMIT),
        cost_estimate=pl.CostEstimate(
            flops=2 * Mp * Np * Kp,
            transcendentals=Mp * Np if act == "sigmoid" else 0,
            bytes_accessed=2 * (Mp * Kp + Kp * Np)
            + Mp * Np * jnp.dtype(out_dtype).itemsize),
    )(a_p, b_p, bias_p)
    return out[:M, :N]


# ----------------------------------------------------------------------------
# Matmul with fused LayerNorm epilogue (SwinEncoder2 input_proj + norm)
# ----------------------------------------------------------------------------

def _matmul_ln_kernel(a_ref, b_ref, bias_ref, g_ref, beta_ref, o_ref, acc_ref,
                      *, eps):
    @pl.when(pl.program_id(1) == 0)
    def _():
        acc_ref[...] = jnp.zeros_like(acc_ref)

    acc_ref[...] += jnp.dot(a_ref[...], b_ref[...],
                            preferred_element_type=jnp.float32)

    @pl.when(pl.program_id(1) == pl.num_programs(1) - 1)
    def _():
        y = acc_ref[...] + bias_ref[...].astype(jnp.float32)
        mean = jnp.mean(y, axis=-1, keepdims=True)
        var = jnp.mean(jnp.square(y - mean), axis=-1, keepdims=True)
        y = (y - mean) * jax.lax.rsqrt(var + eps)
        y = y * g_ref[...].astype(jnp.float32) + beta_ref[...].astype(jnp.float32)
        o_ref[...] = y.astype(o_ref.dtype)


def matmul_layernorm(a, b, bias, gamma, beta, eps=1e-5, out_dtype=jnp.bfloat16):
    """(M,K) @ (K,D) + bias, then per-row LayerNorm over D in the epilogue."""
    M, K = a.shape
    _, D = b.shape
    tm = min(256, _round_up(M, 8))
    tk = min(512, _round_up(K, 128))
    Mp, Kp = _round_up(M, tm), _round_up(K, tk)
    a_p = jnp.pad(a.astype(jnp.bfloat16), ((0, Mp - M), (0, Kp - K)))
    b_p = jnp.pad(b.astype(jnp.bfloat16), ((0, Kp - K), (0, 0)))

    out = pl.pallas_call(
        functools.partial(_matmul_ln_kernel, eps=eps),
        grid=(Mp // tm, Kp // tk),
        in_specs=[
            pl.BlockSpec((tm, tk), lambda i, k: (i, k)),
            pl.BlockSpec((tk, D), lambda i, k: (k, 0)),
            pl.BlockSpec((1, D), lambda i, k: (0, 0)),
            pl.BlockSpec((1, D), lambda i, k: (0, 0)),
            pl.BlockSpec((1, D), lambda i, k: (0, 0)),
        ],
        out_specs=pl.BlockSpec((tm, D), lambda i, k: (i, 0)),
        out_shape=jax.ShapeDtypeStruct((Mp, D), out_dtype),
        scratch_shapes=[pltpu.VMEM((tm, D), jnp.float32)],
        compiler_params=pltpu.CompilerParams(
            dimension_semantics=("parallel", "arbitrary"),
            vmem_limit_bytes=_VMEM_LIMIT),
        cost_estimate=pl.CostEstimate(
            flops=2 * Mp * D * Kp, transcendentals=Mp,
            bytes_accessed=2 * (Mp * Kp + Kp * D) + Mp * D * 2),
    )(a_p, b_p,
      bias.reshape(1, D).astype(jnp.float32),
      gamma.reshape(1, D).astype(jnp.float32),
      beta.reshape(1, D).astype(jnp.float32))
    return out[:M]


# ----------------------------------------------------------------------------
# Direct (no HBM im2col) stride-1 conv kernel
# ----------------------------------------------------------------------------

def _conv_direct_kernel(x_ref, w_ref, b_ref, o_ref, *, k_h, k_w, dil, hout,
                        wout, act):
    cin = x_ref.shape[-1]
    tco = o_ref.shape[-1]
    acc = jnp.zeros((hout * wout, tco), jnp.float32)
    for ih in range(k_h):
        for iw in range(k_w):
            h0, w0 = ih * dil, iw * dil
            xs = x_ref[0, h0:h0 + hout, w0:w0 + wout, :]
            acc += jnp.dot(xs.reshape(hout * wout, cin),
                           w_ref[ih * k_w + iw],
                           preferred_element_type=jnp.float32)
    acc = _apply_act(acc + b_ref[...].astype(jnp.float32), act)
    o_ref[0] = acc.reshape(hout, wout, tco).astype(o_ref.dtype)


def conv2d_direct(x, w, b, dilation=1, padding=0, act="none",
                  out_dtype=jnp.bfloat16):
    """Stride-1 KxK conv: shifted windows are read from the VMEM-resident
    padded input — no 9x im2col expansion through HBM."""
    # TODO(synk): the whole padded plane of one batch element is resident per
    # grid step; production-size feature maps need H-tiling with halo DMA.
    N, H, W, Cin = x.shape
    KH, KW, _, Cout = w.shape
    xp = jnp.pad(x.astype(jnp.bfloat16),
                 ((0, 0), (padding, padding), (padding, padding), (0, 0)))
    Hp, Wp = H + 2 * padding, W + 2 * padding
    Hout = Hp - dilation * (KH - 1)
    Wout = Wp - dilation * (KW - 1)

    tco = 256 if Cout > 128 else 128          # lane-dense (>=128) output stores
    Cop = _round_up(Cout, tco)
    w_p = jnp.pad(w.astype(jnp.bfloat16).reshape(KH * KW, Cin, Cout),
                  ((0, 0), (0, 0), (0, Cop - Cout)))
    b_p = jnp.pad(b.astype(jnp.float32), (0, Cop - Cout)).reshape(1, Cop)

    out = pl.pallas_call(
        functools.partial(_conv_direct_kernel, k_h=KH, k_w=KW, dil=dilation,
                          hout=Hout, wout=Wout, act=act),
        grid=(N, Cop // tco),
        in_specs=[
            pl.BlockSpec((1, Hp, Wp, Cin), lambda n, j: (n, 0, 0, 0)),
            pl.BlockSpec((KH * KW, Cin, tco), lambda n, j: (0, 0, j)),
            pl.BlockSpec((1, tco), lambda n, j: (0, j)),
        ],
        out_specs=pl.BlockSpec((1, Hout, Wout, tco), lambda n, j: (n, 0, 0, j)),
        out_shape=jax.ShapeDtypeStruct((N, Hout, Wout, Cop), out_dtype),
        compiler_params=pltpu.CompilerParams(
            dimension_semantics=("parallel", "parallel"),
            vmem_limit_bytes=_VMEM_LIMIT),
        cost_estimate=pl.CostEstimate(
            flops=2 * N * Hout * Wout * KH * KW * Cin * Cop,
            transcendentals=(N * Hout * Wout * Cop) if act == "sigmoid" else 0,
            bytes_accessed=2 * N * Hp * Wp * Cin + 2 * KH * KW * Cin * Cop
            + N * Hout * Wout * Cop * jnp.dtype(out_dtype).itemsize),
    )(xp, w_p, b_p)
    return out[..., :Cout]


def conv2d_im2col(x, w, b, stride, dilation, padding, act, out_dtype):
    """Strided conv via wrapper-side im2col feeding the tiled matmul kernel."""
    N, H, W, Cin = x.shape
    KH, KW, _, Cout = w.shape
    xp = jnp.pad(x.astype(jnp.bfloat16),
                 ((0, 0), (padding, padding), (padding, padding), (0, 0)))
    Hp, Wp = H + 2 * padding, W + 2 * padding
    Hout = (Hp - dilation * (KH - 1) - 1) // stride + 1
    Wout = (Wp - dilation * (KW - 1) - 1) // stride + 1
    cols = []
    for kh in range(KH):
        for kw in range(KW):
            h0, w0 = kh * dilation, kw * dilation
            cols.append(
                xp[:, h0:h0 + (Hout - 1) * stride + 1:stride,
                      w0:w0 + (Wout - 1) * stride + 1:stride, :])
    a = jnp.concatenate(cols, axis=-1).reshape(N * Hout * Wout, KH * KW * Cin)
    out = matmul_bias_act(a, w.reshape(KH * KW * Cin, Cout), b, act=act,
                          out_dtype=out_dtype)
    return out.reshape(N, Hout, Wout, Cout)


def conv2d(x, w, b, stride=1, dilation=1, padding=0, act="none",
           out_dtype=jnp.bfloat16):
    KH, KW, Cin, Cout = w.shape
    if KH == 1 and KW == 1 and stride == 1 and padding == 0:
        N, H, W, _ = x.shape
        out = matmul_bias_act(x.reshape(N * H * W, Cin), w.reshape(Cin, Cout),
                              b, act=act, out_dtype=out_dtype)
        return out.reshape(N, H, W, Cout)
    if stride == 1:
        return conv2d_direct(x, w, b, dilation, padding, act, out_dtype)
    # TODO(synk): strided convs (small down_conv levels) still use an HBM
    # im2col; a phase-split direct kernel would remove the remaining expansion.
    return conv2d_im2col(x, w, b, stride, dilation, padding, act, out_dtype)


# ----------------------------------------------------------------------------
# Global avg/max pool (tiled over H*W, masked tail)
# ----------------------------------------------------------------------------

def _pool_kernel(x_ref, avg_ref, max_ref, *, hw, thw):
    j = pl.program_id(1)

    @pl.when(j == 0)
    def _():
        avg_ref[...] = jnp.zeros_like(avg_ref)
        max_ref[...] = jnp.full_like(max_ref, -jnp.inf)

    x = x_ref[0].astype(jnp.float32)                      # (thw, C)
    row = j * thw + jax.lax.broadcasted_iota(jnp.int32, (thw, 1), 0)
    valid = row < hw
    avg_ref[0] += jnp.sum(jnp.where(valid, x, 0.0), axis=0, keepdims=True)
    max_ref[0] = jnp.maximum(
        max_ref[0], jnp.max(jnp.where(valid, x, -jnp.inf), axis=0, keepdims=True))

    @pl.when(j == pl.num_programs(1) - 1)
    def _():
        avg_ref[...] = avg_ref[...] * (1.0 / hw)


def global_avg_max_pool(x_nhwc):
    """adaptive_avg_pool2d(x,1) and adaptive_max_pool2d(x,1) -> (N,C) each."""
    N, H, W, C = x_nhwc.shape
    HW = H * W
    thw = min(1024, _round_up(HW, 8))
    HWp = _round_up(HW, thw)
    x3 = jnp.pad(x_nhwc.astype(jnp.bfloat16).reshape(N, HW, C),
                 ((0, 0), (0, HWp - HW), (0, 0)))
    avg, mx = pl.pallas_call(
        functools.partial(_pool_kernel, hw=HW, thw=thw),
        grid=(N, HWp // thw),
        in_specs=[pl.BlockSpec((1, thw, C), lambda i, j: (i, j, 0))],
        out_specs=(pl.BlockSpec((1, 1, C), lambda i, j: (i, 0, 0)),
                   pl.BlockSpec((1, 1, C), lambda i, j: (i, 0, 0))),
        out_shape=(jax.ShapeDtypeStruct((N, 1, C), jnp.float32),
                   jax.ShapeDtypeStruct((N, 1, C), jnp.float32)),
        compiler_params=pltpu.CompilerParams(
            dimension_semantics=("parallel", "arbitrary"),
            vmem_limit_bytes=_VMEM_LIMIT),
    )(x3)
    return avg.reshape(N, C), mx.reshape(N, C)


# ----------------------------------------------------------------------------
# BatchNorm (batch statistics) + ReLU: two tiled passes
# ----------------------------------------------------------------------------

def _bn_stats_kernel(x_ref, sum_ref, sq_ref):
    @pl.when(pl.program_id(0) == 0)
    def _():
        sum_ref[...] = jnp.zeros_like(sum_ref)
        sq_ref[...] = jnp.zeros_like(sq_ref)

    x = x_ref[...].astype(jnp.float32)
    sum_ref[...] += jnp.sum(x, axis=0, keepdims=True)
    sq_ref[...] += jnp.sum(x * x, axis=0, keepdims=True)


def _affine_relu_kernel(x_ref, s_ref, t_ref, o_ref):
    y = x_ref[...].astype(jnp.float32) * s_ref[...] + t_ref[...]
    o_ref[...] = jnp.maximum(y, 0.0).astype(o_ref.dtype)


def batchnorm_relu(x2d, gamma, beta, eps=1e-5, out_dtype=jnp.bfloat16):
    """Training-mode BatchNorm2d over rows (= N*H*W) per channel, plus ReLU."""
    M, C = x2d.shape
    tm = min(512, _round_up(M, 8))
    Mp = _round_up(M, tm)
    x_p = jnp.pad(x2d.astype(jnp.bfloat16), ((0, Mp - M), (0, 0)))

    s, sq = pl.pallas_call(
        _bn_stats_kernel,
        grid=(Mp // tm,),
        in_specs=[pl.BlockSpec((tm, C), lambda i: (i, 0))],
        out_specs=(pl.BlockSpec((1, C), lambda i: (0, 0)),
                   pl.BlockSpec((1, C), lambda i: (0, 0))),
        out_shape=(jax.ShapeDtypeStruct((1, C), jnp.float32),
                   jax.ShapeDtypeStruct((1, C), jnp.float32)),
        compiler_params=pltpu.CompilerParams(
            dimension_semantics=("arbitrary",), vmem_limit_bytes=_VMEM_LIMIT),
    )(x_p)

    mean = s / M                                          # tiny (1,C) glue math
    var = jnp.maximum(sq / M - mean * mean, 0.0)
    scale = gamma.reshape(1, C).astype(jnp.float32) * jax.lax.rsqrt(var + eps)
    shift = beta.reshape(1, C).astype(jnp.float32) - mean * scale

    out = pl.pallas_call(
        _affine_relu_kernel,
        grid=(Mp // tm,),
        in_specs=[pl.BlockSpec((tm, C), lambda i: (i, 0)),
                  pl.BlockSpec((1, C), lambda i: (0, 0)),
                  pl.BlockSpec((1, C), lambda i: (0, 0))],
        out_specs=pl.BlockSpec((tm, C), lambda i: (i, 0)),
        out_shape=jax.ShapeDtypeStruct((Mp, C), out_dtype),
        compiler_params=pltpu.CompilerParams(
            dimension_semantics=("parallel",), vmem_limit_bytes=_VMEM_LIMIT),
    )(x_p, scale, shift)
    return out[:M]


# ----------------------------------------------------------------------------
# Glue
# ----------------------------------------------------------------------------

def upsample_nearest(x, out_h, out_w):
    """F.interpolate(mode='nearest', size=(out_h,out_w)) for NHWC."""
    _, H, W, _ = x.shape
    ih = (jnp.arange(out_h) * H) // out_h
    iw = (jnp.arange(out_w) * W) // out_w
    return x[:, ih][:, :, iw]


# ----------------------------------------------------------------------------
# Parameter construction (deterministic, kaiming-like)
# ----------------------------------------------------------------------------

def _conv_params(key, kh, kw, cin, cout):
    std = (2.0 / (kh * kw * cin)) ** 0.5
    w = std * jax.random.normal(key, (kh, kw, cin, cout), jnp.float32)
    return w, jnp.zeros((cout,), jnp.float32)


def _linear_params(key, cin, cout):
    std = (1.0 / cin) ** 0.5
    w = std * jax.random.normal(key, (cin, cout), jnp.float32)
    return w, jnp.zeros((cout,), jnp.float32)


def init_cam_params(key, inplanes, fpn_lvl=4, reduction=1):
    C = inplanes // reduction
    # Original SwinEncoder2 hardcodes (256 -> 192); scale proportionally.
    dim = max(8, C * 192 // 256)
    ks = jax.random.split(key, 24)
    p = {}
    p["conv1"] = _conv_params(ks[0], 3, 3, inplanes * fpn_lvl // reduction, C)
    aspp = []
    for i, d in enumerate((1, 2, 5, 1)):
        k = 3 if d > 1 else 1
        aspp.append(_conv_params(ks[1 + i], k, k, C, C // 4))
    p["aspp"] = aspp
    p["mlp1"] = _linear_params(ks[5], C, C // 16)
    p["mlp2"] = _linear_params(ks[6], C // 16, C)
    p["swin_in"] = _conv_params(ks[7], 1, 1, C, dim)
    p["swin_norm_g"] = jnp.ones((dim,), jnp.float32)
    p["swin_norm_b"] = jnp.zeros((dim,), jnp.float32)
    p["swin_out"] = _conv_params(ks[8], 1, 1, dim, C)
    p["conv2"] = _conv_params(ks[9], 3, 3, C, C)
    p["bn_g"] = jnp.ones((C,), jnp.float32)
    p["bn_b"] = jnp.zeros((C,), jnp.float32)
    p["att"] = [_conv_params(ks[10 + i], 3, 3, C, 1) for i in range(fpn_lvl)]
    p["down"] = [_conv_params(ks[14 + i], 3, 3, C, C) for i in range(fpn_lvl)]
    return p


# ----------------------------------------------------------------------------
# Module forwards
# ----------------------------------------------------------------------------

def aspp_forward(p, x):
    """ASPP(in=C, out=C//4) incl. channel attention and SwinEncoder2. x: NHWC."""
    N, H, W, C = x.shape
    avg, mx = global_avg_max_pool(x)                       # (N, C) each, f32

    # Shared-weight MLP on avg and max pooled vectors in one stacked launch.
    stacked = jnp.concatenate([avg, mx], axis=0)           # (2N, C)
    h = matmul_bias_act(stacked, p["mlp1"][0], p["mlp1"][1], act="relu")
    h = matmul_bias_act(h, p["mlp2"][0], p["mlp2"][1], act="none")
    ch_att = h[:N] + h[N:]                                 # (N, C) == avg_x

    dilations = (1, 2, 5)
    outs = []
    for i, d in enumerate(dilations):
        w, b = p["aspp"][i]
        pad = d if d > 1 else 0
        outs.append(conv2d(x, w, b, dilation=d, padding=pad, act="relu"))
    # last branch: 1x1 conv on the (N,C,1,1) channel-attention map, then expand
    w, b = p["aspp"][3]
    v = matmul_bias_act(ch_att, w.reshape(C, C // 4), b, act="relu")  # (N, C//4)
    outs.append(jnp.broadcast_to(v[:, None, None, :].astype(jnp.bfloat16),
                                 (N, H, W, C // 4)))
    out = jnp.concatenate(outs, axis=-1)                   # (N, H, W, C)

    # SwinEncoder2: input_proj -> [BasicLayer: identity, see TODO] -> LayerNorm
    # -> output_proj.  LayerNorm is fused into the input_proj matmul epilogue.
    w_in, b_in = p["swin_in"]
    dim = w_in.shape[-1]
    t = matmul_layernorm(out.reshape(N * H * W, C), w_in.reshape(C, dim), b_in,
                         p["swin_norm_g"], p["swin_norm_b"])   # (N*H*W, dim)
    w_out, b_out = p["swin_out"]
    t = matmul_bias_act(t, w_out.reshape(dim, C), b_out, act="none")
    return t.reshape(N, H, W, C)


def cam_forward(params, feats_nchw, fpn_lvl=4):
    """CAM.forward. feats_nchw: list of (N, inplanes, H/2^i, W/2^i) NCHW arrays."""
    feats = [jnp.transpose(f, (0, 2, 3, 1)).astype(jnp.float32)
             for f in feats_nchw]
    H0, W0 = feats[0].shape[1], feats[0].shape[2]
    multi = [feats[0]] + [upsample_nearest(f, H0, W0) for f in feats[1:]]
    x = jnp.concatenate(multi, axis=-1)                    # (N, H0, W0, 4*inpl)

    # dila_conv: conv3x3 -> ASPP -> conv3x3 -> BN -> ReLU
    w, b = params["conv1"]
    x = conv2d(x, w, b, padding=1, act="none")
    x = aspp_forward(params, x)
    w, b = params["conv2"]
    x = conv2d(x, w, b, padding=1, act="none")
    N, H, W, C = x.shape
    x = batchnorm_relu(x.reshape(N * H * W, C), params["bn_g"], params["bn_b"])
    x = x.reshape(N, H, W, C)

    # per-level attention maps
    atts = []
    lvl = x
    for i in range(fpn_lvl):
        w, b = params["down"][i]
        stride = 1 if i == 0 else 2
        lvl = conv2d(lvl, w, b, stride=stride, padding=1, act="none")
        w, b = params["att"][i]
        att = conv2d(lvl, w, b, stride=1, padding=1, act="sigmoid",
                     out_dtype=jnp.float32)                # (N, h, w, 1)
        atts.append(jnp.transpose(att, (0, 3, 1, 2)))      # back to NCHW
    return atts


# ----------------------------------------------------------------------------

if __name__ == "__main__":
    key = jax.random.PRNGKey(0)
    inplanes, fpn_lvl, batch, H0 = 32, 4, 2, 16

    kp, kx = jax.random.split(key)
    params = init_cam_params(kp, inplanes, fpn_lvl)

    kxs = jax.random.split(kx, fpn_lvl)
    feats = []
    for i in range(fpn_lvl):
        s = H0 // (2 ** i)
        feats.append(jax.random.normal(kxs[i], (batch, inplanes, s, s),
                                       jnp.float32))

    outs = cam_forward(params, feats, fpn_lvl=fpn_lvl)
    outs = jax.block_until_ready(outs)

    expected = [(batch, 1, H0 // (2 ** i), H0 // (2 ** i))
                for i in range(fpn_lvl)]
    assert [tuple(o.shape) for o in outs] == expected, [o.shape for o in outs]
    assert all(bool(jnp.all((o >= 0) & (o <= 1))) for o in outs)  # sigmoid range
    print("KERNEL_OK")
</pallas_src>

<mosaic_0001>
module attributes {stable_mosaic.version = 11 : i64} {
  func.func @_conv_direct_kernel(%arg0: i32, %arg1: i32, %arg2: memref<1x18x18x128xbf16, #tpu.memory_space<vmem>>, %arg3: memref<9x128x128xbf16, #tpu.memory_space<vmem>>, %arg4: memref<1x128xf32, #tpu.memory_space<vmem>>, %arg5: memref<1x16x16x128xbf16, #tpu.memory_space<vmem>>) attributes {dimension_semantics = [#tpu.dimension_semantics<parallel>, #tpu.dimension_semantics<parallel>], iteration_bounds = array<i64: 2, 1>, scalar_prefetch = 0 : i64, scratch_operands = 0 : i64, tpu.core_type = #tpu.core_type<tc>, window_params = [{transform_indices = @transform_0, window_bounds = array<i64: 1, 18, 18, 128>}, {transform_indices = @transform_1, window_bounds = array<i64: 9, 128, 128>}, {transform_indices = @transform_2, window_bounds = array<i64: 1, 128>}, {transform_indices = @transform_3, window_bounds = array<i64: 1, 16, 16, 128>}]} {
    %cst = arith.constant 0.000000e+00 : f32
    %0 = vector.broadcast %cst : f32 to vector<256x128xf32>
    %c0 = arith.constant 0 : index
    %c0_0 = arith.constant 0 : index
    %c0_1 = arith.constant 0 : index
    %c0_2 = arith.constant 0 : index
    %1 = vector.load %arg2[%c0, %c0_0, %c0_1, %c0_2] : memref<1x18x18x128xbf16, #tpu.memory_space<vmem>>, vector<1x16x16x128xbf16>
    %2 = vector.shape_cast %1 : vector<1x16x16x128xbf16> to vector<16x16x128xbf16>
    %3 = vector.shape_cast %2 : vector<16x16x128xbf16> to vector<256x128xbf16>
    %c0_3 = arith.constant 0 : index
    %c0_4 = arith.constant 0 : index
    %c0_5 = arith.constant 0 : index
    %4 = vector.load %arg3[%c0_3, %c0_4, %c0_5] : memref<9x128x128xbf16, #tpu.memory_space<vmem>>, vector<1x128x128xbf16>
    %5 = vector.shape_cast %4 : vector<1x128x128xbf16> to vector<128x128xbf16>
    %cst_6 = arith.constant dense<0.000000e+00> : vector<256x128xf32>
    %6 = tpu.matmul %3, %5, %cst_6 {dimension_numbers = #tpu.dot_dimension_numbers<[1], [0], [0], [1], [0, 0, 1, 1], [], []>} : vector<256x128xbf16>, vector<128x128xbf16>, vector<256x128xf32> -> vector<256x128xf32>
    %7 = arith.addf %0, %6 : vector<256x128xf32>
    %c0_7 = arith.constant 0 : index
    %c0_8 = arith.constant 0 : index
    %c1 = arith.constant 1 : index
    %c0_9 = arith.constant 0 : index
    %8 = vector.load %arg2[%c0_7, %c0_8, %c1, %c0_9] : memref<1x18x18x128xbf16, #tpu.memory_space<vmem>>, vector<1x16x16x128xbf16>
    %9 = vector.shape_cast %8 : vector<1x16x16x128xbf16> to vector<16x16x128xbf16>
    %10 = vector.shape_cast %9 : vector<16x16x128xbf16> to vector<256x128xbf16>
    %c1_10 = arith.constant 1 : index
    %c0_11 = arith.constant 0 : index
    %c0_12 = arith.constant 0 : index
    %11 = vector.load %arg3[%c1_10, %c0_11, %c0_12] : memref<9x128x128xbf16, #tpu.memory_space<vmem>>, vector<1x128x128xbf16>
    %12 = vector.shape_cast %11 : vector<1x128x128xbf16> to vector<128x128xbf16>
    %cst_13 = arith.constant dense<0.000000e+00> : vector<256x128xf32>
    %13 = tpu.matmul %10, %12, %cst_13 {dimension_numbers = #tpu.dot_dimension_numbers<[1], [0], [0], [1], [0, 0, 1, 1], [], []>} : vector<256x128xbf16>, vector<128x128xbf16>, vector<256x128xf32> -> vector<256x128xf32>
    %14 = arith.addf %7, %13 : vector<256x128xf32>
    %c0_14 = arith.constant 0 : index
    %c0_15 = arith.constant 0 : index
    %c2 = arith.constant 2 : index
    %c0_16 = arith.constant 0 : index
    %15 = vector.load %arg2[%c0_14, %c0_15, %c2, %c0_16] : memref<1x18x18x128xbf16, #tpu.memory_space<vmem>>, vector<1x16x16x128xbf16>
    %16 = vector.shape_cast %15 : vector<1x16x16x128xbf16> to vector<16x16x128xbf16>
    %17 = vector.shape_cast %16 : vector<16x16x128xbf16> to vector<256x128xbf16>
    %c2_17 = arith.constant 2 : index
    %c0_18 = arith.constant 0 : index
    %c0_19 = arith.constant 0 : index
    %18 = vector.load %arg3[%c2_17, %c0_18, %c0_19] : memref<9x128x128xbf16, #tpu.memory_space<vmem>>, vector<1x128x128xbf16>
    %19 = vector.shape_cast %18 : vector<1x128x128xbf16> to vector<128x128xbf16>
    %cst_20 = arith.constant dense<0.000000e+00> : vector<256x128xf32>
    %20 = tpu.matmul %17, %19, %cst_20 {dimension_numbers = #tpu.dot_dimension_numbers<[1], [0], [0], [1], [0, 0, 1, 1], [], []>} : vector<256x128xbf16>, vector<128x128xbf16>, vector<256x128xf32> -> vector<256x128xf32>
    %21 = arith.addf %14, %20 : vector<256x128xf32>
    %c0_21 = arith.constant 0 : index
    %c1_22 = arith.constant 1 : index
    %c0_23 = arith.constant 0 : index
    %c0_24 = arith.constant 0 : index
    %22 = vector.load %arg2[%c0_21, %c1_22, %c0_23, %c0_24] : memref<1x18x18x128xbf16, #tpu.memory_space<vmem>>, vector<1x16x16x128xbf16>
    %23 = vector.shape_cast %22 : vector<1x16x16x128xbf16> to vector<16x16x128xbf16>
    %24 = vector.shape_cast %23 : vector<16x16x128xbf16> to vector<256x128xbf16>
    %c3 = arith.constant 3 : index
    %c0_25 = arith.constant 0 : index
    %c0_26 = arith.constant 0 : index
    %25 = vector.load %arg3[%c3, %c0_25, %c0_26] : memref<9x128x128xbf16, #tpu.memory_space<vmem>>, vector<1x128x128xbf16>
    %26 = vector.shape_cast %25 : vector<1x128x128xbf16> to vector<128x128xbf16>
    %cst_27 = arith.constant dense<0.000000e+00> : vector<256x128xf32>
    %27 = tpu.matmul %24, %26, %cst_27 {dimension_numbers = #tpu.dot_dimension_numbers<[1], [0], [0], [1], [0, 0, 1, 1], [], []>} : vector<256x128xbf16>, vector<128x128xbf16>, vector<256x128xf32> -> vector<256x128xf32>
    %28 = arith.addf %21, %27 : vector<256x128xf32>
    %c0_28 = arith.constant 0 : index
    %c1_29 = arith.constant 1 : index
    %c1_30 = arith.constant 1 : index
    %c0_31 = arith.constant 0 : index
    %29 = vector.load %arg2[%c0_28, %c1_29, %c1_30, %c0_31] : memref<1x18x18x128xbf16, #tpu.memory_space<vmem>>, vector<1x16x16x128xbf16>
    %30 = vector.shape_cast %29 : vector<1x16x16x128xbf16> to vector<16x16x128xbf16>
    %31 = vector.shape_cast %30 : vector<16x16x128xbf16> to vector<256x128xbf16>
    %c4 = arith.constant 4 : index
    %c0_32 = arith.constant 0 : index
    %c0_33 = arith.constant 0 : index
    %32 = vector.load %arg3[%c4, %c0_32, %c0_33] : memref<9x128x128xbf16, #tpu.memory_space<vmem>>, vector<1x128x128xbf16>
    %33 = vector.shape_cast %32 : vector<1x128x128xbf16> to vector<128x128xbf16>
    %cst_34 = arith.constant dense<0.000000e+00> : vector<256x128xf32>
    %34 = tpu.matmul %31, %33, %cst_34 {dimension_numbers = #tpu.dot_dimension_numbers<[1], [0], [0], [1], [0, 0, 1, 1], [], []>} : vector<256x128xbf16>, vector<128x128xbf16>, vector<256x128xf32> -> vector<256x128xf32>
    %35 = arith.addf %28, %34 : vector<256x128xf32>
    %c0_35 = arith.constant 0 : index
    %c1_36 = arith.constant 1 : index
    %c2_37 = arith.constant 2 : index
    %c0_38 = arith.constant 0 : index
    %36 = vector.load %arg2[%c0_35, %c1_36, %c2_37, %c0_38] : memref<1x18x18x128xbf16, #tpu.memory_space<vmem>>, vector<1x16x16x128xbf16>
    %37 = vector.shape_cast %36 : vector<1x16x16x128xbf16> to vector<16x16x128xbf16>
    %38 = vector.shape_cast %37 : vector<16x16x128xbf16> to vector<256x128xbf16>
    %c5 = arith.constant 5 : index
    %c0_39 = arith.constant 0 : index
    %c0_40 = arith.constant 0 : index
    %39 = vector.load %arg3[%c5, %c0_39, %c0_40] : memref<9x128x128xbf16, #tpu.memory_space<vmem>>, vector<1x128x128xbf16>
    %40 = vector.shape_cast %39 : vector<1x128x128xbf16> to vector<128x128xbf16>
    %cst_41 = arith.constant dense<0.000000e+00> : vector<256x128xf32>
    %41 = tpu.matmul %38, %40, %cst_41 {dimension_numbers = #tpu.dot_dimension_numbers<[1], [0], [0], [1], [0, 0, 1, 1], [], []>} : vector<256x128xbf16>, vector<128x128xbf16>, vector<256x128xf32> -> vector<256x128xf32>
    %42 = arith.addf %35, %41 : vector<256x128xf32>
    %c0_42 = arith.constant 0 : index
    %c2_43 = arith.constant 2 : index
    %c0_44 = arith.constant 0 : index
    %c0_45 = arith.constant 0 : index
    %43 = vector.load %arg2[%c0_42, %c2_43, %c0_44, %c0_45] : memref<1x18x18x128xbf16, #tpu.memory_space<vmem>>, vector<1x16x16x128xbf16>
    %44 = vector.shape_cast %43 : vector<1x16x16x128xbf16> to vector<16x16x128xbf16>
    %45 = vector.shape_cast %44 : vector<16x16x128xbf16> to vector<256x128xbf16>
    %c6 = arith.constant 6 : index
    %c0_46 = arith.constant 0 : index
    %c0_47 = arith.constant 0 : index
    %46 = vector.load %arg3[%c6, %c0_46, %c0_47] : memref<9x128x128xbf16, #tpu.memory_space<vmem>>, vector<1x128x128xbf16>
    %47 = vector.shape_cast %46 : vector<1x128x128xbf16> to vector<128x128xbf16>
    %cst_48 = arith.constant dense<0.000000e+00> : vector<256x128xf32>
    %48 = tpu.matmul %45, %47, %cst_48 {dimension_numbers = #tpu.dot_dimension_numbers<[1], [0], [0], [1], [0, 0, 1, 1], [], []>} : vector<256x128xbf16>, vector<128x128xbf16>, vector<256x128xf32> -> vector<256x128xf32>
    %49 = arith.addf %42, %48 : vector<256x128xf32>
    %c0_49 = arith.constant 0 : index
    %c2_50 = arith.constant 2 : index
    %c1_51 = arith.constant 1 : index
    %c0_52 = arith.constant 0 : index
    %50 = vector.load %arg2[%c0_49, %c2_50, %c1_51, %c0_52] : memref<1x18x18x128xbf16, #tpu.memory_space<vmem>>, vector<1x16x16x128xbf16>
    %51 = vector.shape_cast %50 : vector<1x16x16x128xbf16> to vector<16x16x128xbf16>
    %52 = vector.shape_cast %51 : vector<16x16x128xbf16> to vector<256x128xbf16>
    %c7 = arith.constant 7 : index
    %c0_53 = arith.constant 0 : index
    %c0_54 = arith.constant 0 : index
    %53 = vector.load %arg3[%c7, %c0_53, %c0_54] : memref<9x128x128xbf16, #tpu.memory_space<vmem>>, vector<1x128x128xbf16>
    %54 = vector.shape_cast %53 : vector<1x128x128xbf16> to vector<128x128xbf16>
    %cst_55 = arith.constant dense<0.000000e+00> : vector<256x128xf32>
    %55 = tpu.matmul %52, %54, %cst_55 {dimension_numbers = #tpu.dot_dimension_numbers<[1], [0], [0], [1], [0, 0, 1, 1], [], []>} : vector<256x128xbf16>, vector<128x128xbf16>, vector<256x128xf32> -> vector<256x128xf32>
    %56 = arith.addf %49, %55 : vector<256x128xf32>
    %c0_56 = arith.constant 0 : index
    %c2_57 = arith.constant 2 : index
    %c2_58 = arith.constant 2 : index
    %c0_59 = arith.constant 0 : index
    %57 = vector.load %arg2[%c0_56, %c2_57, %c2_58, %c0_59] : memref<1x18x18x128xbf16, #tpu.memory_space<vmem>>, vector<1x16x16x128xbf16>
    %58 = vector.shape_cast %57 : vector<1x16x16x128xbf16> to vector<16x16x128xbf16>
    %59 = vector.shape_cast %58 : vector<16x16x128xbf16> to vector<256x128xbf16>
    %c8 = arith.constant 8 : index
    %c0_60 = arith.constant 0 : index
    %c0_61 = arith.constant 0 : index
    %60 = vector.load %arg3[%c8, %c0_60, %c0_61] : memref<9x128x128xbf16, #tpu.memory_space<vmem>>, vector<1x128x128xbf16>
    %61 = vector.shape_cast %60 : vector<1x128x128xbf16> to vector<128x128xbf16>
    %cst_62 = arith.constant dense<0.000000e+00> : vector<256x128xf32>
    %62 = tpu.matmul %59, %61, %cst_62 {dimension_numbers = #tpu.dot_dimension_numbers<[1], [0], [0], [1], [0, 0, 1, 1], [], []>} : vector<256x128xbf16>, vector<128x128xbf16>, vector<256x128xf32> -> vector<256x128xf32>
    %63 = arith.addf %56, %62 : vector<256x128xf32>
    %c0_63 = arith.constant 0 : index
    %c0_64 = arith.constant 0 : index
    %64 = vector.load %arg4[%c0_63, %c0_64] : memref<1x128xf32, #tpu.memory_space<vmem>>, vector<1x128xf32>
    %65 = vector.broadcast %64 : vector<1x128xf32> to vector<256x128xf32>
    %66 = arith.addf %63, %65 : vector<256x128xf32>
    %67 = vector.shape_cast %66 : vector<256x128xf32> to vector<16x16x128xf32>
    %68 = arith.truncf %67 : vector<16x16x128xf32> to vector<16x16x128xbf16>
    %c0_65 = arith.constant 0 : index
    %c0_66 = arith.constant 0 : index
    %c0_67 = arith.constant 0 : index
    %c0_68 = arith.constant 0 : index
    %69 = vector.load %arg5[%c0_65, %c0_66, %c0_67, %c0_68] : memref<1x16x16x128xbf16, #tpu.memory_space<vmem>>, vector<1x16x16x128xbf16>
    %70 = vector.shape_cast %69 : vector<1x16x16x128xbf16> to vector<16x16x128xbf16>
    %71 = vector.shape_cast %68 : vector<16x16x128xbf16> to vector<1x16x16x128xbf16>
    tpu.vector_store %arg5[%c0_65, %c0_66, %c0_67, %c0_68], %71 {strides = array<i32>} : memref<1x16x16x128xbf16, #tpu.memory_space<vmem>>, vector<1x16x16x128xbf16>,
    return
  }
  func.func @transform_0(%arg0: i32, %arg1: i32) -> (i32, i32, i32, i32) {
    %c0_i32 = arith.constant 0 : i32
    %c0_i32_0 = arith.constant 0 : i32
    %c0_i32_1 = arith.constant 0 : i32
    %c0_i32_2 = arith.constant 0 : i32
    return %arg0, %c0_i32, %c0_i32_0, %c0_i32_1 : i32, i32, i32, i32
  }
  func.func @transform_1(%arg0: i32, %arg1: i32) -> (i32, i32, i32) {
    %c0_i32 = arith.constant 0 : i32
    %c0_i32_0 = arith.constant 0 : i32
    %c0_i32_1 = arith.constant 0 : i32
    return %c0_i32, %c0_i32_0, %arg1 : i32, i32, i32
  }
  func.func @transform_2(%arg0: i32, %arg1: i32) -> (i32, i32) {
    %c0_i32 = arith.constant 0 : i32
    %c0_i32_0 = arith.constant 0 : i32
    return %c0_i32, %arg1 : i32, i32
  }
  func.func @transform_3(%arg0: i32, %arg1: i32) -> (i32, i32, i32, i32) {
    %c0_i32 = arith.constant 0 : i32
    %c0_i32_0 = arith.constant 0 : i32
    %c0_i32_1 = arith.constant 0 : i32
    return %arg0, %c0_i32, %c0_i32_0, %arg1 : i32, i32, i32, i32
  }
}

</mosaic_0001>

<bundles_post_ra>
// kernel: tpu_custom_call.1
= control target key start
LH: loop header
LB: loop body
LE: loop exit
PB: predicated region body
PF: predicated region fallthrough
CT: control target
= control target key end

     0   :  { %8 = vsyncpa [#allocation3], 0  ;;  %s9300_s0 = inlined_call_operand.vmem [shape: bf16[2,18,18,128], index: 0, kind: input, shape index: {}]   ;;  %s9301_s1 = inlined_call_operand.vmem [shape: bf16[9,128,128], index: 1, kind: input, shape index: {}]   ;;  %s9302_s2 = inlined_call_operand.vmem [shape: f32[1,128], index: 2, kind: input, shape index: {}]   ;;  %s9303_s3 = inlined_call_operand.hbm [shape: bf16[2,16,16,128], index: 3, kind: output, shape index: {}]  }
   0x1   :  { %10 = vsyncpa [#allocation3 + $0x1], 0  ;;  %s7367_s12 = smov 0   ;;  %s7369_s13 = smov 0  }
   0x2   :  { %s7371_s14 = smov 0   ;;  %s7373_s15 = smov 0  }
   0x3   :  { %s7375_s16 = smov 0   ;;  %s7377_s17 = smov 0  }
   0x4 LB: > { %s5337_s18 = sadd.s32 4294967295, %s7342_s17   ;;  %s5338_s19 = sadd.s32 4294967294, %s7342_s17   ;;  %s7342_s17 = sphi %s7377_s17, %s16_s17   ;;  %s7338_s16 = sphi %s7375_s16, %s9376_s16   ;;  %s7334_s15 = sphi %s7373_s15, %s9375_s15   ;;  %s7330_s14 = sphi %s7371_s14, %s9374_s14   ;;  %s7326_s13 = sphi %s7369_s13, %s9373_s13   ;;  %s7322_s12 = sphi %s7367_s12, %s9372_s12  }
   0x5   : > { %s28_s20 = sadd.s32 1, %s7338_s16  ;;  %s115_s21 = sadd.s32 1, %s7330_s14 }
   0x6   : > { %p30_p0 = scmp.ge.s32.totalorder %s28_s20, 2  ;;  %p125_p1 = scmp.ne.s32.totalorder %s7330_s14, %s7326_s13 }
   0x7   : > { %p126_p2 = scmp.eq.s32.totalorder %s5337_s18, 1  ;;  %p131_p3 = scmp.ne.s32.totalorder %s7326_s13, %s7322_s12 }
   0x8   : > { %s9378_s20 = smov (%p30_p0, %s28_s20), 0  ;;  %p132_p5 = scmp.eq.s32.totalorder %s5338_s19, 1 }
   0x9   : > { %p7407_p4 = por %p126_p2, %p125_p1  ;;  %s110_s23 = ssub.s32 %s7338_s16, %s9378_s20 }
   0xa   : > { %p5343_p6 = scmp.ge.s32.totalorder %s7342_s17, 1  ;;  %p113_p7 = scmp.eq.s32.totalorder %s110_s23, 0 }
   0xb   : > { %p7414_p8 = por %p132_p5, %p131_p3  ;;  %p171_p9 = scmp.lt.s32.totalorder %s7342_s17, 3 }
   0xc   : > { %s7420_s25 = scalar_select %p113_p7, %s7330_s14, %s115_s21  }
   0xd   : > { %p172_p10 = pnand %p5343_p6, %p171_p9 }
   0xf   : > { %175 = sbr.rel (%p172_p10) target bundleno = 611 (0x263), region = 32 }
  0x16   : > { %v7074_v0 = vld [vmem:[%s9301_s1 + $0x40] sm:$0xff]   ;;  %p202_p11 = scmp.lt.s32.totalorder %s7334_s15, 1  ;;  %v7076_v2 = vld [vmem:[%s9301_s1 + $0x48] sm:$0xff]   ;;  %v7078_v4 = vld [vmem:[%s9301_s1 + $0x50] sm:$0xff]   ;;  %vm279_vm0 = vsmask.f32 3328 }
  0x17   : > { %v7075_v1 = vld [vmem:[%s9301_s1 + $0x100] sm:$0xff]   ;;  %6312 = vmatprep.subr.bf16.mxu1 %v7074_v0  ;;  %v7077_v3 = vld [vmem:[%s9301_s1 + $0x108] sm:$0xff]   ;;  %v7079_v5 = vld [vmem:[%s9301_s1 + $0x110] sm:$0xff]   ;;  %vm280_vm1 = vsmask.f32 7440  ;;  %vm1309_vm3 = vcmask 1042432  }
  0x18   : > { %6504 = vmatprep.subr.bf16.mxu0 %v7075_v1  ;;  %6313 = vmatpush3.bf16.msra.mxu1 %v7074_v0  ;;  %s203_s11 = scalar_select %p202_p11, %s7334_s15, 1  ;;  %v7080_v6 = vld [vmem:[%s9301_s1 + $0x58] sm:$0xff]   ;;  %v7082_v8 = vld [vmem:[%s9301_s1 + $0x60] sm:$0xff]   ;;  %v7084_v10 = vld [vmem:[%s9301_s1 + $0x68] sm:$0xff]   ;;  %vm1310_vm4 = vcmask 1046532  }
  0x19   : > { %6505 = vmatpush3.bf16.msra.mxu0 %v7075_v1  ;;  %6314 = vmatprep.subr.bf16.mxu1 %v7076_v2  ;;  %v7081_v7 = vld [vmem:[%s9301_s1 + $0x118] sm:$0xff]   ;;  %v7083_v9 = vld [vmem:[%s9301_s1 + $0x120] sm:$0xff]   ;;  %v7085_v11 = vld [vmem:[%s9301_s1 + $0x128] sm:$0xff]   ;;  %s6000_s7 = sshll.u32 %s7334_s15, 11  ;;  %s7344_s19 = smov [#allocation2]  }
  0x1a   : > { %6506 = vmatprep.subr.bf16.mxu0 %v7077_v3  ;;  %s7016_s26 = smul.u32 216, %s203_s11  ;;  %v7086_v25 = vld [vmem:[%s9301_s1 + $0x70] sm:$0xff]   ;;  %v7088_v36 = vld [vmem:[%s9301_s1 + $0x78] sm:$0xff]   ;;  %vm7489_vm2 = vmor %vm279_vm0, %vm280_vm1  ;;  %s9246_s11 = scalar_lea.hbm %s9303_s3, %s6000_s7 }
  0x1b   : > { %v7087_v30 = vld [vmem:[%s9301_s1 + $0x130] sm:$0xff]   ;;  %v7089_v51 = vld [vmem:[%s9301_s1 + $0x138] sm:$0xff]   ;;  %vm7735_vm5 = vmor %vm1309_vm3, %vm1310_vm4  ;;  %s7268_s21 = sshll.u32 %s7344_s19, 4  ;;  %s7269_s21 = int_to_ptr.vmem [resolvable:$false] %s7268_s21 }
  0x1c   : > { %6315 = vmatpush3.bf16.msra.mxu1 %v7076_v2  ;;  %s7457_s6 = scalar_lea.vmem %s9300_s0, %s7016_s26  ;;  %s7270_s23 = scalar_lea.vmem %s7269_s21, 4096 }
  0x1d   : > { %6507 = vmatpush3.bf16.msra.mxu0 %v7077_v3  ;;  %6316 = vmatprep.subr.bf16.mxu1 %v7078_v4  ;;  %v215_v12 = vld [vmem:[%s7457_s6] sm:$0xf]  ;;  %v216_v13 = vld [vmem:[%s7457_s6 + $0x4] sm:$0xf]  ;;  %v263_v14 = vld [vmem:[%s7457_s6 + $0x8] sm:$0x1] }
  0x1e   : > { %6508 = vmatprep.subr.bf16.mxu0 %v7079_v5  ;;  %v283_v15 = vshrl.u32 %v215_v12, 16  ;;  %v286_v16 = vshll.u32 %v215_v12, 16  ;;  %v292_v17 = vshll.u32 %v216_v13, 16  ;;  %v296_v18 = vshrl.u32 %v216_v13, 16  ;;  %v5538_v20 = vld [vmem:[%s7457_s6 + $0xc] sm:$0xf] }
  0x1f   : > { %v302_v19 = vshll.u32 %v263_v14, 16  ;;  %v7470_v23 = vld [vmem:[%s7457_s6 + $0x10] sm:$0xf]  ;;  %v7473_v24 = vld [vmem:[%s7457_s6 + $0x14] sm:$0x1]  ;;  %v2182_v29 = vshrl.u32 %v5538_v20, 16 }
  0x20   : > { %6317 = vmatpush3.bf16.msra.mxu1 %v7078_v4  ;;  %v285_v21 = vrot.slane %v283_v15, 4  ;;  %v288_v22 = vrot.slane %v286_v16, 5  ;;  %v294_v26 = vrot.slane %v292_v17, 5  ;;  %v298_v27 = vrot.slane %v296_v18, 4  ;;  %v217_v35 = vld [vmem:[%s7457_s6 + $0xc] sm:$0xf] }
  0x21   : > { %6509 = vmatpush3.bf16.msra.mxu0 %v7079_v5  ;;  %6318 = vmatprep.subr.bf16.mxu1 %v7080_v6  ;;  %v304_v28 = vrot.slane %v302_v19, 5  ;;  %v2185_v32 = vshll.u32 %v5538_v20, 16  ;;  %v2191_v33 = vshll.u32 %v7470_v23, 16  ;;  %v2195_v34 = vshrl.u32 %v7470_v23, 16  ;;  %v218_v42 = vld [vmem:[%s7457_s6 + $0x10] sm:$0xf] }
  0x22   : > { %6510 = vmatprep.subr.bf16.mxu0 %v7081_v7  ;;  %v289_v31 = vor.u32 %v288_v22, %v285_v21  ;;  %v299_v38 = vor.u32 %v298_v27, %v294_v26  ;;  %v2184_v39 = vrot.slane %v2182_v29, 4  ;;  %v2201_v40 = vshll.u32 %v7473_v24, 16  ;;  %v264_v55 = vld [vmem:[%s7457_s6 + $0x14] sm:$0x1]  ;;  %v5541_v57 = vld [vmem:[%s7457_s6 + $0x18] sm:$0xf] }
  0x23   : > { %v2956_v41 = vrot.slane %v7473_v24, 5  ;;  %v2187_v44 = vrot.slane %v2185_v32, 5  ;;  %v2193_v45 = vrot.slane %v2191_v33, 5  ;;  %v2197_v46 = vrot.slane %v2195_v34, 4  ;;  %v7506_v62 = vld [vmem:[%s7457_s6 + $0x1c] sm:$0xf] }
  0x24   : > { %6319 = vmatpush3.bf16.msra.mxu1 %v7080_v6  ;;  %v290_v43 = vrot.slane %v289_v31, 4  ;;  %v300_v47 = vrot.slane %v299_v38, 4  ;;  %v2203_v48 = vrot.slane %v2201_v40, 5  ;;  %v307_v49 = vshrl.u32 %v217_v35, 16  ;;  %v7090_v3 = vld [vmem:[%s9301_s1] sm:$0xff]  }
  0x25   : > { %6511 = vmatpush3.bf16.msra.mxu0 %v7081_v7  ;;  %6320 = vmatprep.subr.bf16.mxu1 %v7082_v8  ;;  %v310_v50 = vshll.u32 %v217_v35, 16  ;;  %v2188_v53 = vor.u32 %v2187_v44, %v2184_v39  ;;  %v2198_v54 = vor.u32 %v2197_v46, %v2193_v45  ;;  %v316_v56 = vshll.u32 %v218_v42, 16  ;;  %v7514_v4 = vld [vmem:[%s9301_s1 + $0x140] sm:$0xff]   ;;  %v219_v21 = vld [vmem:[%s7457_s6 + $0x18] sm:$0xf]  ;;  %v7093_v46 = vld [vmem:[%s9301_s1 + $0x8] sm:$0xff]  }
  0x26   : > { %6512 = vmatprep.subr.bf16.mxu0 %v7083_v9  ;;  %v295_v52 = vsel %vm7489_vm2, %v290_v43, %v294_v26  ;;  %v305_v58 = vsel %vm7489_vm2, %v300_v47, %v304_v28  ;;  %v309_v59 = vrot.slane %v307_v49, 4  ;;  %v320_v61 = vshrl.u32 %v218_v42, 16  ;;  %v220_v28 = vld [vmem:[%s7457_s6 + $0x1c] sm:$0xf]  ;;  %v265_v33 = vld [vmem:[%s7457_s6 + $0x20] sm:$0x1] }
  0x27   : > { %v312_v60 = vrot.slane %v310_v50, 5  ;;  %v5362_v63 = vcombine.low %v295_v52, %v305_v58  ;;  %v2189_v0 = vrot.slane %v2188_v53, 4  ;;  %v2199_v1 = vrot.slane %v2198_v54, 4  ;;  %v5544_v39 = vld [vmem:[%s7457_s6 + $0x24] sm:$0xf] }
  0x28   : > { %6321 = vmatpush3.bf16.msra.mxu1 %v7082_v8  ;;  %v318_v2 = vrot.slane %v316_v56, 5  ;;  %v322_v6 = vrot.slane %v320_v61, 4  ;;  %v326_v7 = vshll.u32 %v264_v55, 16  ;;  %v7517_v8 = vld [vmem:[%s7457_s6 + $0x20] sm:$0x1]  ;;  %v2209_v12 = vshll.u32 %v5541_v57, 16 }
  0x29   : > { %6513 = vmatpush3.bf16.msra.mxu0 %v7083_v9  ;;  %6322 = vmatprep.subr.bf16.mxu1 %v7084_v10  ;;  %v313_v5 = vor.u32 %v312_v60, %v309_v59  ;;  %v2194_v9 = vsel %vm7489_vm2, %v2189_v0, %v2193_v45  ;;  %v2215_v19 = vshll.u32 %v7506_v62, 16  ;;  %v2219_v20 = vshrl.u32 %v7506_v62, 16  ;;  %v7542_v45 = vld [vmem:[%s7457_s6 + $0x28] sm:$0xf]  ;;  %v221_v52 = vld [vmem:[%s7457_s6 + $0x24] sm:$0xf] }
  0x2a   : > { %6514 = vmatprep.subr.bf16.mxu0 %v7085_v11  ;;  %6328 = vmatprep.mubr.bf16.mxu1 %v5362_v63  ;;  %v323_v15 = vor.u32 %v322_v6, %v318_v2  ;;  %v328_v16 = vrot.slane %v326_v7, 5  ;;  %v2211_v18 = vrot.slane %v2209_v12, 5  ;;  %v2225_v26 = vshll.u32 %v7517_v8, 16  ;;  %v7092_v63 = vld [vmem:[%s9301_s1 + $0x148] sm:$0xff]  }
  0x2b   : > { %v314_v14 = vrot.slane %v313_v5, 4  ;;  %v2960_v27 = vrot.slane %v7506_v62, 5  ;;  %v2221_v31 = vrot.slane %v2219_v20, 4  ;;  %v2963_v32 = vrot.slane %v7517_v8, 5  ;;  %v222_v5 = vld [vmem:[%s7457_s6 + $0x28] sm:$0xf] }
  0x2c   : > { %6323 = vmatpush3.bf16.msra.mxu1 %v7084_v10  ;;  %v2204_v10 = vsel %vm7489_vm2, %v2199_v1, %v2203_v48  ;;  %v2227_v35 = vrot.slane %v2225_v26, 5  ;;  %v331_v38 = vshrl.u32 %v219_v21, 16  ;;  %v334_v44 = vshll.u32 %v219_v21, 16 }
  0x2d   : > { %6515 = vmatpush3.bf16.msra.mxu0 %v7085_v11  ;;  %6324 = vmatprep.subr.bf16.mxu1 %v7086_v25  ;;  %v2206_v11 = vshrl.u32 %v5541_v57, 16  ;;  %v5602_v13 = vcombine.low %v2194_v9, %v2204_v10  ;;  %v319_v22 = vsel %vm7489_vm2, %v314_v14, %v318_v2  ;;  %v340_v48 = vshll.u32 %v220_v28, 16 }
  0x2e   : > { %6516 = vmatprep.subr.bf16.mxu0 %v7087_v30  ;;  %v333_v47 = vrot.slane %v331_v38, 4  ;;  %v344_v49 = vshrl.u32 %v220_v28, 16  ;;  %v350_v50 = vshll.u32 %v265_v33, 16  ;;  %v336_v55 = vrot.slane %v334_v44, 5  ;;  %v7573_v33 = vld [vmem:[%s7457_s6 + $0x34] sm:$0xf] }
  0x2f   : > { %v2208_v17 = vrot.slane %v2206_v11, 4  ;;  %6520 = vmatprep.mubr.bf16.mxu0 %v5602_v13  ;;  %v2230_v56 = vshrl.u32 %v5544_v39, 16  ;;  %v342_v57 = vrot.slane %v340_v48, 5  ;;  %v2233_v60 = vshll.u32 %v5544_v39, 16  ;;  %v266_v11 = vld [vmem:[%s7457_s6 + $0x2c] sm:$0x1] }
  0x30   : > { %6325 = vmatpush3.bf16.msra.mxu1 %v7086_v25  ;;  %v324_v25 = vrot.slane %v323_v15, 4  ;;  %v346_v58 = vrot.slane %v344_v49, 4  ;;  %v352_v59 = vrot.slane %v350_v50, 5  ;;  %v337_v0 = vor.u32 %v336_v55, %v333_v47  ;;  %v7095_v48 = vld [vmem:[%s9301_s1 + $0x158] sm:$0xff]  }
  0x31   : > { %6517 = vmatpush3.bf16.msra.mxu0 %v7087_v30  ;;  %6326 = vmatprep.subr.bf16.mxu1 %v7088_v36  ;;  %v2212_v29 = vor.u32 %v2211_v18, %v2208_v17  ;;  %v2217_v30 = vrot.slane %v2215_v19, 5  ;;  %v2232_v1 = vrot.slane %v2230_v56, 4  ;;  %v2239_v2 = vshll.u32 %v7542_v45, 16 }
  0x32   : > { %6518 = vmatprep.subr.bf16.mxu0 %v7089_v51  ;;  %v329_v34 = vsel %vm7489_vm2, %v324_v25, %v328_v16  ;;  %v347_v7 = vor.u32 %v346_v58, %v342_v57  ;;  %v2235_v9 = vrot.slane %v2233_v60, 5  ;;  %v2243_v10 = vshrl.u32 %v7542_v45, 16  ;;  %v5547_v16 = vld [vmem:[%s7457_s6 + $0x30] sm:$0xf]  ;;  %v7102_v60 = vld [vmem:[%s9301_s1 + $0x20] sm:$0xff]  }
  0x33   : > { %v5363_v40 = vcombine.low %v319_v22, %v329_v34  ;;  %v2213_v42 = vrot.slane %v2212_v29, 4  ;;  %v2222_v43 = vor.u32 %v2221_v31, %v2217_v30  ;;  %v338_v12 = vrot.slane %v337_v0, 4  ;;  %v7099_v34 = vld [vmem:[%s9301_s1 + $0x18] sm:$0xff]  }
  0x34   : > { %6327 = vmatpush3.bf16.msra.mxu1 %v7088_v36  ;;  %v7538_v36 = vrot.slane %v2960_v27, 4  ;;  %v2241_v13 = vrot.slane %v2239_v2, 5  ;;  %v355_v15 = vshrl.u32 %v221_v52, 16  ;;  %v348_v17 = vrot.slane %v347_v7, 4  ;;  %v267_v2 = vld [vmem:[%s7457_s6 + $0x38] sm:$0x1] }
  0x35   : > { %6519 = vmatpush3.bf16.msra.mxu0 %v7089_v51  ;;  %6360 = vmatprep.subr.bf16.mxu1 %v7090_v3  ;;  %v7548_v51 = vld [vmem:[%s7457_s6 + $0x2c] sm:$0x1]  ;;  %v2218_v53 = vsel %vm7489_vm2, %v2213_v42, %v2217_v30  ;;  %v2223_v54 = vrot.slane %v2222_v43, 4  ;;  %v2236_v18 = vor.u32 %v2235_v9, %v2232_v1  ;;  %v2245_v19 = vrot.slane %v2243_v10, 4  ;;  %v5550_v9 = vld [vmem:[%s7457_s6 + $0x3c] sm:$0xf] }
  0x36   : > { %6552 = vmatprep.subr.bf16.mxu0 %v7514_v4  ;;  %v2249_v14 = vshll.u32 %v7548_v51, 16  ;;  %v358_v20 = vshll.u32 %v221_v52, 16  ;;  %v343_v21 = vsel %vm7489_vm2, %v338_v12, %v342_v57  ;;  %v357_v25 = vrot.slane %v355_v15, 4 }
  0x37   : > { %6329 = vmatmul.mubr.bf16.vlgmr.msra.gmra.mrb[0].mxu1 %v5363_v40  ;;  %v2228_v61 = vsel %vm7489_vm2, %v2223_v54, %v2227_v35  ;;  %v364_v26 = vshll.u32 %v222_v5, 16  ;;  %v353_v28 = vsel %vm7489_vm2, %v348_v17, %v352_v59  ;;  %v2237_v29 = vrot.slane %v2236_v18, 4  ;;  %v223_v54 = vld [vmem:[%s7457_s6 + $0x30] sm:$0xf]  ;;  %v224_v59 = vld [vmem:[%s7457_s6 + $0x34] sm:$0xf] }
  0x38   : > { %6361 = vmatpush3.bf16.msra.mxu1 %v7090_v3  ;;  %v7096_v3 = vld [vmem:[%s9301_s1 + $0x10] sm:$0xff]   ;;  %v5603_v6 = vcombine.low %v2218_v53, %v2228_v61  ;;  %v2251_v22 = vrot.slane %v2249_v14, 5  ;;  %v2246_v30 = vor.u32 %v2245_v19, %v2241_v13  ;;  %v360_v31 = vrot.slane %v358_v20, 5  ;;  %v7104_v14 = vld [vmem:[%s9301_s1 + $0x28] sm:$0xff]   ;;  %v7607_v19 = vld [vmem:[%s7457_s6 + $0x40] sm:$0xf] }
  0x39   : > { %6362 = vmatprep.subr.bf16.mxu1 %v7093_v46  ;;  %v5364_v35 = vcombine.low %v343_v21, %v353_v28  ;;  %v366_v38 = vrot.slane %v364_v26, 5  ;;  %v368_v39 = vshrl.u32 %v222_v5, 16  ;;  %v374_v40 = vshll.u32 %v266_v11, 16  ;;  %v7097_v20 = vld [vmem:[%s9301_s1 + $0x160] sm:$0xff]  }
  0x3a   : > { %6521 = vmatmul.mubr.bf16.vlgmr.msra.gmra.mrb[0].mxu0 %v5603_v6  ;;  %v2242_v42 = vsel %vm7489_vm2, %v2237_v29, %v2241_v13  ;;  %v2247_v43 = vrot.slane %v2246_v30, 4  ;;  %v361_v44 = vor.u32 %v360_v31, %v357_v25  ;;  %v2254_v47 = vshrl.u32 %v5547_v16, 16  ;;  %v7615_v28 = vld [vmem:[%s7457_s6 + $0x44] sm:$0x1] }
  0x3b   : > { %6553 = vmatpush3.bf16.msra.mxu0 %v7514_v4  ;;  %v7094_v4 = vld [vmem:[%s9301_s1 + $0x150] sm:$0xff]   ;;  %6332 = vmatprep.mubr.bf16.mxu1 %v5364_v35  ;;  %v370_v49 = vrot.slane %v368_v39, 4  ;;  %v376_v50 = vrot.slane %v374_v40, 5  ;;  %v2257_v52 = vshll.u32 %v5547_v16, 16  ;;  %v2263_v53 = vshll.u32 %v7573_v33, 16 }
  0x3c   : > { %6363 = vmatpush3.bf16.msra.mxu1 %v7093_v46  ;;  %6554 = vmatprep.subr.bf16.mxu0 %v7092_v63  ;;  %v7584_v46 = vld [vmem:[%s7457_s6 + $0x38] sm:$0x1]  ;;  %v2252_v55 = vsel %vm7489_vm2, %v2247_v43, %v2251_v22  ;;  %v362_v56 = vrot.slane %v361_v44, 4  ;;  %v2256_v57 = vrot.slane %v2254_v47, 4  ;;  %v2267_v58 = vshrl.u32 %v7573_v33, 16  ;;  %v7106_v35 = vld [vmem:[%s9301_s1 + $0x30] sm:$0xff]  }
  0x3d   : > { %6364 = vmatprep.subr.bf16.mxu1 %v7096_v3  ;;  %v5604_v61 = vcombine.low %v2242_v42, %v2252_v55  ;;  %v2259_v0 = vrot.slane %v2257_v52, 5  ;;  %v2265_v1 = vrot.slane %v2263_v53, 5  ;;  %v2273_v6 = vshll.u32 %v7584_v46, 16  ;;  %v226_v55 = vld [vmem:[%s7457_s6 + $0x40] sm:$0xf] }
  0x3e   : > { %v367_v5 = vsel %vm7489_vm2, %v362_v56, %v366_v38  ;;  %v379_v7 = vshrl.u32 %v223_v54, 16  ;;  %v382_v12 = vshll.u32 %v223_v54, 16  ;;  %v388_v13 = vshll.u32 %v224_v59, 16 }
  0x3f   : > { %6555 = vmatpush3.bf16.msra.mxu0 %v7092_v63  ;;  %v371_v63 = vor.u32 %v370_v49, %v366_v38  ;;  %6524 = vmatprep.mubr.bf16.mxu0 %v5604_v61  ;;  %v2260_v11 = vor.u32 %v2259_v0, %v2256_v57  ;;  %v2275_v16 = vrot.slane %v2273_v6, 5  ;;  %v392_v18 = vshrl.u32 %v224_v59, 16 }
  0x40   : > { %6365 = vmatpush3.bf16.msra.mxu1 %v7096_v3  ;;  %6556 = vmatprep.subr.bf16.mxu0 %v7094_v4  ;;  %v2269_v3 = vrot.slane %v2267_v58, 4  ;;  %v381_v17 = vrot.slane %v379_v7, 4  ;;  %v384_v25 = vrot.slane %v382_v12, 5  ;;  %v390_v26 = vrot.slane %v388_v13, 5 }
  0x41   : > { %6366 = vmatprep.subr.bf16.mxu1 %v7099_v34  ;;  %v372_v10 = vrot.slane %v371_v63, 4  ;;  %v2261_v22 = vrot.slane %v2260_v11, 4  ;;  %v394_v31 = vrot.slane %v392_v18, 4  ;;  %v2278_v40 = vshrl.u32 %v5550_v9, 16  ;;  %v268_v63 = vld [vmem:[%s7457_s6 + $0x44] sm:$0x1] }
  0x42   : > { %v2270_v15 = vor.u32 %v2269_v3, %v2265_v1  ;;  %v385_v39 = vor.u32 %v384_v25, %v381_v17  ;;  %v2281_v42 = vshll.u32 %v5550_v9, 16  ;;  %v2287_v49 = vshll.u32 %v7607_v19, 16  ;;  %v5553_v9 = vld [vmem:[%s7457_s6 + $0x48] sm:$0xf] }
  0x43   : > { %6557 = vmatpush3.bf16.msra.mxu0 %v7094_v4  ;;  %v377_v21 = vsel %vm7489_vm2, %v372_v10, %v376_v50  ;;  %v398_v4 = vshll.u32 %v267_v2, 16  ;;  %v2266_v38 = vsel %vm7489_vm2, %v2261_v22, %v2265_v1  ;;  %v395_v44 = vor.u32 %v394_v31, %v390_v26  ;;  %v7108_v2 = vld [vmem:[%s9301_s1 + $0x38] sm:$0xff]   ;;  %v7648_v22 = vld [vmem:[%s7457_s6 + $0x50] sm:$0x1] }
  0x44   : > { %6367 = vmatpush3.bf16.msra.mxu1 %v7099_v34  ;;  %6558 = vmatprep.subr.bf16.mxu0 %v7095_v48  ;;  %v5365_v29 = vcombine.low %v367_v5, %v377_v21  ;;  %v2271_v30 = vrot.slane %v2270_v15, 4  ;;  %v225_v34 = vld [vmem:[%s7457_s6 + $0x3c] sm:$0xf]  ;;  %v386_v52 = vrot.slane %v385_v39, 4  ;;  %v2280_v53 = vrot.slane %v2278_v40, 4  ;;  %v7100_v15 = vld [vmem:[%s9301_s1 + $0x170] sm:$0xff]  }
  0x45   : > { %6368 = vmatprep.subr.bf16.mxu1 %v7102_v60  ;;  %v400_v47 = vrot.slane %v398_v4, 5  ;;  %v2283_v54 = vrot.slane %v2281_v42, 5  ;;  %v396_v56 = vrot.slane %v395_v44, 4  ;;  %v2289_v57 = vrot.slane %v2287_v49, 5  ;;  %v7101_v31 = vld [vmem:[%s9301_s1 + $0x178] sm:$0xff]   ;;  %v7659_v4 = vld [vmem:[%s9301_s1 + $0x80] sm:$0xff]  }
  0x46   : > { %6333 = vmatmul.mubr.bf16.gmra.mrb[4].mxu1 %v5365_v29  ;;  %v2276_v43 = vsel %vm7489_vm2, %v2271_v30, %v2275_v16  ;;  %v2291_v58 = vshrl.u32 %v7607_v19, 16  ;;  %v2297_v59 = vshll.u32 %v7615_v28, 16  ;;  %v403_v0 = vshrl.u32 %v225_v34, 16  ;;  %v227_v30 = vld [vmem:[%s7457_s6 + $0x48] sm:$0xf] }
  0x47   : > { %6559 = vmatpush3.bf16.msra.mxu0 %v7095_v48  ;;  %v5605_v50 = vcombine.low %v2266_v38, %v2276_v43  ;;  %v7098_v48 = vld [vmem:[%s9301_s1 + $0x168] sm:$0xff]   ;;  %v2284_v61 = vor.u32 %v2283_v54, %v2280_v53  ;;  %v406_v1 = vshll.u32 %v225_v34, 16  ;;  %v401_v5 = vsel %vm7489_vm2, %v396_v56, %v400_v47  ;;  %v269_v54 = vld [vmem:[%s7457_s6 + $0x50] sm:$0x1] }
  0x48   : > { %6369 = vmatpush3.bf16.msra.mxu1 %v7102_v60  ;;  %6560 = vmatprep.subr.bf16.mxu0 %v7097_v20  ;;  %v391_v60 = vsel %vm7489_vm2, %v386_v52, %v390_v26  ;;  %v2293_v3 = vrot.slane %v2291_v58, 4  ;;  %v2299_v6 = vrot.slane %v2297_v59, 5  ;;  %v412_v7 = vshll.u32 %v226_v55, 16  ;;  %v228_v53 = vld [vmem:[%s7457_s6 + $0x4c] sm:$0xf] }
  0x49   : > { %6370 = vmatprep.subr.bf16.mxu1 %v7104_v14  ;;  %6525 = vmatmul.mubr.bf16.gmra.mrb[4].mxu0 %v5605_v50  ;;  %v5366_v10 = vcombine.low %v391_v60, %v401_v5  ;;  %v2285_v11 = vrot.slane %v2284_v61, 4  ;;  %v405_v12 = vrot.slane %v403_v0, 4  ;;  %v408_v13 = vrot.slane %v406_v1, 5  ;;  %v5556_v58 = vld [vmem:[%s7457_s6 + $0x54] sm:$0xf] }
  0x4a   : > { %v2294_v16 = vor.u32 %v2293_v3, %v2289_v57  ;;  %v414_v17 = vrot.slane %v412_v7, 5  ;;  %v416_v18 = vshrl.u32 %v226_v55, 16  ;;  %v422_v21 = vshll.u32 %v268_v63, 16  ;;  %v7673_v0 = vld [vmem:[%s7457_s6 + $0x58] sm:$0xf] }
  0x4b   : > { %6561 = vmatpush3.bf16.msra.mxu0 %v7097_v20  ;;  %6336 = vmatprep.mubr.bf16.mxu1 %v5366_v10  ;;  %v2290_v20 = vsel %vm7489_vm2, %v2285_v11, %v2289_v57  ;;  %v409_v25 = vor.u32 %v408_v13, %v405_v12  ;;  %v2302_v26 = vshrl.u32 %v5553_v9, 16  ;;  %v2305_v29 = vshll.u32 %v5553_v9, 16 }
  0x4c   : > { %6371 = vmatpush3.bf16.msra.mxu1 %v7104_v14  ;;  %v7642_v14 = vld [vmem:[%s7457_s6 + $0x4c] sm:$0xf]  ;;  %6562 = vmatprep.subr.bf16.mxu0 %v7098_v48  ;;  %v2295_v34 = vrot.slane %v2294_v16, 4  ;;  %v424_v38 = vrot.slane %v422_v21, 5  ;;  %v2321_v52 = vshll.u32 %v7648_v22, 16  ;;  %v427_v61 = vshrl.u32 %v227_v30, 16 }
  0x4d   : > { %6372 = vmatprep.subr.bf16.mxu1 %v7106_v35  ;;  %v2311_v39 = vshll.u32 %v7642_v14, 16  ;;  %v410_v40 = vrot.slane %v409_v25, 4  ;;  %v2304_v42 = vrot.slane %v2302_v26, 4  ;;  %v2307_v43 = vrot.slane %v2305_v29, 5 }
  0x4e   : > { %v2315_v44 = vshrl.u32 %v7642_v14, 16  ;;  %v2300_v47 = vsel %vm7489_vm2, %v2295_v34, %v2299_v6  ;;  %v2323_v60 = vrot.slane %v2321_v52, 5  ;;  %v430_v63 = vshll.u32 %v227_v30, 16  ;;  %v7678_v6 = vld [vmem:[%s9301_s1 + $0x180] sm:$0xff]  }
  0x4f   : > { %6563 = vmatpush3.bf16.msra.mxu0 %v7098_v48  ;;  %v2313_v50 = vrot.slane %v2311_v39, 5  ;;  %v5606_v55 = vcombine.low %v2290_v20, %v2300_v47  ;;  %v415_v48 = vsel %vm7489_vm2, %v410_v40, %v414_v17  ;;  %v2308_v56 = vor.u32 %v2307_v43, %v2304_v42  ;;  %v7685_v20 = vld [vmem:[%s7457_s6 + $0x5c] sm:$0x1]  ;;  %v230_v43 = vld [vmem:[%s7457_s6 + $0x58] sm:$0xf] }
  0x50   : > { %6373 = vmatpush3.bf16.msra.mxu1 %v7106_v35  ;;  %v418_v35 = vrot.slane %v416_v18, 4  ;;  %6564 = vmatprep.subr.bf16.mxu0 %v7100_v15  ;;  %v2317_v57 = vrot.slane %v2315_v44, 4  ;;  %v440_v3 = vshrl.u32 %v228_v53, 16  ;;  %v429_v9 = vrot.slane %v427_v61, 4  ;;  %v5559_v52 = vld [vmem:[%s7457_s6 + $0x60] sm:$0xf] }
  0x51   : > { %6374 = vmatprep.subr.bf16.mxu1 %v7108_v2  ;;  %6528 = vmatprep.mubr.bf16.mxu0 %v5606_v55  ;;  %v2309_v1 = vrot.slane %v2308_v56, 4  ;;  %v432_v10 = vrot.slane %v430_v63, 5  ;;  %v446_v11 = vshll.u32 %v269_v54, 16  ;;  %v2326_v25 = vshrl.u32 %v5556_v58, 16 }
  0x52   : > { %v419_v49 = vor.u32 %v418_v35, %v414_v17  ;;  %v2318_v5 = vor.u32 %v2317_v57, %v2313_v50  ;;  %v442_v18 = vrot.slane %v440_v3, 4  ;;  %v2329_v29 = vshll.u32 %v5556_v58, 16  ;;  %v229_v35 = vld [vmem:[%s7457_s6 + $0x54] sm:$0xf] }
  0x53   : > { %6565 = vmatpush3.bf16.msra.mxu0 %v7100_v15  ;;  %v2314_v13 = vsel %vm7489_vm2, %v2309_v1, %v2313_v50  ;;  %v433_v17 = vor.u32 %v432_v10, %v429_v9  ;;  %v448_v21 = vrot.slane %v446_v11, 5  ;;  %v2335_v30 = vshll.u32 %v7673_v0, 16  ;;  %v270_v50 = vld [vmem:[%s7457_s6 + $0x5c] sm:$0x1] }
  0x54   : > { %6375 = vmatpush3.bf16.msra.mxu1 %v7108_v2  ;;  %v420_v59 = vrot.slane %v419_v49, 4  ;;  %v436_v2 = vshll.u32 %v228_v53, 16  ;;  %6566 = vmatprep.subr.bf16.mxu0 %v7101_v31  ;;  %v2319_v15 = vrot.slane %v2318_v5, 4  ;;  %v2339_v34 = vshrl.u32 %v7673_v0, 16 }
  0x55   : > { %6408 = vmatprep.subr.bf16.mxu1 %v7659_v4  ;;  %v434_v39 = vrot.slane %v433_v17, 4  ;;  %v2328_v42 = vrot.slane %v2326_v25, 4  ;;  %v2337_v44 = vrot.slane %v2335_v30, 5  ;;  %v2345_v49 = vshll.u32 %v7685_v20, 16  ;;  %v7709_v17 = vld [vmem:[%s7457_s6 + $0x68] sm:$0x1] }
  0x56   : > { %v425_v7 = vsel %vm7489_vm2, %v420_v59, %v424_v38  ;;  %v438_v16 = vrot.slane %v436_v2, 5  ;;  %v2324_v26 = vsel %vm7489_vm2, %v2319_v15, %v2323_v60  ;;  %v2341_v47 = vrot.slane %v2339_v34, 4  ;;  %v7700_v60 = vld [vmem:[%s7457_s6 + $0x64] sm:$0xf]  ;;  %v7713_v25 = vld [vmem:[%s7457_s6 + $0x60] sm:$0xf] }
  0x57   : > { %v5367_v12 = vcombine.low %v415_v48, %v425_v7  ;;  %6567 = vmatpush3.bf16.msra.mxu0 %v7101_v31  ;;  %v5607_v38 = vcombine.low %v2314_v13, %v2324_v26  ;;  %v2331_v31 = vrot.slane %v2329_v29, 5  ;;  %v451_v55 = vshrl.u32 %v229_v35, 16 }
  0x58   : > { %6600 = vmatprep.subr.bf16.mxu0 %v7678_v6  ;;  %v443_v40 = vor.u32 %v442_v18, %v438_v16  ;;  %v439_v53 = vsel %vm7489_vm2, %v434_v39, %v438_v16  ;;  %v454_v48 = vshll.u32 %v229_v35, 16  ;;  %v2342_v57 = vor.u32 %v2341_v47, %v2337_v44  ;;  %v7716_v35 = vld [vmem:[%s7457_s6 + $0x64] sm:$0xf] }
  0x59   : > { %6337 = vmatmul.mubr.bf16.gmra.mrb[8].mxu1 %v5367_v12  ;;  %6529 = vmatmul.mubr.bf16.gmra.mrb[8].mxu0 %v5607_v38  ;;  %v2332_v56 = vor.u32 %v2331_v31, %v2328_v42  ;;  %v2347_v58 = vrot.slane %v2345_v49, 5  ;;  %v460_v59 = vshll.u32 %v230_v43, 16  ;;  %v453_v63 = vrot.slane %v451_v55, 4 }
  0x5a   : > { %v444_v54 = vrot.slane %v443_v40, 4  ;;  %v456_v1 = vrot.slane %v454_v48, 5  ;;  %v464_v5 = vshrl.u32 %v230_v43, 16  ;;  %v2343_v7 = vrot.slane %v2342_v57, 4  ;;  %v271_v43 = vld [vmem:[%s7457_s6 + $0x68] sm:$0x1] }
  0x5b   : > { %v2333_v3 = vrot.slane %v2332_v56, 4  ;;  %v462_v9 = vrot.slane %v460_v59, 5  ;;  %v470_v12 = vshll.u32 %v270_v50, 16  ;;  %v2350_v13 = vshrl.u32 %v5559_v52, 16  ;;  %v5626_v50 = vld [vmem:[%s7457_s6 + $0xc] sm:$0xe] }
  0x5c   : > { %v449_v61 = vsel %vm7489_vm2, %v444_v54, %v448_v21  ;;  %v457_v10 = vor.u32 %v456_v1, %v453_v63  ;;  %v466_v11 = vrot.slane %v464_v5, 4  ;;  %v2348_v16 = vsel %vm7489_vm2, %v2343_v7, %v2347_v58  ;;  %v7731_v5 = vld [vmem:[%s7457_s6 + $0x6c] sm:$0xf] }
  0x5d   : > { %v5368_v2 = vcombine.low %v439_v53, %v449_v61  ;;  %v2338_v15 = vsel %vm7489_vm2, %v2333_v3, %v2337_v44  ;;  %v2353_v18 = vshll.u32 %v5559_v52, 16  ;;  %v2359_v21 = vshll.u32 %v7700_v60, 16 }
  0x5e   : > { %v5608_v26 = vcombine.low %v2338_v15, %v2348_v16  ;;  %v458_v29 = vrot.slane %v457_v10, 4  ;;  %v467_v30 = vor.u32 %v466_v11, %v462_v9  ;;  %v472_v34 = vrot.slane %v470_v12, 5 }
  0x5f   : > { %6340 = vmatprep.mubr.bf16.mxu1 %v5368_v2  ;;  %v2352_v38 = vrot.slane %v2350_v13, 4  ;;  %v2355_v39 = vrot.slane %v2353_v18, 5  ;;  %v2361_v40 = vrot.slane %v2359_v21, 5  ;;  %v2363_v42 = vshrl.u32 %v7700_v60, 16  ;;  %v7743_v21 = vld [vmem:[%s7457_s6 + $0x70] sm:$0xf] }
  0x60   : > { %6532 = vmatprep.mubr.bf16.mxu0 %v5608_v26  ;;  %v463_v31 = vsel %vm7489_vm2, %v458_v29, %v462_v9  ;;  %v468_v44 = vrot.slane %v467_v30, 4  ;;  %v2369_v47 = vshll.u32 %v7709_v17, 16  ;;  %v475_v49 = vshrl.u32 %v7713_v25, 16  ;;  %v7192_v9 = vld [vmem:[%s7457_s6 + $0xb4] sm:$0xff]  }
  0x61   : > { %v2356_v52 = vor.u32 %v2355_v39, %v2352_v38  ;;  %v2365_v53 = vrot.slane %v2363_v42, 4  ;;  %v478_v54 = vshll.u32 %v7713_v25, 16  ;;  %v484_v55 = vshll.u32 %v7716_v35, 16 }
  0x62   : > { %v473_v48 = vsel %vm7489_vm2, %v468_v44, %v472_v34  ;;  %v2371_v56 = vrot.slane %v2369_v47, 5  ;;  %v477_v57 = vrot.slane %v475_v49, 4  ;;  %v488_v58 = vshrl.u32 %v7716_v35, 16  ;;  %v7754_v47 = vld [vmem:[%s7457_s6 + $0x78] sm:$0xf] }
  0x63   : > { %v5369_v59 = vcombine.low %v463_v31, %v473_v48  ;;  %v2357_v61 = vrot.slane %v2356_v52, 4  ;;  %v2366_v63 = vor.u32 %v2365_v53, %v2361_v40  ;;  %v480_v1 = vrot.slane %v478_v54, 5  ;;  %v7765_v54 = vld [vmem:[%s7457_s6 + $0x7c] sm:$0xf] }
  0x64   : > { %v486_v2 = vrot.slane %v484_v55, 5  ;;  %v490_v3 = vrot.slane %v488_v58, 4  ;;  %v494_v7 = vshll.u32 %v271_v43, 16  ;;  %v5642_v10 = vrot.slane %v5626_v50, 9  ;;  %v273_v58 = vld [vmem:[%s7457_s6 + $0x80] sm:$0x1] }
  0x65   : > { %6341 = vmatmul.mubr.bf16.gmra.mrb[12].mxu1 %v5369_v59  ;;  %v2362_v11 = vsel %vm7489_vm2, %v2357_v61, %v2361_v40  ;;  %v2367_v12 = vrot.slane %v2366_v63, 4  ;;  %v481_v13 = vor.u32 %v480_v1, %v477_v57  ;;  %v2953_v15 = vrot.slane %v7470_v23, 5  ;;  %v272_v40 = vld [vmem:[%s7457_s6 + $0x74] sm:$0x1]  ;;  %v5627_v23 = vld [vmem:[%s7457_s6 + $0x18] sm:$0xe] }
  0x66   : > { %v491_v16 = vor.u32 %v490_v3, %v486_v2  ;;  %v496_v18 = vrot.slane %v494_v7, 5  ;;  %v499_v26 = vshrl.u32 %v7731_v5, 16  ;;  %v502_v29 = vshll.u32 %v7731_v5, 16 }
  0x67   : > { %v2372_v30 = vsel %vm7489_vm2, %v2367_v12, %v2371_v56  ;;  %v482_v34 = vrot.slane %v481_v13, 4  ;;  %v2954_v38 = vsel %vm7735_vm5, %v5642_v10, %v2953_v15  ;;  %v2955_v39 = vrot.slane %v2953_v15, 4  ;;  %v5628_v13 = vld [vmem:[%s7457_s6 + $0x24] sm:$0xe] }
  0x68   : > { %v5609_v42 = vcombine.low %v2362_v11, %v2372_v30  ;;  %v492_v43 = vrot.slane %v491_v16, 4  ;;  %v501_v31 = vrot.slane %v499_v26, 4  ;;  %v504_v44 = vrot.slane %v502_v29, 5  ;;  %v7787_v16 = vld [vmem:[%s7457_s6 + $0x84] sm:$0xf]  ;;  %v7105_v29 = vld [vmem:[%s9301_s1 + $0x188] sm:$0xff]  }
  0x69   : > { %v487_v49 = vsel %vm7489_vm2, %v482_v34, %v486_v2  ;;  %v2957_v50 = vsel %vm7735_vm5, %v2955_v39, %v2956_v41  ;;  %v508_v52 = vshll.u32 %v7743_v21, 16  ;;  %v512_v53 = vshrl.u32 %v7743_v21, 16 }
  0x6a   : > { %6533 = vmatmul.mubr.bf16.gmra.mrb[12].mxu0 %v5609_v42  ;;  %v497_v55 = vsel %vm7489_vm2, %v492_v43, %v496_v18  ;;  %v5674_v48 = vcombine.low %v2954_v38, %v2957_v50  ;;  %v505_v56 = vor.u32 %v504_v44, %v501_v31  ;;  %v518_v57 = vshll.u32 %v272_v40, 16  ;;  %v7795_v40 = vld [vmem:[%s7457_s6 + $0x88] sm:$0xf]  ;;  %v274_v31 = vld [vmem:[%s7457_s6 + $0x8c] sm:$0x1] }
  0x6b   : > { %v5370_v59 = vcombine.low %v487_v49, %v497_v55  ;;  %v510_v24 = vrot.slane %v508_v52, 5  ;;  %v514_v61 = vrot.slane %v512_v53, 4  ;;  %v5643_v63 = vrot.slane %v5627_v23, 9 }
  0x6c   : > { %6568 = vmatprep.mubr.bf16.mxu0 %v5674_v48  ;;  %v506_v41 = vrot.slane %v505_v56, 4  ;;  %v520_v1 = vrot.slane %v518_v57, 5  ;;  %v2964_v2 = vsel %vm7735_vm5, %v7538_v36, %v2963_v32  ;;  %v523_v3 = vshrl.u32 %v7754_v47, 16 }
  0x6d   : > { %6344 = vmatprep.mubr.bf16.mxu1 %v5370_v59  ;;  %v515_v7 = vor.u32 %v514_v61, %v510_v24  ;;  %v2961_v10 = vsel %vm7735_vm5, %v5643_v63, %v2960_v27  ;;  %v526_v11 = vshll.u32 %v7754_v47, 16  ;;  %v532_v12 = vshll.u32 %v7765_v54, 16 }
  0x6e   : > { %v511_v8 = vsel %vm7489_vm2, %v506_v41, %v510_v24  ;;  %v5675_v15 = vcombine.low %v2961_v10, %v2964_v2  ;;  %v525_v32 = vrot.slane %v523_v3, 4  ;;  %v536_v36 = vshrl.u32 %v7765_v54, 16  ;;  %v7816_v2 = vld [vmem:[%s7457_s6 + $0x90] sm:$0xf]  ;;  %v7819_v3 = vld [vmem:[%s7457_s6 + $0x94] sm:$0xf] }
  0x6f   : > { %v516_v62 = vrot.slane %v515_v7, 4  ;;  %v528_v18 = vrot.slane %v526_v11, 5  ;;  %v534_v26 = vrot.slane %v532_v12, 5  ;;  %v542_v27 = vshll.u32 %v273_v58, 16 }
  0x70   : > { %v538_v30 = vrot.slane %v536_v36, 4  ;;  %v5644_v34 = vrot.slane %v5628_v13, 9  ;;  %v2967_v38 = vrot.slane %v7542_v45, 5  ;;  %v2970_v39 = vrot.slane %v7548_v51, 5  ;;  %v5629_v45 = vld [vmem:[%s7457_s6 + $0x30] sm:$0xe] }
  0x71   : > { %v521_v23 = vsel %vm7489_vm2, %v516_v62, %v520_v1  ;;  %v529_v42 = vor.u32 %v528_v18, %v525_v32  ;;  %v544_v43 = vrot.slane %v542_v27, 5  ;;  %v547_v44 = vshrl.u32 %v7787_v16, 16  ;;  %v275_v62 = vld [vmem:[%s7457_s6 + $0x98] sm:$0x1] }
  0x72   : > { %v5371_v49 = vcombine.low %v511_v8, %v521_v23  ;;  %6569 = vmatmul.mubr.bf16.vlgmr.msra.gmra.mrb[0].mxu0 %v5675_v15  ;;  %v539_v50 = vor.u32 %v538_v30, %v534_v26  ;;  %v2968_v52 = vsel %vm7735_vm5, %v5644_v34, %v2967_v38  ;;  %v2969_v53 = vrot.slane %v2967_v38, 4  ;;  %v7109_v30 = vld [vmem:[%s9301_s1 + $0x198] sm:$0xff]  }
  0x73   : > { %6601 = vmatpush3.bf16.msra.mxu0 %v7678_v6  ;;  %v530_v51 = vrot.slane %v529_v42, 4  ;;  %v549_v55 = vrot.slane %v547_v44, 4  ;;  %v550_v48 = vshll.u32 %v7787_v16, 16  ;;  %v556_v56 = vshll.u32 %v7795_v40, 16  ;;  %v7107_v6 = vld [vmem:[%s9301_s1 + $0x190] sm:$0xff]  }
  0x74   : > { %6345 = vmatmul.mubr.bf16.gmra.mrb[16].mxu1 %v5371_v49  ;;  %v540_v57 = vrot.slane %v539_v50, 4  ;;  %v2971_v58 = vsel %vm7735_vm5, %v2969_v53, %v2970_v39  ;;  %v560_v59 = vshrl.u32 %v7795_v40, 16  ;;  %v566_v24 = vshll.u32 %v274_v31, 16  ;;  %6602 = vmatprep.subr.bf16.mxu0 %v7105_v29  ;;  %v5630_v38 = vld [vmem:[%s7457_s6 + $0x3c] sm:$0xe] }
  0x75   : > { %v535_v61 = vsel %vm7489_vm2, %v530_v51, %v534_v26  ;;  %v5676_v63 = vcombine.low %v2968_v52, %v2971_v58  ;;  %v552_v41 = vrot.slane %v550_v48, 5  ;;  %v558_v1 = vrot.slane %v556_v56, 5  ;;  %v7837_v31 = vld [vmem:[%s7457_s6 + $0x9c] sm:$0xf]  ;;  %v7846_v48 = vld [vmem:[%s7457_s6 + $0xa0] sm:$0xf] }
  0x76   : > { %v545_v7 = vsel %vm7489_vm2, %v540_v57, %v544_v43  ;;  %v562_v10 = vrot.slane %v560_v59, 4  ;;  %v568_v11 = vrot.slane %v566_v24, 5  ;;  %v5645_v12 = vrot.slane %v5629_v45, 9  ;;  %v7113_v56 = vld [vmem:[%s9301_s1 + $0x1a0] sm:$0xff]  }
  0x77   : > { %v5372_v13 = vcombine.low %v535_v61, %v545_v7  ;;  %6572 = vmatprep.mubr.bf16.mxu0 %v5676_v63  ;;  %v553_v8 = vor.u32 %v552_v41, %v549_v55  ;;  %v2974_v15 = vrot.slane %v7573_v33, 5  ;;  %v2977_v32 = vrot.slane %v7584_v46, 5  ;;  %6603 = vmatpush3.bf16.msra.mxu0 %v7105_v29  ;;  %v276_v61 = vld [vmem:[%s7457_s6 + $0xa4] sm:$0x1] }
  0x78   : > { %v563_v36 = vor.u32 %v562_v10, %v558_v1  ;;  %v571_v18 = vshrl.u32 %v7816_v2, 16  ;;  %v574_v26 = vshll.u32 %v7816_v2, 16  ;;  %v580_v27 = vshll.u32 %v7819_v3, 16  ;;  %6604 = vmatprep.subr.bf16.mxu0 %v7107_v6 }
  0x79   : > { %6348 = vmatprep.mubr.bf16.mxu1 %v5372_v13  ;;  %v554_v34 = vrot.slane %v553_v8, 4  ;;  %v2975_v33 = vsel %vm7735_vm5, %v5645_v12, %v2974_v15  ;;  %v2976_v46 = vrot.slane %v2974_v15, 4  ;;  %v584_v29 = vshrl.u32 %v7819_v3, 16  ;;  %v5631_v15 = vld [vmem:[%s7457_s6 + $0x48] sm:$0xe] }
  0x7a   : > { %v564_v39 = vrot.slane %v563_v36, 4  ;;  %v573_v23 = vrot.slane %v571_v18, 4  ;;  %v576_v42 = vrot.slane %v574_v26, 5  ;;  %v582_v43 = vrot.slane %v580_v27, 5  ;;  %v7871_v27 = vld [vmem:[%s7457_s6 + $0xa8] sm:$0xf] }
  0x7b   : > { %v559_v44 = vsel %vm7489_vm2, %v554_v34, %v558_v1  ;;  %v2978_v49 = vsel %vm7735_vm5, %v2976_v46, %v2977_v32  ;;  %v586_v50 = vrot.slane %v584_v29, 4  ;;  %v590_v52 = vshll.u32 %v275_v62, 16  ;;  %6605 = vmatpush3.bf16.msra.mxu0 %v7107_v6  ;;  %v7117_v32 = vld [vmem:[%s9301_s1 + $0x1a8] sm:$0xff]  }
  0x7c   : > { %v569_v53 = vsel %vm7489_vm2, %v564_v39, %v568_v11  ;;  %v5677_v45 = vcombine.low %v2975_v33, %v2978_v49  ;;  %v577_v51 = vor.u32 %v576_v42, %v573_v23  ;;  %v5646_v55 = vrot.slane %v5630_v38, 9  ;;  %6606 = vmatprep.subr.bf16.mxu0 %v7109_v30  ;;  %v7874_v29 = vld [vmem:[%s7457_s6 + $0xac] sm:$0xf] }
  0x7d   : > { %v5373_v57 = vcombine.low %v559_v44, %v569_v53  ;;  %v587_v58 = vor.u32 %v586_v50, %v582_v43  ;;  %v592_v59 = vrot.slane %v590_v52, 5  ;;  %v2981_v24 = vrot.slane %v7607_v19, 5  ;;  %v5632_v53 = vld [vmem:[%s7457_s6 + $0x54] sm:$0xe] }
  0x7e   : > { %6573 = vmatmul.mubr.bf16.gmra.mrb[4].mxu0 %v5677_v45  ;;  %v578_v6 = vrot.slane %v577_v51, 4  ;;  %v2984_v63 = vrot.slane %v7615_v28, 5  ;;  %v595_v41 = vshrl.u32 %v7837_v31, 16  ;;  %v598_v1 = vshll.u32 %v7837_v31, 16  ;;  %v7121_v45 = vld [vmem:[%s9301_s1 + $0x1b0] sm:$0xff]  }
  0x7f   : > { %6349 = vmatmul.mubr.bf16.gmra.mrb[20].mxu1 %v5373_v57  ;;  %v588_v7 = vrot.slane %v587_v58, 4  ;;  %v2982_v10 = vsel %vm7735_vm5, %v5646_v55, %v2981_v24  ;;  %v2983_v11 = vrot.slane %v2981_v24, 4  ;;  %v604_v12 = vshll.u32 %v7846_v48, 16  ;;  %6607 = vmatpush3.bf16.msra.mxu0 %v7109_v30 }
  0x80   : > { %v583_v19 = vsel %vm7489_vm2, %v578_v6, %v582_v43  ;;  %v597_v13 = vrot.slane %v595_v41, 4  ;;  %v600_v28 = vrot.slane %v598_v1, 5  ;;  %v608_v8 = vshrl.u32 %v7846_v48, 16  ;;  %6608 = vmatprep.subr.bf16.mxu0 %v7113_v56  ;;  %v277_v43 = vld [vmem:[%s7457_s6 + $0xb0] sm:$0x1] }
  0x81   : > { %v593_v36 = vsel %vm7489_vm2, %v588_v7, %v592_v59  ;;  %v2985_v62 = vsel %vm7735_vm5, %v2983_v11, %v2984_v63  ;;  %v606_v18 = vrot.slane %v604_v12, 5  ;;  %v614_v26 = vshll.u32 %v276_v61, 16  ;;  %v7894_v41 = vld [vmem:[%s7457_s6 + $0xb4] sm:$0xf]  ;;  %v7899_v12 = vld [vmem:[%s7457_s6 + $0xb8] sm:$0xf] }
  0x82   : > { %v5374_v30 = vcombine.low %v583_v19, %v593_v36  ;;  %v5678_v34 = vcombine.low %v2982_v10, %v2985_v62  ;;  %v601_v33 = vor.u32 %v600_v28, %v597_v13  ;;  %v610_v46 = vrot.slane %v608_v8, 4  ;;  %v278_v19 = vld [vmem:[%s7457_s6 + $0xbc] sm:$0x1] }
  0x83   : > { %v616_v38 = vrot.slane %v614_v26, 5  ;;  %v5647_v39 = vrot.slane %v5631_v15, 9  ;;  %v2988_v23 = vrot.slane %v7642_v14, 5  ;;  %v2991_v42 = vrot.slane %v7648_v22, 5  ;;  %6609 = vmatpush3.bf16.msra.mxu0 %v7113_v56  ;;  %v7125_v13 = vld [vmem:[%s9301_s1 + $0x1b8] sm:$0xff]  }
  0x84   : > { %6352 = vmatprep.mubr.bf16.mxu1 %v5374_v30  ;;  %6576 = vmatprep.mubr.bf16.mxu0 %v5678_v34  ;;  %v602_v44 = vrot.slane %v601_v33, 4  ;;  %v611_v49 = vor.u32 %v610_v46, %v606_v18  ;;  %v619_v50 = vshrl.u32 %v7871_v27, 16  ;;  %v622_v52 = vshll.u32 %v7871_v27, 16  ;;  %v5633_v30 = vld [vmem:[%s7457_s6 + $0x60] sm:$0xe] }
  0x85   : > { %v2989_v14 = vsel %vm7735_vm5, %v5647_v39, %v2988_v23  ;;  %v2990_v22 = vrot.slane %v2988_v23, 4  ;;  %v628_v51 = vshll.u32 %v7874_v29, 16  ;;  %v632_v55 = vshrl.u32 %v7874_v29, 16  ;;  %6610 = vmatprep.subr.bf16.mxu0 %v7117_v32  ;;  %v5563_v39 = vld [vmem:[%s7457_s6 + $0x70] sm:$0xf] }
  0x86   : > { %v607_v56 = vsel %vm7489_vm2, %v602_v44, %v606_v18  ;;  %v612_v57 = vrot.slane %v611_v49, 4  ;;  %v621_v58 = vrot.slane %v619_v50, 4  ;;  %v624_v59 = vrot.slane %v622_v52, 5  ;;  %v7921_v44 = vld [vmem:[%s9301_s1 + $0x1c0] sm:$0xff]  }
  0x87   : > { %v2992_v24 = vsel %vm7735_vm5, %v2990_v22, %v2991_v42  ;;  %v630_v61 = vrot.slane %v628_v51, 5  ;;  %v634_v6 = vrot.slane %v632_v55, 4  ;;  %v638_v63 = vshll.u32 %v277_v43, 16  ;;  %6611 = vmatpush3.bf16.msra.mxu0 %v7117_v32  ;;  %v5634_v43 = vld [vmem:[%s7457_s6 + $0x6c] sm:$0xe] }
  0x88   : > { %v617_v1 = vsel %vm7489_vm2, %v612_v57, %v616_v38  ;;  %v5679_v7 = vcombine.low %v2989_v14, %v2992_v24  ;;  %v625_v10 = vor.u32 %v624_v59, %v621_v58  ;;  %v5648_v11 = vrot.slane %v5632_v53, 9  ;;  %6612 = vmatprep.subr.bf16.mxu0 %v7121_v45  ;;  %v5564_v55 = vld [vmem:[%s7457_s6 + $0x74] sm:$0x1]  ;;  %v5635_v24 = vld [vmem:[%s7457_s6 + $0x78] sm:$0xe] }
  0x89   : > { %v5375_v28 = vcombine.low %v607_v56, %v617_v1  ;;  %v635_v8 = vor.u32 %v634_v6, %v630_v61  ;;  %v640_v15 = vrot.slane %v638_v63, 5  ;;  %v2995_v32 = vrot.slane %v7673_v0, 5 }
  0x8a   : > { %6577 = vmatmul.mubr.bf16.gmra.mrb[8].mxu0 %v5679_v7  ;;  %v626_v36 = vrot.slane %v625_v10, 4  ;;  %v2998_v62 = vrot.slane %v7685_v20, 5  ;;  %v643_v18 = vshrl.u32 %v7894_v41, 16  ;;  %v646_v26 = vshll.u32 %v7894_v41, 16 }
  0x8b   : > { %6353 = vmatmul.mubr.bf16.gmra.mrb[24].mxu1 %v5375_v28  ;;  %v636_v34 = vrot.slane %v635_v8, 4  ;;  %v2996_v33 = vsel %vm7735_vm5, %v5648_v11, %v2995_v32  ;;  %v2997_v46 = vrot.slane %v2995_v32, 4  ;;  %v652_v38 = vshll.u32 %v7899_v12, 16  ;;  %6613 = vmatpush3.bf16.msra.mxu0 %v7121_v45  ;;  %v7934_v11 = vld [vmem:[%s7457_s6 + $0x7c] sm:$0xf] }
  0x8c   : > { %v631_v0 = vsel %vm7489_vm2, %v626_v36, %v630_v61  ;;  %v645_v20 = vrot.slane %v643_v18, 4  ;;  %v648_v23 = vrot.slane %v646_v26, 5  ;;  %v656_v42 = vshrl.u32 %v7899_v12, 16  ;;  %6614 = vmatprep.subr.bf16.mxu0 %v7125_v13  ;;  %v7194_v36 = vld [vmem:[%s7457_s6] sm:$0xf] }
  0x8d   : > { %v641_v49 = vsel %vm7489_vm2, %v636_v34, %v640_v15  ;;  %v2999_v50 = vsel %vm7735_vm5, %v2997_v46, %v2998_v62  ;;  %v654_v52 = vrot.slane %v652_v38, 5  ;;  %v662_v53 = vshll.u32 %v278_v19, 16  ;;  %v5569_v15 = vld [vmem:[%s7457_s6 + $0x88] sm:$0xf]  ;;  %v7949_v62 = vld [vmem:[%s7457_s6 + $0x4] sm:$0xf] }
  0x8e   : > { %v5376_v45 = vcombine.low %v631_v0, %v641_v49  ;;  %v5680_v14 = vcombine.low %v2996_v33, %v2999_v50  ;;  %v649_v22 = vor.u32 %v648_v23, %v645_v20  ;;  %v658_v51 = vrot.slane %v656_v42, 4  ;;  %v5570_v26 = vld [vmem:[%s7457_s6 + $0x8c] sm:$0x1]  ;;  %v5573_v23 = vld [vmem:[%s7457_s6 + $0x98] sm:$0x1] }
  0x8f   : > { %v664_v56 = vrot.slane %v662_v53, 5  ;;  %v5649_v57 = vrot.slane %v5633_v30, 9  ;;  %v3002_v58 = vrot.slane %v7700_v60, 5  ;;  %v3005_v59 = vrot.slane %v7709_v17, 5  ;;  %6615 = vmatpush3.bf16.msra.mxu0 %v7125_v13  ;;  %v7937_v17 = vld [vmem:[%s7457_s6 + $0x80] sm:$0x1] }
  0x90   : > { %6356 = vmatprep.mubr.bf16.mxu1 %v5376_v45  ;;  %6580 = vmatprep.mubr.bf16.mxu0 %v5680_v14  ;;  %v650_v61 = vrot.slane %v649_v22, 4  ;;  %v659_v6 = vor.u32 %v658_v51, %v654_v52  ;;  %v5650_v63 = vrot.slane %v5634_v43, 9  ;;  %v3009_v1 = vrot.slane %v5563_v39, 5  ;;  %v5636_v30 = vld [vmem:[%s7457_s6 + $0x84] sm:$0xe] }
  0x91   : > { %v3003_v7 = vsel %vm7735_vm5, %v5649_v57, %v3002_v58  ;;  %v3004_v10 = vrot.slane %v3002_v58, 4  ;;  %v3012_v60 = vrot.slane %v5564_v55, 5  ;;  %6648 = vmatprep.subr.bf16.mxu0 %v7921_v44  ;;  %v5386_v18 = vcombine.low %v7194_v36, %v7949_v62  ;;  %v5572_v39 = vld [vmem:[%s7457_s6 + $0x94] sm:$0xf]  ;;  %v5637_v42 = vld [vmem:[%s7457_s6 + $0x90] sm:$0xe] }
  0x92   : > { %v655_v19 = vsel %vm7489_vm2, %v650_v61, %v654_v52  ;;  %v660_v13 = vrot.slane %v659_v6, 4  ;;  %v3010_v28 = vsel %vm7735_vm5, %v5650_v63, %v3009_v1  ;;  %v3011_v8 = vrot.slane %v3009_v1, 4  ;;  %v5638_v50 = vld [vmem:[%s7457_s6 + $0x9c] sm:$0xe]  ;;  %v5575_v14 = vld [vmem:[%s7457_s6 + $0xa0] sm:$0xf] }
  0x93   : > { %v3006_v32 = vsel %vm7735_vm5, %v3004_v10, %v3005_v59  ;;  %v5651_v38 = vrot.slane %v5635_v24, 9  ;;  %v3016_v43 = vrot.slane %v7934_v11, 5  ;;  %v3019_v49 = vrot.slane %v7937_v17, 5  ;;  %v5576_v22 = vld [vmem:[%s7457_s6 + $0xa4] sm:$0x1] }
  0x94   : > { %v665_v34 = vsel %vm7489_vm2, %v660_v13, %v664_v56  ;;  %v5681_v33 = vcombine.low %v3003_v7, %v3006_v32  ;;  %v3013_v46 = vsel %vm7735_vm5, %v3011_v8, %v3012_v60  ;;  %v5652_v52 = vrot.slane %v5636_v30, 9  ;;  %v5578_v59 = vld [vmem:[%s7457_s6 + $0xac] sm:$0xf]  ;;  %v7973_v61 = vld [vmem:[%s7457_s6 + $0x10] sm:$0xf] }
  0x95   : > { %v5377_v0 = vcombine.low %v655_v19, %v665_v34  ;;  %v5682_v20 = vcombine.low %v3010_v28, %v3013_v46  ;;  %v3023_v53 = vrot.slane %v5569_v15, 5  ;;  %v3026_v45 = vrot.slane %v5570_v26, 5  ;;  %v7196_v24 = vld [vmem:[%s7457_s6 + $0xc] sm:$0xf]  ;;  %v7198_v8 = vld [vmem:[%s7457_s6 + $0x18] sm:$0xf] }
  0x96   : > { %6581 = vmatmul.mubr.bf16.gmra.mrb[12].mxu0 %v5681_v33  ;;  %v3017_v51 = vsel %vm7735_vm5, %v5651_v38, %v3016_v43  ;;  %v3018_v55 = vrot.slane %v3016_v43, 4  ;;  %v3030_v58 = vrot.slane %v5572_v39, 5  ;;  %v5387_v6 = vcombine.low %v7196_v24, %v7973_v61  ;;  %v7116_v19 = vld [vmem:[%s9301_s1 + $0x88] sm:$0xff]   ;;  %v7985_v15 = vld [vmem:[%s7457_s6 + $0x1c] sm:$0xf] }
  0x97   : > { %6357 = vmatmul.mubr.bf16.gmra.mrb[28].mxu1 %v5377_v0  ;;  %6584 = vmatprep.mubr.bf16.mxu0 %v5682_v20  ;;  %v3024_v56 = vsel %vm7735_vm5, %v5652_v52, %v3023_v53  ;;  %v3025_v57 = vrot.slane %v3023_v53, 4  ;;  %v5653_v1 = vrot.slane %v5637_v42, 9  ;;  %v3033_v7 = vrot.slane %v5573_v23, 5  ;;  %v5579_v30 = vld [vmem:[%s7457_s6 + $0xb0] sm:$0x1] }
  0x98   : > { %6376 = vmatprep.mubr.bf16.mxu1 %v5386_v18  ;;  %v3020_v63 = vsel %vm7735_vm5, %v3018_v55, %v3019_v49  ;;  %v3032_v13 = vrot.slane %v3030_v58, 4  ;;  %v5654_v28 = vrot.slane %v5638_v50, 9  ;;  %v5388_v32 = vcombine.low %v7198_v8, %v7985_v15  ;;  %v5639_v34 = vld [vmem:[%s7457_s6 + $0xa8] sm:$0xe]  ;;  %v5581_v33 = vld [vmem:[%s7457_s6 + $0xb8] sm:$0xf] }
  0x99   : > { %v5683_v10 = vcombine.low %v3017_v51, %v3020_v63  ;;  %v3027_v60 = vsel %vm7735_vm5, %v3025_v57, %v3026_v45  ;;  %v3037_v18 = vrot.slane %v5575_v14, 5  ;;  %v3040_v26 = vrot.slane %v5576_v22, 5  ;;  %v5582_v20 = vld [vmem:[%s7457_s6 + $0xbc] sm:$0x1]  ;;  %v5640_v23 = vld [vmem:[%s7457_s6 + $0xb4] sm:$0xe] }
  0x9a   : > { %v5684_v36 = vcombine.low %v3024_v56, %v3027_v60  ;;  %v3044_v38 = vrot.slane %v5578_v59, 5  ;;  %v3031_v39 = vsel %vm7735_vm5, %v5653_v1, %v3030_v58  ;;  %v3034_v0 = vsel %vm7735_vm5, %v3032_v13, %v3033_v7  ;;  %v7120_v50 = vld [vmem:[%s9301_s1 + $0x90] sm:$0xff]   ;;  %v5584_v53 = vld [vmem:[%s7457_s6 + $0xc4] sm:$0xf]  ;;  %v8008_v51 = vld [vmem:[%s7457_s6 + $0x28] sm:$0xf] }
  0x9b   : > { %v3039_v46 = vrot.slane %v3037_v18, 4  ;;  %v3038_v42 = vsel %vm7735_vm5, %v5654_v28, %v3037_v18  ;;  %v3051_v49 = vrot.slane %v5581_v33, 5  ;;  %v5655_v52 = vrot.slane %v5639_v34, 9  ;;  %v7200_v22 = vld [vmem:[%s7457_s6 + $0x24] sm:$0xf]  ;;  %v7124_v1 = vld [vmem:[%s9301_s1 + $0x98] sm:$0xff]  }
  0x9c   : > { %v5685_v45 = vcombine.low %v3031_v39, %v3034_v0  ;;  %v3046_v14 = vrot.slane %v3044_v38, 4  ;;  %v5389_v55 = vcombine.low %v7200_v22, %v8008_v51  ;;  %v7202_v57 = vld [vmem:[%s7457_s6 + $0x30] sm:$0xf]  ;;  %v8013_v58 = vld [vmem:[%s7457_s6 + $0x34] sm:$0xf]  ;;  %v5656_v24 = vrot.slane %v5640_v23, 9 }
  0x9d   : > { %v3041_v43 = vsel %vm7735_vm5, %v3039_v46, %v3040_v26  ;;  %v5390_v59 = vcombine.low %v7202_v57, %v8013_v58  ;;  %v3054_v63 = vrot.slane %v5582_v20, 5  ;;  %v5641_v7 = vld [vmem:[%s7457_s6 + $0xc0] sm:$0xe]  ;;  %v3045_v60 = vsel %vm7735_vm5, %v5655_v52, %v3044_v38  ;;  %v5585_v8 = vld [vmem:[%s7457_s6 + $0xc8] sm:$0x1]  ;;  %v7127_v22 = vld [vmem:[%s7457_s6 + $0x18] sm:$0xff]  }
  0x9e   : > { %6585 = vmatmul.mubr.bf16.gmra.mrb[16].mxu0 %v5683_v10  ;;  %v5686_v56 = vcombine.low %v3038_v42, %v3041_v43  ;;  %v3058_v10 = vrot.slane %v5584_v53, 5  ;;  %v3052_v13 = vsel %vm7735_vm5, %v5656_v24, %v3051_v49  ;;  %v5657_v18 = vrot.slane %v5641_v7, 9  ;;  %v7204_v26 = vld [vmem:[%s7457_s6 + $0x3c] sm:$0xf]  ;;  %v7206_v39 = vld [vmem:[%s7457_s6 + $0x48] sm:$0xf] }
  0x9f   : > { %6377 = vmatmul.mubr.bf16.vlgmr.msra.gmra.mrb[0].mxu1 %v5387_v6  ;;  %6588 = vmatprep.mubr.bf16.mxu0 %v5684_v36  ;;  %v3053_v6 = vrot.slane %v3051_v49, 4  ;;  %v3061_v38 = vrot.slane %v5585_v8, 5  ;;  %v8039_v0 = vld [vmem:[%s7457_s6 + $0x4c] sm:$0xf]  ;;  %v7141_v49 = vld [vmem:[%s9301_s1 + $0xb0] sm:$0xff]   ;;  %v2411_v52 = vshrl.u32 %v7934_v11, 16 }
  0xa0   : > { %6409 = vmatpush3.bf16.msra.mxu1 %v7659_v4  ;;  %6380 = vmatprep.mubr.bf16.mxu1 %v5388_v32  ;;  %v3047_v4 = vrot.slane %v5579_v30, 5  ;;  %v7129_v32 = vld [vmem:[%s9301_s1 + $0xa0] sm:$0xff]   ;;  %v3060_v46 = vrot.slane %v3058_v10, 4  ;;  %v5392_v20 = vcombine.low %v7206_v39, %v8039_v0  ;;  %v7135_v23 = vld [vmem:[%s9301_s1 + $0xa8] sm:$0xff]   ;;  %v3059_v42 = vsel %vm7735_vm5, %v5657_v18, %v3058_v10  ;;  %v7133_v18 = vld [vmem:[%s7457_s6 + $0x30] sm:$0xff]  }
  0xa1   : > { %6410 = vmatprep.subr.bf16.mxu1 %v7116_v19  ;;  %v3055_v28 = vsel %vm7735_vm5, %v3053_v6, %v3054_v63  ;;  %v8034_v30 = vld [vmem:[%s7457_s6 + $0x40] sm:$0xf]  ;;  %v8067_v57 = vrot.slane %v2411_v52, 4  ;;  %v7130_v6 = vld [vmem:[%s7457_s6 + $0x24] sm:$0xff]   ;;  %v1321_v7 = vrot.slane %v7973_v61, 5  ;;  %v2417_v8 = vshll.u32 %v7937_v17, 16 }
  0xa2   : > { %v5391_v34 = vcombine.low %v7204_v26, %v8034_v30  ;;  %v5688_v33 = vcombine.low %v3052_v13, %v3055_v28  ;;  %v3062_v43 = vsel %vm7735_vm5, %v3060_v46, %v3061_v38  ;;  %v1261_v63 = vld [vmem:[%s7457_s6] sm:$0xe]  ;;  %v1262_v10 = vld [vmem:[%s7457_s6 + $0xc] sm:$0xe]  ;;  %v1328_v13 = vrot.slane %v7985_v15, 5 }
  0xa3   : > { %v5689_v53 = vcombine.low %v3059_v42, %v3062_v43  ;;  %v1264_v61 = vld [vmem:[%s7457_s6 + $0x24] sm:$0xe]  ;;  %v5397_v15 = vcombine.low %v7787_v16, %v7795_v40  ;;  %v5398_v26 = vcombine.low %v7816_v2, %v7819_v3  ;;  %v5410_v17 = vrot.slane %v1261_v63, 9  ;;  %v7212_v38 = vld [vmem:[%s7457_s6 + $0x20] sm:$0x1]  ;;  %v7142_v2 = vld [vmem:[%s7457_s6 + $0x54] sm:$0xff]  }
  0xa4   : > { %6411 = vmatpush3.bf16.msra.mxu1 %v7116_v19  ;;  %v3048_v19 = vsel %vm7735_vm5, %v3046_v14, %v3047_v4  ;;  %v8056_v14 = vld [vmem:[%s7457_s6 + $0x58] sm:$0xf]  ;;  %v1330_v46 = vrot.slane %v1328_v13, 4  ;;  %v1331_v39 = vrot.slane %v7212_v38, 5  ;;  %v7213_v43 = vld [vmem:[%s7457_s6 + $0x2c] sm:$0x1] }
  0xa5   : > { %6412 = vmatprep.subr.bf16.mxu1 %v7120_v50  ;;  %v5687_v36 = vcombine.low %v3045_v60, %v3048_v19  ;;  %v8082_v60 = vld [vmem:[%s9301_s1 + $0xc0] sm:$0xff]   ;;  %v1263_v19 = vld [vmem:[%s7457_s6 + $0x18] sm:$0xe]  ;;  %v7216_v38 = vld [vmem:[%s7457_s6 + $0x50] sm:$0x1]  ;;  %v1363_v16 = vrot.slane %v8056_v14, 5 }
  0xa6   : > { %6589 = vmatmul.mubr.bf16.gmra.mrb[20].mxu0 %v5685_v45  ;;  %v7208_v45 = vld [vmem:[%s7457_s6 + $0x54] sm:$0xf]  ;;  %v8205_v40 = vld [vmem:[%s7457_s6 + $0x64] sm:$0xf] }
  0xa7   : > { %6381 = vmatmul.mubr.bf16.gmra.mrb[4].mxu1 %v5389_v55  ;;  %6592 = vmatprep.mubr.bf16.mxu0 %v5686_v56  ;;  %v5393_v4 = vcombine.low %v7208_v45, %v8056_v14  ;;  %v5394_v55 = vcombine.low %v7713_v25, %v7716_v35  ;;  %v7147_v56 = vld [vmem:[%s9301_s1 + $0xb8] sm:$0xff]   ;;  %v7211_v25 = vld [vmem:[%s7457_s6 + $0x14] sm:$0x1]  ;;  %v7145_v3 = vld [vmem:[%s7457_s6 + $0x60] sm:$0xff]  }
  0xa8   : > { %6384 = vmatprep.mubr.bf16.mxu1 %v5390_v59  ;;  %6413 = vmatpush3.bf16.msra.mxu1 %v7120_v50  ;;  %v2407_v50 = vshll.u32 %v7934_v11, 16  ;;  %v8070_v59 = vld [vmem:[%s7457_s6 + $0x8] sm:$0x1]  ;;  %v1324_v35 = vrot.slane %v7211_v25, 5 }
  0xa9   : > { %6414 = vmatprep.subr.bf16.mxu1 %v7124_v1  ;;  %v1317_v24 = vrot.slane %v8070_v59, 5 }
  0xaa   : > { %v8065_v11 = vrot.slane %v2407_v50, 5 }
  0xac   : > { %6415 = vmatpush3.bf16.msra.mxu1 %v7124_v1  ;;  %v1314_v1 = vrot.slane %v7949_v62, 5  ;;  %v5395_v62 = vcombine.low %v7731_v5, %v7743_v21  ;;  %v5411_v21 = vrot.slane %v1262_v10, 9  ;;  %v5770_v10 = vld [vmem:[%s7457_s6 + $0x18] sm:$0xf] }
  0xad   : > { %6416 = vmatprep.subr.bf16.mxu1 %v7129_v32 }
  0xae   : > { %6593 = vmatmul.mubr.bf16.gmra.mrb[24].mxu0 %v5687_v36  ;;  %v5396_v36 = vcombine.low %v7754_v47, %v7765_v54  ;;  %v1316_v5 = vrot.slane %v1314_v1, 4  ;;  %v7137_v47 = vld [vmem:[%s9301_s1 + $0x1c8] sm:$0xff]   ;;  %v5412_v54 = vrot.slane %v1263_v19, 9  ;;  %v8125_v59 = vsel %vm7735_vm5, %v5410_v17, %v1314_v1  ;;  %v5771_v19 = vld [vmem:[%s7457_s6 + $0x1c] sm:$0xf] }
  0xaf   : > { %6385 = vmatmul.mubr.bf16.gmra.mrb[8].mxu1 %v5391_v34  ;;  %6596 = vmatprep.mubr.bf16.mxu0 %v5688_v33  ;;  %v1342_v34 = vrot.slane %v8013_v58, 5  ;;  %v1323_v33 = vrot.slane %v1321_v7, 4  ;;  %v5413_v58 = vrot.slane %v1264_v61, 9  ;;  %v1356_v1 = vrot.slane %v8039_v0, 5  ;;  %v7139_v0 = vld [vmem:[%s7457_s6 + $0x48] sm:$0xff]  }
  0xb0   : > { %6388 = vmatprep.mubr.bf16.mxu1 %v5392_v20  ;;  %6417 = vmatpush3.bf16.msra.mxu1 %v7129_v32  ;;  %v1335_v32 = vrot.slane %v8008_v51, 5  ;;  %v1265_v51 = vld [vmem:[%s7457_s6 + $0x30] sm:$0xe]  ;;  %v5399_v20 = vcombine.low %v7837_v31, %v7846_v48  ;;  %v8133_v25 = vsel %vm7735_vm5, %v1316_v5, %v1317_v24  ;;  %v8141_v63 = vsel %vm7735_vm5, %v5412_v54, %v1328_v13  ;;  %v1267_v13 = vld [vmem:[%s7457_s6 + $0x48] sm:$0xe] }
  0xb1   : > { %6418 = vmatprep.subr.bf16.mxu1 %v7135_v23  ;;  %v5414_v50 = vrot.slane %v1265_v51, 9  ;;  %v1344_v52 = vrot.slane %v1342_v34, 4  ;;  %v3821_v5 = vshrl.u32 %v5770_v10, 16  ;;  %v3834_v51 = vshrl.u32 %v5771_v19, 16  ;;  %v7148_v48 = vld [vmem:[%s7457_s6 + $0x6c] sm:$0xff]  }
  0xb2   : > { %v1337_v42 = vrot.slane %v1335_v32, 4  ;;  %v8153_v24 = vsel %vm7735_vm5, %v5413_v58, %v1335_v32  ;;  %v7215_v32 = vld [vmem:[%s7457_s6 + $0x44] sm:$0x1]  ;;  %v5416_v54 = vrot.slane %v1267_v13, 9  ;;  %v5774_v13 = vld [vmem:[%s7457_s6 + $0x28] sm:$0xf] }
  0xb3   : > { %v8163_v61 = vsel %vm7735_vm5, %v5414_v50, %v1342_v34  ;;  %v1352_v17 = vrot.slane %v7215_v32, 5  ;;  %v5772_v50 = vld [vmem:[%s7457_s6 + $0x20] sm:$0x1]  ;;  %v1269_v32 = vld [vmem:[%s7457_s6 + $0x60] sm:$0xe] }
  0xb4   : > { %6419 = vmatpush3.bf16.msra.mxu1 %v7135_v23  ;;  %v5400_v23 = vcombine.low %v7871_v27, %v7874_v29 }
  0xb5   : > { %6420 = vmatprep.subr.bf16.mxu1 %v7141_v49 }
  0xb6   : > { %6597 = vmatmul.mubr.bf16.gmra.mrb[28].mxu0 %v5689_v53  ;;  %v7214_v53 = vld [vmem:[%s7457_s6 + $0x38] sm:$0x1] }
  0xb7   : > { %6389 = vmatmul.mubr.bf16.gmra.mrb[12].mxu1 %v5393_v4  ;;  %6616 = vmatprep.mubr.bf16.mxu0 %v7127_v22  ;;  %v1345_v45 = vrot.slane %v7214_v53, 5  ;;  %v1266_v4 = vld [vmem:[%s7457_s6 + $0x3c] sm:$0xe]  ;;  %v1349_v22 = vrot.slane %v8034_v30, 5  ;;  %v8129_v30 = vsel %vm7735_vm5, %v5411_v21, %v1321_v7  ;;  %v3824_v21 = vshll.u32 %v5770_v10, 16  ;;  %v7153_v53 = vld [vmem:[%s9301_s1 + $0x1e0] sm:$0xff]  }
  0xb8   : > { %6392 = vmatprep.mubr.bf16.mxu1 %v5394_v55  ;;  %6421 = vmatpush3.bf16.msra.mxu1 %v7141_v49  ;;  %v1338_v49 = vrot.slane %v7213_v43, 5  ;;  %v8116_v55 = vrot.slane %v2417_v8, 5  ;;  %v7136_v7 = vld [vmem:[%s7457_s6 + $0x3c] sm:$0xff]   ;;  %v8149_v8 = vsel %vm7735_vm5, %v1330_v46, %v1331_v39  ;;  %v1358_v46 = vrot.slane %v1356_v1, 4  ;;  %v5776_v43 = vld [vmem:[%s7457_s6 + $0x30] sm:$0xf] }
  0xb9   : > { %6422 = vmatprep.subr.bf16.mxu1 %v7147_v56  ;;  %v1359_v39 = vrot.slane %v7216_v38, 5  ;;  %v3823_v10 = vrot.slane %v3821_v5, 4 }
  0xba   : > { %9324 = vst [vmem:[#allocation5_spill] sm:$0xff] %v8116_v55 }
  0xbc   : > { %6423 = vmatpush3.bf16.msra.mxu1 %v7147_v56  ;;  %v7143_v56 = vld [vmem:[%s9301_s1 + $0x1d0] sm:$0xff]  }
  0xbd   : > { %6456 = vmatprep.subr.bf16.mxu1 %v8082_v60 }
  0xbe   : > { %6617 = vmatmul.mubr.bf16.vlgmr.msra.gmra.mrb[0].mxu0 %v7130_v6  ;;  %v8137_v6 = vsel %vm7735_vm5, %v1323_v33, %v1324_v35  ;;  %v8157_v35 = vsel %vm7735_vm5, %v1337_v42, %v1338_v49  ;;  %v3830_v33 = vshll.u32 %v5771_v19, 16  ;;  %v3826_v19 = vrot.slane %v3824_v21, 5  ;;  %v1270_v21 = vld [vmem:[%s7457_s6 + $0x6c] sm:$0xe] }
  0xbf   : > { %6393 = vmatmul.mubr.bf16.gmra.mrb[16].mxu1 %v5395_v62  ;;  %6649 = vmatpush3.bf16.msra.mxu0 %v7921_v44  ;;  %v5415_v62 = vrot.slane %v1266_v4, 9  ;;  %v5419_v58 = vrot.slane %v1270_v21, 9 }
  0xc0   : > { %6396 = vmatprep.mubr.bf16.mxu1 %v5396_v36  ;;  %6620 = vmatprep.mubr.bf16.mxu0 %v7133_v18  ;;  %v8167_v36 = vsel %vm7735_vm5, %v1344_v52, %v1345_v45  ;;  %v1351_v18 = vrot.slane %v1349_v22, 4  ;;  %v5773_v52 = vld [vmem:[%s7457_s6 + $0x24] sm:$0xf]  ;;  %v3858_v45 = vshrl.u32 %v5774_v13, 16 }
  0xc1   : > { %6650 = vmatprep.subr.bf16.mxu0 %v7137_v47  ;;  %v8184_v49 = vsel %vm7735_vm5, %v5415_v62, %v1349_v22  ;;  %v8201_v22 = vld [vmem:[%s7457_s6 + $0x54] sm:$0xe]  ;;  %v3836_v62 = vrot.slane %v3834_v51, 4  ;;  %v3845_v38 = vshrl.u32 %v5773_v52, 16  ;;  %v3848_v28 = vshll.u32 %v5773_v52, 16 }
  0xc2   : > { %v8198_v4 = vsel %vm7735_vm5, %v1351_v18, %v1352_v17  ;;  %v3840_v17 = vshll.u32 %v5772_v50, 16  ;;  %v5417_v5 = vrot.slane %v8201_v22, 9  ;;  %v7157_v50 = vld [vmem:[%s9301_s1 + $0x1e8] sm:$0xff]   ;;  %v1365_v52 = vrot.slane %v1363_v16, 4 }
  0xc3   : > { %6651 = vmatpush3.bf16.msra.mxu0 %v7137_v47  ;;  %v7149_v47 = vld [vmem:[%s9301_s1 + $0x1d8] sm:$0xff]   ;;  %v3827_v22 = vor.u32 %v3826_v19, %v3823_v10  ;;  %v3847_v34 = vrot.slane %v3845_v38, 4  ;;  %v3850_v44 = vrot.slane %v3848_v28, 5  ;;  %v7221_v10 = vld [vmem:[%s7457_s6 + $0x74] sm:$0x1]  ;;  %v3860_v28 = vrot.slane %v3858_v45, 4 }
  0xc4   : > { %6652 = vmatprep.subr.bf16.mxu0 %v7143_v56  ;;  %v8239_v42 = vrot.slane %v3840_v17, 5  ;;  %v1380_v19 = vrot.slane %v7221_v10, 5  ;;  %v3869_v38 = vshrl.u32 %v5776_v43, 16  ;;  %v8264_v27 = vsel %vm7735_vm5, %v5417_v5, %v1363_v16 }
  0xc5   : > { %v3828_v21 = vrot.slane %v3827_v22, 4 }
  0xc6   : > { %6621 = vmatmul.mubr.bf16.gmra.mrb[4].mxu0 %v7136_v7  ;;  %v8211_v7 = vrot.slane %v3830_v33, 5  ;;  %v7219_v33 = vld [vmem:[%s7457_s6 + $0x70] sm:$0xf] }
  0xc7   : > { %6397 = vmatmul.mubr.bf16.gmra.mrb[20].mxu1 %v5397_v15  ;;  %6624 = vmatprep.mubr.bf16.mxu0 %v7139_v0  ;;  %v1370_v15 = vrot.slane %v8205_v40, 5  ;;  %v7218_v0 = vld [vmem:[%s7457_s6 + $0x5c] sm:$0x1]  ;;  %v1377_v51 = vrot.slane %v7219_v33, 5 }
  0xc8   : > { %6400 = vmatprep.mubr.bf16.mxu1 %v5398_v26  ;;  %6653 = vmatpush3.bf16.msra.mxu0 %v7143_v56  ;;  %v1366_v18 = vrot.slane %v7218_v0, 5  ;;  %v8220_v26 = vsel %vm7735_vm5, %v5416_v54, %v1356_v1  ;;  %v8224_v56 = vsel %vm7735_vm5, %v1358_v46, %v1359_v39  ;;  %v7220_v1 = vld [vmem:[%s7457_s6 + $0x68] sm:$0x1]  ;;  %v3854_v0 = vshll.u32 %v5774_v13, 16  ;;  %v7165_v40 = vld [vmem:[%s9301_s1 + $0x1f8] sm:$0xff]  }
  0xc9   : > { %6654 = vmatprep.subr.bf16.mxu0 %v7149_v47  ;;  %v1373_v54 = vrot.slane %v7220_v1, 5  ;;  %v5418_v46 = vrot.slane %v1269_v32, 9  ;;  %v1372_v39 = vrot.slane %v1370_v15, 4  ;;  %v3837_v33 = vor.u32 %v3836_v62, %v8211_v7  ;;  %v5777_v1 = vld [vmem:[%s7457_s6 + $0x34] sm:$0xf] }
  0xca   : > { %v1379_v32 = vrot.slane %v1377_v51, 4  ;;  %v5775_v62 = vld [vmem:[%s7457_s6 + $0x2c] sm:$0x1]  ;;  %v8251_v17 = vrot.slane %v3854_v0, 5  ;;  %v3878_v13 = vshll.u32 %v5777_v1, 16  ;;  %v3882_v31 = vshrl.u32 %v5777_v1, 16 }
  0xcb   : > { %v3838_v10 = vrot.slane %v3837_v33, 4  ;;  %v8268_v29 = vsel %vm7735_vm5, %v1365_v52, %v1366_v18  ;;  %v8275_v45 = vsel %vm7735_vm5, %v5418_v46, %v1370_v15  ;;  %v8279_v14 = vsel %vm7735_vm5, %v1372_v39, %v1373_v54  ;;  %v1271_v18 = vld [vmem:[%s7457_s6 + $0x78] sm:$0xe] }
  0xcc   : > { %6655 = vmatpush3.bf16.msra.mxu0 %v7149_v47  ;;  %v8283_v16 = vsel %vm7735_vm5, %v5419_v58, %v1377_v51  ;;  %v8293_v15 = vsel %vm7735_vm5, %v1379_v32, %v1380_v19  ;;  %v3861_v5 = vor.u32 %v3860_v28, %v8251_v17  ;;  %v3871_v52 = vrot.slane %v3869_v38, 4  ;;  %v5779_v58 = vld [vmem:[%s7457_s6 + $0x3c] sm:$0xf]  ;;  %v5780_v51 = vld [vmem:[%s7457_s6 + $0x40] sm:$0xf] }
  0xcd   : > { %6656 = vmatprep.subr.bf16.mxu0 %v7153_v53  ;;  %v3833_v0 = vsel %vm7489_vm2, %v3828_v21, %v8211_v7  ;;  %v3843_v46 = vsel %vm7489_vm2, %v3838_v10, %v8239_v42  ;;  %v8304_v39 = vrot.slane %v3878_v13, 5  ;;  %v3884_v22 = vrot.slane %v3882_v31, 4  ;;  %v7223_v19 = vld [vmem:[%s7457_s6 + $0x80] sm:$0x1]  ;;  %v8463_v47 = vld [vmem:[%s7457_s6 + $0x68] sm:$0x1] }
  0xce   : > { %6625 = vmatmul.mubr.bf16.gmra.mrb[8].mxu0 %v7142_v2  ;;  %v3872_v2 = vshll.u32 %v5776_v43, 16  ;;  %v3864_v43 = vshll.u32 %v5775_v62, 16  ;;  %v5420_v32 = vrot.slane %v1271_v18, 9  ;;  %v1272_v62 = vld [vmem:[%s7457_s6 + $0x84] sm:$0xe]  ;;  %v3893_v28 = vshrl.u32 %v5779_v58, 16 }
  0xcf   : > { %6401 = vmatmul.mubr.bf16.gmra.mrb[24].mxu1 %v5399_v20  ;;  %6628 = vmatprep.mubr.bf16.mxu0 %v7145_v3  ;;  %v7161_v20 = vld [vmem:[%s9301_s1 + $0x1f0] sm:$0xff]   ;;  %v7222_v3 = vld [vmem:[%s7457_s6 + $0x7c] sm:$0xf]  ;;  %v3896_v7 = vshll.u32 %v5779_v58, 16  ;;  %v3902_v38 = vshll.u32 %v5780_v51, 16  ;;  %v9325_v42 = vcombine.low %v7894_v41, %v7899_v12  ;;  %v8315_v13 = vrot.slane %v3861_v5, 4 }
  0xd0   : > { %6404 = vmatprep.mubr.bf16.mxu1 %v5400_v23  ;;  %6657 = vmatpush3.bf16.msra.mxu0 %v7153_v53  ;;  %v3851_v23 = vor.u32 %v3850_v44, %v3847_v34  ;;  %v7150_v53 = vld [vmem:[%s7457_s6 + $0x78] sm:$0xff]   ;;  %v1384_v44 = vrot.slane %v7222_v3, 5  ;;  %v3874_v54 = vrot.slane %v3872_v2, 5  ;;  %v8308_v1 = vrot.slane %v3864_v43, 5  ;;  %v8320_v21 = vld [vmem:[%s9301_s1 + $0x200] sm:$0xff]   ;;  %9333 = vst [vmem:[#allocation8_spill] sm:$0xff] %v8463_v47 }
  0xd1   : > { %6658 = vmatprep.subr.bf16.mxu0 %v7157_v50  ;;  %v5778_v34 = vld [vmem:[%s7457_s6 + $0x38] sm:$0x1]  ;;  %v3906_v2 = vshrl.u32 %v5780_v51, 16  ;;  %v7152_v43 = vld [vmem:[%s7457_s6 + $0x84] sm:$0xff]   ;;  %v3885_v12 = vor.u32 %v3884_v22, %v8304_v39  ;;  %v3898_v58 = vrot.slane %v3896_v7, 5  ;;  %v8342_v51 = vrot.slane %v3902_v38, 5 }
  0xd2   : > { %v8306_v33 = vrot.slane %v3851_v23, 4  ;;  %v1386_v10 = vrot.slane %v1384_v44, 4  ;;  %v3875_v31 = vor.u32 %v3874_v54, %v3871_v52  ;;  %v9326_v23 = vcombine.low %v8125_v59, %v8133_v25  ;;  %v7224_v18 = vld [vmem:[%s7457_s6 + $0x88] sm:$0xf]  ;;  %v5781_v5 = vld [vmem:[%s7457_s6 + $0x44] sm:$0x1] }
  0xd3   : > { %v1391_v3 = vrot.slane %v7224_v18, 5  ;;  %v8333_v59 = vcombine.low %v3833_v0, %v3843_v46  ;;  %v5782_v52 = vld [vmem:[%s7457_s6 + $0x48] sm:$0xf]  ;;  %v3895_v54 = vrot.slane %v3893_v28, 4  ;;  %v3908_v22 = vrot.slane %v3906_v2, 4 }
  0xd4   : > { %6659 = vmatpush3.bf16.msra.mxu0 %v7157_v50  ;;  %v1387_v50 = vrot.slane %v7223_v19, 5  ;;  %v7154_v19 = vld [vmem:[%s7457_s6 + $0x90] sm:$0xff]   ;;  %v3857_v0 = vsel %vm7489_vm2, %v8306_v33, %v8251_v17  ;;  %v3876_v46 = vrot.slane %v3875_v31, 4  ;;  %v3867_v28 = vsel %vm7489_vm2, %v8315_v13, %v8308_v1  ;;  %v8364_v33 = vld [vmem:[%s7457_s6 + $0x58] sm:$0xf]  ;;  %v7155_v31 = vld [vmem:[%s9301_s1 + $0xc8] sm:$0xff]  }
  0xd5   : > { %6660 = vmatprep.subr.bf16.mxu0 %v7161_v20  ;;  %v3886_v38 = vrot.slane %v3885_v12, 4  ;;  %v1393_v2 = vrot.slane %v1391_v3, 4  ;;  %v5785_v17 = vld [vmem:[%s7457_s6 + $0x54] sm:$0xf]  ;;  %v3912_v1 = vshll.u32 %v5781_v5, 16  ;;  %v3917_v13 = vshrl.u32 %v5782_v52, 16 }
  0xd6   : > { %6629 = vmatmul.mubr.bf16.gmra.mrb[12].mxu0 %v7148_v48  ;;  %v3888_v48 = vshll.u32 %v5778_v34, 16  ;;  %v8360_v7 = vsel %vm7735_vm5, %v1386_v10, %v1387_v50  ;;  %v3920_v50 = vshll.u32 %v5782_v52, 16  ;;  %v3899_v10 = vor.u32 %v3898_v58, %v3895_v54  ;;  %v7156_v54 = vld [vmem:[%s7457_s6 + $0x9c] sm:$0xff]   ;;  %v7230_v41 = vld [vmem:[%s7457_s6 + $0xac] sm:$0xf] }
  0xd7   : > { %6405 = vmatmul.mubr.bf16.gmra.mrb[28].mxu1 %v9325_v42  ;;  %6632 = vmatprep.mubr.bf16.mxu0 %v7150_v53  ;;  %v5421_v53 = vrot.slane %v1272_v62, 9  ;;  %v7225_v42 = vld [vmem:[%s7457_s6 + $0x8c] sm:$0x1]  ;;  %v3950_v5 = vshll.u32 %v8364_v33, 16  ;;  %v9328_v52 = vcombine.low %v8141_v63, %v8149_v8  ;;  %v8400_v63 = vld [vmem:[%s7457_s6 + $0x50] sm:$0x1] }
  0xd8   : > { %6424 = vmatprep.mubr.bf16.mxu1 %v9326_v23  ;;  %6661 = vmatpush3.bf16.msra.mxu0 %v7161_v20  ;;  %v8339_v20 = vsel %vm7735_vm5, %v5420_v32, %v1384_v44  ;;  %v3890_v62 = vrot.slane %v3888_v48, 5  ;;  %v1394_v23 = vrot.slane %v7225_v42, 5  ;;  %v1273_v44 = vld [vmem:[%s7457_s6 + $0x90] sm:$0xe]  ;;  %v8352_v32 = vld [vmem:[%s7457_s6 + $0x4c] sm:$0xf]  ;;  %v3909_v48 = vor.u32 %v3908_v22, %v8342_v51 }
  0xd9   : > { %6662 = vmatprep.subr.bf16.mxu0 %v7165_v40  ;;  %v3926_v12 = vshll.u32 %v8352_v32, 16  ;;  %v3930_v18 = vshrl.u32 %v8352_v32, 16  ;;  %v9327_v42 = vcombine.low %v8129_v30, %v8137_v6  ;;  %v7159_v30 = vld [vmem:[%s9301_s1 + $0xd0] sm:$0xff]   ;;  %v3881_v6 = vsel %vm7489_vm2, %v3876_v46, %v8304_v39  ;;  %v7158_v8 = vld [vmem:[%s7457_s6 + $0xa8] sm:$0xff]   ;;  %v8407_v39 = vld [vmem:[%s7457_s6 + $0x5c] sm:$0x1] }
  0xda   : > { %v3891_v58 = vsel %vm7489_vm2, %v3886_v38, %v3890_v62  ;;  %v5422_v22 = vrot.slane %v1273_v44, 9  ;;  %v3922_v25 = vrot.slane %v3920_v50, 5  ;;  %9329 = vst [vmem:[#allocation6_spill] sm:$0xff] %v8407_v39  ;;  %v3900_v46 = vrot.slane %v3899_v10, 4 }
  0xdb   : > { %v3910_v62 = vrot.slane %v3909_v48, 4  ;;  %v8409_v38 = vrot.slane %v3926_v12, 5  ;;  %v8411_v34 = vrot.slane %v3950_v5, 5  ;;  %v8416_v50 = vcombine.low %v3857_v0, %v3867_v28  ;;  %v5788_v28 = vld [vmem:[%s7457_s6 + $0x60] sm:$0xf] }
  0xdc   : > { %6663 = vmatpush3.bf16.msra.mxu0 %v7165_v40  ;;  %v8372_v40 = vsel %vm7735_vm5, %v5421_v53, %v1391_v3  ;;  %v3941_v53 = vshrl.u32 %v5785_v17, 16  ;;  %v3944_v3 = vshll.u32 %v5785_v17, 16  ;;  %v7226_v17 = vld [vmem:[%s7457_s6 + $0x94] sm:$0xf]  ;;  %v8420_v48 = vcombine.low %v3881_v6, %v3891_v58 }
  0xdd   : > { %6696 = vmatprep.subr.bf16.mxu0 %v8320_v21  ;;  %v3936_v0 = vshll.u32 %v8400_v63, 16  ;;  %v3905_v6 = vsel %vm7489_vm2, %v3900_v46, %v8342_v51  ;;  %v9332_v46 = vcombine.low %v8163_v61, %v8167_v36 }
  0xde   : > { %6633 = vmatmul.mubr.bf16.gmra.mrb[16].mxu0 %v7152_v43  ;;  %v3954_v43 = vshrl.u32 %v8364_v33, 16  ;;  %v3943_v44 = vrot.slane %v3941_v53, 4  ;;  %v7227_v53 = vld [vmem:[%s7457_s6 + $0x98] sm:$0x1] }
  0xdf   : > { %6425 = vmatmul.mubr.bf16.vlgmr.msra.gmra.mrb[0].mxu1 %v9327_v42  ;;  %6636 = vmatprep.mubr.bf16.mxu0 %v7154_v19  ;;  %v8403_v19 = vrot.slane %v3912_v1, 5  ;;  %v1398_v42 = vrot.slane %v7226_v17, 5  ;;  %v7228_v17 = vld [vmem:[%s7457_s6 + $0xa0] sm:$0xf]  ;;  %v3938_v36 = vrot.slane %v3936_v0, 5 }
  0xe0   : > { %6457 = vmatpush3.bf16.msra.mxu1 %v8082_v60  ;;  %6428 = vmatprep.mubr.bf16.mxu1 %v9328_v52  ;;  %v8397_v60 = vsel %vm7735_vm5, %v1393_v2, %v1394_v23  ;;  %v3919_v52 = vrot.slane %v3917_v13, 4  ;;  %v3932_v23 = vrot.slane %v3930_v18, 4  ;;  %v3946_v2 = vrot.slane %v3944_v3, 5  ;;  %v7163_v13 = vld [vmem:[%s9301_s1 + $0xd8] sm:$0xff]  }
  0xe1   : > { %6458 = vmatprep.subr.bf16.mxu1 %v7155_v31  ;;  %v3956_v1 = vrot.slane %v3954_v43, 4  ;;  %v1274_v18 = vld [vmem:[%s7457_s6 + $0x9c] sm:$0xe]  ;;  %v1401_v3 = vrot.slane %v7227_v53, 5  ;;  %v8433_v43 = vld [vmem:[%s7457_s6 + $0x64] sm:$0xf] }
  0xe2   : > { %v3923_v5 = vor.u32 %v3922_v25, %v3919_v52  ;;  %9330 = vst [vmem:[#allocation7_spill] sm:$0xff] %v8433_v43  ;;  %v3933_v58 = vor.u32 %v3932_v23, %v8409_v38  ;;  %v1405_v12 = vrot.slane %v7228_v17, 5  ;;  %v9331_v25 = vcombine.low %v8153_v24, %v8157_v35  ;;  %v7160_v23 = vld [vmem:[%s7457_s6 + $0xb4] sm:$0xff]   ;;  %v7166_v24 = vld [vmem:[%s9301_s1 + $0xe0] sm:$0xff]   ;;  %v5791_v17 = vld [vmem:[%s7457_s6 + $0x6c] sm:$0xf] }
  0xe3   : > { %v1400_v52 = vrot.slane %v1398_v42, 4  ;;  %v3947_v53 = vor.u32 %v3946_v2, %v3943_v44  ;;  %v3957_v51 = vor.u32 %v3956_v1, %v8411_v34  ;;  %v3965_v35 = vshrl.u32 %v5788_v28, 16  ;;  %v7229_v2 = vld [vmem:[%s7457_s6 + $0xa4] sm:$0x1] }
  0xe4   : > { %6459 = vmatpush3.bf16.msra.mxu1 %v7155_v31  ;;  %v8427_v31 = vsel %vm7735_vm5, %v5422_v22, %v1398_v42  ;;  %v3960_v22 = vshll.u32 %v8407_v39, 16  ;;  %v3978_v42 = vshrl.u32 %v8433_v43, 16  ;;  %v3924_v61 = vrot.slane %v3923_v5, 4  ;;  %v8602_v39 = vld [vmem:[%s7457_s6 + $0x98] sm:$0x1] }
  0xe5   : > { %6460 = vmatprep.subr.bf16.mxu1 %v7159_v30  ;;  %v5423_v44 = vrot.slane %v1274_v18, 9  ;;  %v1408_v1 = vrot.slane %v7229_v2, 5  ;;  %v3948_v5 = vrot.slane %v3947_v53, 4  ;;  %v3958_v18 = vrot.slane %v3957_v51, 4  ;;  %9346 = vst [vmem:[#allocation17_spill] sm:$0xff] %v8602_v39 }
  0xe6   : > { %6637 = vmatmul.mubr.bf16.gmra.mrb[20].mxu0 %v7156_v54  ;;  %v3915_v54 = vsel %vm7489_vm2, %v3910_v62, %v8403_v19  ;;  %v3974_v19 = vshll.u32 %v8433_v43, 16  ;;  %v7162_v62 = vld [vmem:[%s7457_s6 + $0xc0] sm:$0xff]   ;;  %v3962_v10 = vrot.slane %v3960_v22, 5  ;;  %v8469_v43 = vsel %vm7735_vm5, %v1400_v52, %v1401_v3 }
  0xe7   : > { %6429 = vmatmul.mubr.bf16.gmra.mrb[4].mxu1 %v9331_v25  ;;  %6640 = vmatprep.mubr.bf16.mxu0 %v7158_v8  ;;  %v3968_v8 = vshll.u32 %v5788_v28, 16  ;;  %v3934_v25 = vrot.slane %v3933_v58, 4  ;;  %v1412_v28 = vrot.slane %v7230_v41, 5  ;;  %v8465_v55 = vcombine.low %v3905_v6, %v3915_v54  ;;  %v7168_v41 = vld [vmem:[%s9301_s1 + $0xe8] sm:$0xff]  }
  0xe8   : > { %6432 = vmatprep.mubr.bf16.mxu1 %v9332_v46  ;;  %6461 = vmatpush3.bf16.msra.mxu1 %v7159_v30  ;;  %v1275_v30 = vld [vmem:[%s7457_s6 + $0xa8] sm:$0xe]  ;;  %v1407_v46 = vrot.slane %v1405_v12, 4  ;;  %v3967_v0 = vrot.slane %v3965_v35, 4  ;;  %v8471_v58 = vrot.slane %v3974_v19, 5  ;;  %v3980_v22 = vrot.slane %v3978_v42, 4 }
  0xe9   : > { %6462 = vmatprep.subr.bf16.mxu1 %v7163_v13  ;;  %v3970_v2 = vrot.slane %v3968_v8, 5  ;;  %v3929_v3 = vsel %vm7489_vm2, %v3924_v61, %v8409_v38  ;;  %v8481_v6 = vsel %vm7735_vm5, %v5423_v44, %v1405_v12  ;;  %v3989_v54 = vshrl.u32 %v5791_v17, 16  ;;  %v7231_v38 = vld [vmem:[%s7457_s6 + $0xb0] sm:$0x1]  ;;  %v1276_v19 = vld [vmem:[%s7457_s6 + $0xb4] sm:$0xe] }
  0xea   : > { %v3992_v52 = vshll.u32 %v5791_v17, 16  ;;  %v3939_v53 = vsel %vm7489_vm2, %v3934_v25, %v3938_v36  ;;  %v8490_v51 = vsel %vm7735_vm5, %v1407_v46, %v1408_v1  ;;  %v5424_v35 = vrot.slane %v1275_v30, 9  ;;  %v8512_v30 = vld [vmem:[%s7457_s6 + $0x74] sm:$0x1]  ;;  %v7232_v25 = vld [vmem:[%s7457_s6 + $0xb8] sm:$0xf] }
  0xeb   : > { %v1415_v8 = vrot.slane %v7231_v38, 5  ;;  %v9335_v12 = vcombine.low %v8184_v49, %v8198_v4  ;;  %v3953_v42 = vsel %vm7489_vm2, %v3948_v5, %v8411_v34  ;;  %v3963_v61 = vsel %vm7489_vm2, %v3958_v18, %v3962_v10  ;;  %v7164_v4 = vld [vmem:[%s7457_s6 + $0xcc] sm:$0xff]   ;;  %9337 = vst [vmem:[#allocation10_spill] sm:$0xff] %v8512_v30  ;;  %v5797_v38 = vld [vmem:[%s7457_s6 + $0x84] sm:$0xf] }
  0xec   : > { %6463 = vmatpush3.bf16.msra.mxu1 %v7163_v13  ;;  %v8484_v13 = vld [vmem:[%s7457_s6 + $0x70] sm:$0xf]  ;;  %v1414_v36 = vrot.slane %v1412_v28, 4  ;;  %v3984_v44 = vshll.u32 %v8463_v47, 16  ;;  %v9336_v49 = vcombine.low %v8220_v26, %v8224_v56  ;;  %v3981_v1 = vor.u32 %v3980_v22, %v8471_v58  ;;  %v8529_v22 = vld [vmem:[%s7457_s6 + $0x7c] sm:$0xf] }
  0xed   : > { %6464 = vmatprep.subr.bf16.mxu1 %v7166_v24  ;;  %9334 = vst [vmem:[#allocation9_spill] sm:$0xff] %v8484_v13  ;;  %v3998_v34 = vshll.u32 %v8484_v13, 16  ;;  %v4002_v10 = vshrl.u32 %v8484_v13, 16  ;;  %v5425_v17 = vrot.slane %v1276_v19, 9  ;;  %v1419_v46 = vrot.slane %v7232_v25, 5  ;;  %9338 = vst [vmem:[#allocation11_spill] sm:$0xff] %v8529_v22 }
  0xee   : > { %6641 = vmatmul.mubr.bf16.gmra.mrb[24].mxu0 %v7160_v23  ;;  %v7170_v23 = vld [vmem:[%s9301_s1 + $0xf0] sm:$0xff]   ;;  %v3991_v26 = vrot.slane %v3989_v54, 4  ;;  %v3994_v56 = vrot.slane %v3992_v52, 5  ;;  %v8520_v18 = vcombine.low %v3929_v3, %v3939_v53  ;;  %v8532_v19 = vcombine.low %v3953_v42, %v3963_v61  ;;  %v7233_v3 = vld [vmem:[%s7457_s6 + $0xbc] sm:$0x1] }
  0xef   : > { %6433 = vmatmul.mubr.bf16.gmra.mrb[8].mxu1 %v9335_v12  ;;  %6644 = vmatprep.mubr.bf16.mxu0 %v7162_v62  ;;  %v3971_v62 = vor.u32 %v3970_v2, %v3967_v0  ;;  %v8526_v2 = vsel %vm7735_vm5, %v5424_v35, %v1412_v28  ;;  %v8536_v54 = vsel %vm7735_vm5, %v1414_v36, %v1415_v8  ;;  %v8538_v52 = vrot.slane %v3984_v44, 5  ;;  %v7172_v12 = vld [vmem:[%s9301_s1 + $0xf8] sm:$0xff]   ;;  %v8545_v28 = vld [vmem:[%s7457_s6 + $0x88] sm:$0xf] }
  0xf0   : > { %6436 = vmatprep.mubr.bf16.mxu1 %v9336_v49  ;;  %6465 = vmatpush3.bf16.msra.mxu1 %v7166_v24  ;;  %v5794_v24 = vld [vmem:[%s7457_s6 + $0x78] sm:$0xf]  ;;  %v1422_v53 = vrot.slane %v7233_v3, 5  ;;  %9339 = vst [vmem:[#allocation12_spill] sm:$0xff] %v8545_v28  ;;  %v8549_v42 = vrot.slane %v3981_v1, 4  ;;  %v8551_v61 = vrot.slane %v3998_v34, 5  ;;  %v8555_v36 = vsel %vm7735_vm5, %v5425_v17, %v1419_v46 }
  0xf1   : > { %6466 = vmatprep.subr.bf16.mxu1 %v7168_v41  ;;  %v8547_v35 = vrot.slane %v3971_v62, 4  ;;  %v4004_v8 = vrot.slane %v4002_v10, 4  ;;  %v1421_v44 = vrot.slane %v1419_v46, 4  ;;  %v3995_v49 = vor.u32 %v3994_v56, %v3991_v26  ;;  %v5800_v3 = vld [vmem:[%s7457_s6 + $0x90] sm:$0xf] }
  0xf2   : > { %v4008_v25 = vshll.u32 %v8512_v30, 16  ;;  %v4016_v0 = vshll.u32 %v5794_v24, 16  ;;  %v4022_v62 = vshll.u32 %v8529_v22, 16  ;;  %v4026_v1 = vshrl.u32 %v8529_v22, 16  ;;  %v8562_v34 = vld [vmem:[%s7457_s6 + $0x94] sm:$0xf] }
  0xf3   : > { %9340 = vst [vmem:[#allocation13_spill] sm:$0xff] %v8562_v34  ;;  %v9341_v10 = vcombine.low %v8264_v27, %v8268_v29  ;;  %v4037_v17 = vshrl.u32 %v5797_v38, 16  ;;  %v4040_v46 = vshll.u32 %v5797_v38, 16  ;;  %v4050_v26 = vshrl.u32 %v8545_v28, 16  ;;  %v5803_v38 = vld [vmem:[%s7457_s6 + $0x9c] sm:$0xf] }
  0xf4   : > { %6467 = vmatpush3.bf16.msra.mxu1 %v7168_v41  ;;  %v4013_v41 = vshrl.u32 %v5794_v24, 16  ;;  %v9342_v56 = vcombine.low %v8275_v45, %v8279_v14  ;;  %v4005_v29 = vor.u32 %v4004_v8, %v8551_v61  ;;  %v4064_v24 = vshll.u32 %v5800_v3, 16  ;;  %v8584_v45 = vld [vmem:[%s7457_s6 + $0x80] sm:$0x1] }
  0xf5   : > { %6468 = vmatprep.subr.bf16.mxu1 %v7170_v23  ;;  %v8581_v5 = vrot.slane %v4008_v25, 5  ;;  %9343 = vst [vmem:[#allocation14_spill] sm:$0xff] %v8584_v45  ;;  %v4070_v14 = vshll.u32 %v8562_v34, 16  ;;  %v4018_v27 = vrot.slane %v4016_v0, 5  ;;  %v4028_v8 = vrot.slane %v4026_v1, 4 }
  0xf6   : > { %6645 = vmatmul.mubr.bf16.gmra.mrb[28].mxu0 %v7164_v4  ;;  %v4046_v4 = vshll.u32 %v8545_v28, 16  ;;  %v8588_v28 = vrot.slane %v4022_v62, 5  ;;  %v8594_v22 = vld [vmem:[%s7457_s6 + $0xa0] sm:$0xf]  ;;  %v4039_v25 = vrot.slane %v4037_v17, 4  ;;  %v4042_v30 = vrot.slane %v4040_v46, 5 }
  0xf7   : > { %6437 = vmatmul.mubr.bf16.gmra.mrb[12].mxu1 %v9341_v10  ;;  %6664 = vmatprep.mubr.bf16.mxu0 %v8333_v59  ;;  %v4061_v59 = vshrl.u32 %v5800_v3, 16  ;;  %v8579_v10 = vrot.slane %v3995_v49, 4  ;;  %v8591_v3 = vld [vmem:[%s7457_s6 + $0x8c] sm:$0x1]  ;;  %9345 = vst [vmem:[#allocation16_spill] sm:$0xff] %v8594_v22  ;;  %v4052_v47 = vrot.slane %v4050_v26, 4  ;;  %v8611_v62 = vsel %vm7735_vm5, %v1421_v44, %v1422_v53 }
  0xf8   : > { %6440 = vmatprep.mubr.bf16.mxu1 %v9342_v56  ;;  %6469 = vmatpush3.bf16.msra.mxu1 %v7170_v23  ;;  %v4074_v23 = vshrl.u32 %v8562_v34, 16  ;;  %v4015_v56 = vrot.slane %v4013_v41, 4  ;;  %9344 = vst [vmem:[#allocation15_spill] sm:$0xff] %v8591_v3  ;;  %v7169_v49 = vld [vmem:[%s9301_s1 + $0x208] sm:$0xff]   ;;  %v8599_v13 = vrot.slane %v4046_v4, 5  ;;  %v4066_v34 = vrot.slane %v4064_v24, 5 }
  0xf9   : > { %6470 = vmatprep.subr.bf16.mxu1 %v7172_v12  ;;  %v5806_v41 = vld [vmem:[%s7457_s6 + $0xa8] sm:$0xf]  ;;  %v4063_v1 = vrot.slane %v4061_v59, 4  ;;  %v8616_v17 = vld [vmem:[%s9301_s1 + $0x100] sm:$0xff]   ;;  %v8619_v46 = vrot.slane %v4070_v14, 5  ;;  %v4085_v26 = vshrl.u32 %v5803_v38, 16  ;;  %v9348_v24 = vcombine.low %v8283_v16, %v8293_v15 }
  0xfa   : > { %9347 = vst [vmem:[#allocation18_spill] sm:$0xff] %v8616_v17  ;;  %v4076_v4 = vrot.slane %v4074_v23, 4  ;;  %v4088_v0 = vshll.u32 %v5803_v38, 16  ;;  %v8622_v53 = vrot.slane %v4005_v29, 4  ;;  %v4094_v44 = vshll.u32 %v8594_v22, 16  ;;  %v7171_v16 = vld [vmem:[%s9301_s1 + $0x210] sm:$0xff]  }
  0xfb   : > { %v4098_v59 = vshrl.u32 %v8594_v22, 16  ;;  %v4019_v14 = vor.u32 %v4018_v27, %v4015_v56  ;;  %v4029_v38 = vor.u32 %v4028_v8, %v8588_v28  ;;  %v4043_v23 = vor.u32 %v4042_v30, %v4039_v25  ;;  %v8634_v29 = vld [vmem:[%s7457_s6 + $0xac] sm:$0xf]  ;;  %v8647_v25 = vld [vmem:[%s7457_s6 + $0xa4] sm:$0x1] }
  0xfc   : > { %6471 = vmatpush3.bf16.msra.mxu1 %v7172_v12  ;;  %v4032_v12 = vshll.u32 %v8584_v45, 16  ;;  %9349 = vst [vmem:[#allocation19_spill] sm:$0xff] %v8634_v29  ;;  %v4053_v15 = vor.u32 %v4052_v47, %v8599_v13  ;;  %v4109_v27 = vshrl.u32 %v5806_v41, 16  ;;  %v4112_v30 = vshll.u32 %v5806_v41, 16 }
  0xfd   : > { %6744 = vmatprep.subr.bf16.mxu1 %v8616_v17  ;;  %v9350_v17 = vcombine.low %v8339_v20, %v8360_v7  ;;  %v4067_v56 = vor.u32 %v4066_v34, %v4063_v1  ;;  %v4077_v8 = vor.u32 %v4076_v4, %v8619_v46  ;;  %v4087_v20 = vrot.slane %v4085_v26, 4 }
  0xfe   : > { %6665 = vmatmul.mubr.bf16.vlgmr.msra.gmra.mrb[0].mxu0 %v8416_v50  ;;  %v4056_v50 = vshll.u32 %v8591_v3, 16  ;;  %v4090_v7 = vrot.slane %v4088_v0, 5  ;;  %v4122_v22 = vshrl.u32 %v8634_v29, 16  ;;  %v4020_v47 = vrot.slane %v4019_v14, 4  ;;  %v7173_v0 = vld [vmem:[%s9301_s1 + $0x218] sm:$0xff]  }
  0xff   : > { %6441 = vmatmul.mubr.bf16.gmra.mrb[16].mxu1 %v9348_v24  ;;  %6697 = vmatpush3.bf16.msra.mxu0 %v8320_v21  ;;  %v4080_v21 = vshll.u32 %v8602_v39, 16  ;;  %v4118_v24 = vshll.u32 %v8634_v29, 16  ;;  %v4030_v39 = vrot.slane %v4029_v38, 4  ;;  %v4034_v3 = vrot.slane %v4032_v12, 5 }
 0x100   : > { %6444 = vmatprep.mubr.bf16.mxu1 %v9350_v17  ;;  %6668 = vmatprep.mubr.bf16.mxu0 %v8420_v48  ;;  %v8649_v17 = vrot.slane %v4094_v44, 5  ;;  %v4100_v48 = vrot.slane %v4098_v59, 4  ;;  %v4058_v41 = vrot.slane %v4056_v50, 5  ;;  %v4044_v34 = vrot.slane %v4043_v23, 4 }
 0x101   : > { %6698 = vmatprep.subr.bf16.mxu0 %v7169_v49  ;;  %v4054_v1 = vrot.slane %v4053_v15, 4  ;;  %v4111_v4 = vrot.slane %v4109_v27, 4  ;;  %v4114_v45 = vrot.slane %v4112_v30, 5  ;;  %v4068_v26 = vrot.slane %v4067_v56, 4  ;;  %v8715_v27 = vld [vmem:[%s7457_s6 + $0xbc] sm:$0x1] }
 0x102   : > { %v4082_v44 = vrot.slane %v4080_v21, 5  ;;  %v4091_v59 = vor.u32 %v4090_v7, %v4087_v20  ;;  %v4104_v29 = vshll.u32 %v8647_v25, 16  ;;  %v4101_v12 = vor.u32 %v4100_v48, %v8649_v17  ;;  %v8682_v21 = vld [vmem:[%s7457_s6 + $0xb0] sm:$0x1] }
 0x103   : > { %6699 = vmatpush3.bf16.msra.mxu0 %v7169_v49  ;;  %v4078_v49 = vrot.slane %v4077_v8, 4  ;;  %v8659_v14 = vrot.slane %v4118_v24, 5  ;;  %v4124_v38 = vrot.slane %v4122_v22, 4  ;;  %v9351_v23 = vor.u32 %v8067_v57, %v8065_v11 }
 0x104   : > { %6700 = vmatprep.subr.bf16.mxu0 %v7171_v16  ;;  %v9352_v15 = vcombine.low %v8372_v40, %v8397_v60  ;;  %v4011_v22 = vsel %vm7489_vm2, %v8622_v53, %v8581_v5  ;;  %v4025_v57 = vsel %vm7489_vm2, %v4020_v47, %v8588_v28  ;;  %v9353_v40 = vcombine.low %v8427_v31, %v8469_v43  ;;  %v7176_v31 = vld [vmem:[%s9301_s1 + $0x220] sm:$0xff]  }
 0x105   : > { %v8664_v50 = vrot.slane %v9351_v23, 4  ;;  %v4035_v60 = vsel %vm7489_vm2, %v4030_v39, %v4034_v3  ;;  %v4115_v5 = vor.u32 %v4114_v45, %v4111_v4  ;;  %v4059_v28 = vsel %vm7489_vm2, %v4054_v1, %v4058_v41  ;;  %v5862_v41 = vld [vmem:[%s7457_s6 + $0x48] sm:$0xe] }
 0x106   : > { %6669 = vmatmul.mubr.bf16.gmra.mrb[4].mxu0 %v8465_v55  ;;  %v4001_v55 = vsel %vm7489_vm2, %v8579_v10, %v8551_v61  ;;  %v5809_v61 = vld [vmem:[%s7457_s6 + $0xb4] sm:$0xf]  ;;  %v8694_v10 = vld [vmem:[%s7457_s6 + $0xb8] sm:$0xf]  ;;  %v4073_v39 = vsel %vm7489_vm2, %v4068_v26, %v8619_v46  ;;  %v8704_v43 = vrot.slane %v4091_v59, 4  ;;  %v8706_v3 = vrot.slane %v4104_v29, 5 }
 0x107   : > { %6445 = vmatmul.mubr.bf16.gmra.mrb[20].mxu1 %v9352_v15  ;;  %6672 = vmatprep.mubr.bf16.mxu0 %v8520_v18  ;;  %v4049_v18 = vsel %vm7489_vm2, %v4044_v34, %v8599_v13  ;;  %v4083_v13 = vsel %vm7489_vm2, %v4078_v49, %v4082_v44  ;;  %v8710_v45 = vrot.slane %v4101_v12, 4  ;;  %v4125_v53 = vor.u32 %v4124_v38, %v8659_v14  ;;  %v5863_v26 = vld [vmem:[%s7457_s6 + $0x54] sm:$0xe] }
 0x108   : > { %6448 = vmatprep.mubr.bf16.mxu1 %v9353_v40  ;;  %6701 = vmatpush3.bf16.msra.mxu0 %v7171_v16  ;;  %v4128_v16 = vshll.u32 %v8682_v21, 16  ;;  %v9354_v46 = vsel %vm7489_vm2, %v8549_v42, %v8538_v52  ;;  %v9355_v29 = vsel %vm7489_vm2, %v8547_v35, %v8471_v58  ;;  %v4133_v56 = vshrl.u32 %v5809_v61, 16 }
 0x109   : > { %6702 = vmatprep.subr.bf16.mxu0 %v7173_v0  ;;  %v5840_v30 = vcombine.low %v9355_v29, %v9354_v46  ;;  %v4136_v8 = vshll.u32 %v5809_v61, 16  ;;  %v4142_v20 = vshll.u32 %v8694_v10, 16  ;;  %v5456_v7 = vcombine.low %v8526_v2, %v8536_v54  ;;  %v7179_v2 = vld [vmem:[%s9301_s1 + $0x228] sm:$0xff]   ;;  %v5812_v54 = vld [vmem:[%s7457_s6 + $0xc0] sm:$0xf] }
 0x10a   : > { %v5457_v48 = vcombine.low %v8555_v36, %v8611_v62  ;;  %v5841_v24 = vcombine.low %v4001_v55, %v4011_v22  ;;  %v8732_v52 = vrot.slane %v4115_v5, 4  ;;  %v5842_v42 = vcombine.low %v4025_v57, %v4035_v60  ;;  %v9359_v29 = vld [vmem:[#allocation8_spill] sm:$0xff] }
 0x10b   : > { %v8734_v58 = vcombine.low %v4049_v18, %v4059_v28  ;;  %v8736_v35 = vcombine.low %v4073_v39, %v4083_v13  ;;  %v4097_v47 = vsel %vm7489_vm2, %v8704_v43, %v8649_v17  ;;  %v4107_v34 = vsel %vm7489_vm2, %v8710_v45, %v8706_v3  ;;  %v5865_v28 = vld [vmem:[%s7457_s6 + $0x6c] sm:$0xe]  ;;  %v9357_v39 = vld [vmem:[#allocation6_spill] sm:$0xff] }
 0x10c   : > { %6703 = vmatpush3.bf16.msra.mxu0 %v7173_v0  ;;  %v8752_v1 = vrot.slane %v4125_v53, 4  ;;  %v8754_v4 = vrot.slane %v4128_v16, 5  ;;  %v4146_v0 = vshrl.u32 %v8694_v10, 16  ;;  %v9356_v44 = vcombine.low %v8481_v6, %v8490_v51  ;;  %v7182_v6 = vld [vmem:[%s9301_s1 + $0x230] sm:$0xff]   ;;  %v8776_v51 = vld [vmem:[%s7457_s6 + $0xc4] sm:$0xf] }
 0x10d   : > { %6704 = vmatprep.subr.bf16.mxu0 %v7176_v31  ;;  %v8761_v59 = vrot.slane %v4133_v56, 4  ;;  %v8765_v49 = vrot.slane %v4142_v20, 5  ;;  %v4152_v12 = vshll.u32 %v8715_v27, 16  ;;  %v4121_v38 = vsel %vm7489_vm2, %v8732_v52, %v8659_v14  ;;  %v5864_v14 = vld [vmem:[%s7457_s6 + $0x60] sm:$0xe]  ;;  %v7174_v13 = vld [vmem:[%s7457_s6 + $0xc] sm:$0xff]  }
 0x10e   : > { %6673 = vmatmul.mubr.bf16.gmra.mrb[8].mxu0 %v8532_v19  ;;  %v8763_v19 = vrot.slane %v4136_v8, 5  ;;  %v4157_v23 = vshrl.u32 %v5812_v54, 16  ;;  %v5878_v15 = vrot.slane %v5862_v41, 9  ;;  %v4620_v55 = vrot.slane %v8352_v32, 5  ;;  %v9358_v16 = vld [vmem:[#allocation7_spill] sm:$0xff]  ;;  %v7185_v56 = vld [vmem:[%s9301_s1 + $0x238] sm:$0xff]  }
 0x10f   : > { %6449 = vmatmul.mubr.bf16.gmra.mrb[24].mxu1 %v9356_v44  ;;  %6676 = vmatprep.mubr.bf16.mxu0 %v5840_v30  ;;  %v4160_v22 = vshll.u32 %v5812_v54, 16  ;;  %v4623_v57 = vrot.slane %v8400_v63, 5  ;;  %v5879_v40 = vrot.slane %v5863_v26, 9  ;;  %v4627_v60 = vrot.slane %v8364_v33, 5  ;;  %v9360_v52 = vld [vmem:[#allocation9_spill] sm:$0xff] }
 0x110   : > { %6452 = vmatprep.mubr.bf16.mxu1 %v5456_v7  ;;  %6705 = vmatpush3.bf16.msra.mxu0 %v7176_v31  ;;  %v4131_v18 = vsel %vm7489_vm2, %v8752_v1, %v8754_v4  ;;  %v8786_v5 = vrot.slane %v4146_v0, 4  ;;  %v8790_v61 = vsel %vm7735_vm5, %v5878_v15, %v4620_v55  ;;  %v4622_v32 = vrot.slane %v4620_v55, 4  ;;  %v9361_v4 = vld [vmem:[#allocation10_spill] sm:$0xff]  ;;  %v8827_v26 = vld [vmem:[%s7457_s6 + $0xc8] sm:$0x1] }
 0x111   : > { %6706 = vmatprep.subr.bf16.mxu0 %v7179_v2  ;;  %v4166_v31 = vshll.u32 %v8776_v51, 16  ;;  %v8796_v63 = vsel %vm7735_vm5, %v5879_v40, %v4627_v60  ;;  %v4629_v33 = vrot.slane %v4627_v60, 4  ;;  %v4630_v3 = vrot.slane %v9357_v39, 5  ;;  %v7175_v40 = vld [vmem:[%s7457_s6 + $0x18] sm:$0xff]   ;;  %v7177_v39 = vld [vmem:[%s7457_s6 + $0x24] sm:$0xff]  }
 0x112   : > { %v8802_v45 = vsel %vm7735_vm5, %v4622_v32, %v4623_v57  ;;  %v5880_v53 = vrot.slane %v5864_v14, 9  ;;  %v4634_v46 = vrot.slane %v9358_v16, 5  ;;  %v4637_v30 = vrot.slane %v9359_v29, 5 }
 0x113   : > { %v5910_v8 = vcombine.low %v8790_v61, %v8802_v45  ;;  %v8813_v20 = vsel %vm7735_vm5, %v4629_v33, %v4630_v3  ;;  %v5881_v7 = vrot.slane %v5865_v28, 9  ;;  %v4644_v0 = vrot.slane %v9361_v4, 5  ;;  %v9363_v28 = vld [vmem:[#allocation14_spill] sm:$0xff]  ;;  %v5571_v61 = vld [vmem:[%s7457_s6 + $0x90] sm:$0xf]  ;;  %v7191_v45 = vld [vmem:[%s7457_s6 + $0xa8] sm:$0xff]  }
 0x114   : > { %6707 = vmatpush3.bf16.msra.mxu0 %v7179_v2  ;;  %v4641_v2 = vrot.slane %v9360_v52, 5  ;;  %v5911_v54 = vcombine.low %v8796_v63, %v8813_v20  ;;  %v8820_v41 = vsel %vm7735_vm5, %v5880_v53, %v4634_v46  ;;  %v4636_v1 = vrot.slane %v4634_v46, 4  ;;  %v9364_v53 = vld [vmem:[#allocation5_spill] sm:$0xff]  ;;  %v7255_v63 = vld [vmem:[%s7457_s6 + $0x8c] sm:$0x1] }
 0x115   : > { %6708 = vmatprep.subr.bf16.mxu0 %v7182_v6  ;;  %v8829_v44 = vrot.slane %v4157_v23, 4  ;;  %v8842_v36 = vcombine.low %v4097_v47, %v4107_v34  ;;  %v4139_v62 = vor.u32 %v8763_v19, %v8761_v59  ;;  %v5866_v23 = vld [vmem:[%s7457_s6 + $0x78] sm:$0xe]  ;;  %v8854_v57 = vrot.slane %v4152_v12, 5  ;;  %v5815_v12 = vld [vmem:[%s7457_s6 + $0xcc] sm:$0xf] }
 0x116   : > { %6677 = vmatmul.mubr.bf16.gmra.mrb[12].mxu0 %v5841_v24  ;;  %v8831_v24 = vrot.slane %v4160_v22, 5  ;;  %v8835_v15 = vsel %vm7735_vm5, %v5881_v7, %v4641_v2  ;;  %v4643_v55 = vrot.slane %v4641_v2, 4  ;;  %v8852_v22 = vcombine.low %v4121_v38, %v4131_v18  ;;  %v5565_v47 = vld [vmem:[%s7457_s6 + $0x78] sm:$0xf]  ;;  %v9362_v18 = vld [vmem:[#allocation11_spill] sm:$0xff] }
 0x117   : > { %6453 = vmatmul.mubr.bf16.gmra.mrb[28].mxu1 %v5457_v48  ;;  %6680 = vmatprep.mubr.bf16.mxu0 %v5842_v42  ;;  %v4170_v48 = vshrl.u32 %v8776_v51, 16  ;;  %v8849_v42 = vsel %vm7735_vm5, %v4636_v1, %v4637_v30  ;;  %v4149_v34 = vor.u32 %v8786_v5, %v8765_v49  ;;  %v8865_v59 = vrot.slane %v4166_v31, 5  ;;  %v8879_v31 = vld [vmem:[%s7457_s6 + $0xd0] sm:$0xf]  ;;  %v9365_v1 = vld [vmem:[#allocation12_spill] sm:$0xff] }
 0x118   : > { %6472 = vmatprep.mubr.bf16.mxu1 %v7174_v13  ;;  %6709 = vmatpush3.bf16.msra.mxu0 %v7182_v6  ;;  %v5912_v17 = vcombine.low %v8820_v41, %v8849_v42  ;;  %v8860_v43 = vsel %vm7735_vm5, %v4643_v55, %v4644_v0  ;;  %v4176_v19 = vshll.u32 %v8827_v26, 16  ;;  %v5867_v6 = vld [vmem:[%s7457_s6 + $0x84] sm:$0xe]  ;;  %v4163_v60 = vor.u32 %v8831_v24, %v8829_v44 }
 0x119   : > { %6710 = vmatprep.subr.bf16.mxu0 %v7185_v56  ;;  %v5913_v38 = vcombine.low %v8835_v15, %v8860_v43  ;;  %v5882_v14 = vrot.slane %v5866_v23, 9  ;;  %v4648_v32 = vrot.slane %v9362_v18, 5  ;;  %v4651_v33 = vrot.slane %v9363_v28, 5  ;;  %v9366_v24 = vld [vmem:[#allocation15_spill] sm:$0xff] }
 0x11a   : > { %v4172_v5 = vrot.slane %v4170_v48, 4  ;;  %v2398_v3 = vshrl.u32 %v5565_v47, 16  ;;  %v2401_v13 = vshll.u32 %v5565_v47, 16  ;;  %v2420_v16 = vsel %vm7489_vm2, %v8664_v50, %v9364_v53 }
 0x11b   : > { %v4181_v46 = vshrl.u32 %v5815_v12, 16  ;;  %v8887_v29 = vsel %vm7735_vm5, %v5882_v14, %v4648_v32  ;;  %v4650_v30 = vrot.slane %v4648_v32, 4  ;;  %v5883_v7 = vrot.slane %v5867_v6, 9  ;;  %v7235_v6 = vld [vmem:[%s9301_s1 + $0x108] sm:$0xff]  }
 0x11c   : > { %6711 = vmatpush3.bf16.msra.mxu0 %v7185_v56  ;;  %v4184_v52 = vshll.u32 %v5815_v12, 16  ;;  %v2400_v2 = vrot.slane %v2398_v3, 4  ;;  %v2403_v56 = vrot.slane %v2401_v13, 5  ;;  %v4655_v4 = vrot.slane %v9365_v1, 5  ;;  %v5868_v12 = vld [vmem:[%s7457_s6 + $0x90] sm:$0xe] }
 0x11d   : > { %v4190_v50 = vshll.u32 %v8879_v31, 16  ;;  %v4194_v0 = vshrl.u32 %v8879_v31, 16  ;;  %v8896_v44 = vsel %vm7735_vm5, %v4650_v30, %v4651_v33  ;;  %v4658_v55 = vrot.slane %v9366_v24, 5  ;;  %v7178_v3 = vld [vmem:[%s7457_s6 + $0x30] sm:$0xff]  }
 0x11e   : > { %6681 = vmatmul.mubr.bf16.gmra.mrb[16].mxu0 %v8734_v58  ;;  %v9367_v58 = vld [vmem:[#allocation18_spill] sm:$0xff]  ;;  %v4173_v48 = vor.u32 %v4172_v5, %v8865_v59  ;;  %v2404_v23 = vor.u32 %v2403_v56, %v2400_v2  ;;  %v4657_v47 = vrot.slane %v4655_v4, 4  ;;  %v4150_v14 = vrot.slane %v4149_v34, 4  ;;  %v8917_v13 = vld [vmem:[%s7457_s6 + $0xd4] sm:$0x1] }
 0x11f   : > { %6473 = vmatmul.mubr.bf16.vlgmr.msra.gmra.mrb[0].mxu1 %v7175_v40  ;;  %6684 = vmatprep.mubr.bf16.mxu0 %v8736_v35  ;;  %v5914_v35 = vcombine.low %v8887_v29, %v8896_v44  ;;  %v4140_v40 = vrot.slane %v4139_v62, 4  ;;  %v4178_v18 = vrot.slane %v4176_v19, 5  ;;  %v8909_v32 = vsel %vm7735_vm5, %v5883_v7, %v4655_v4  ;;  %v7180_v19 = vld [vmem:[%s7457_s6 + $0x3c] sm:$0xff]   ;;  %v9368_v2 = vld [vmem:[#allocation13_spill] sm:$0xff] }
 0x120   : > { %6752 = vmatpush3.bf16.msra.mxu1 %v9367_v58  ;;  %6476 = vmatprep.mubr.bf16.mxu1 %v7177_v39  ;;  %v4183_v28 = vrot.slane %v4181_v46, 4  ;;  %v4186_v33 = vrot.slane %v4184_v52, 5  ;;  %v2405_v39 = vrot.slane %v2404_v23, 4  ;;  %v8913_v5 = vsel %vm7735_vm5, %v4657_v47, %v4658_v55  ;;  %v7236_v1 = vld [vmem:[%s9301_s1 + $0x110] sm:$0xff]   ;;  %v7237_v47 = vld [vmem:[%s7457_s6 + $0x1c] sm:$0xf] }
 0x121   : > { %6745 = vmatprep.subr.bf16.mxu1 %v7235_v6  ;;  %v8919_v53 = vrot.slane %v4190_v50, 5  ;;  %v4196_v30 = vrot.slane %v4194_v0, 4  ;;  %v5915_v62 = vcombine.low %v8909_v32, %v8913_v5  ;;  %v5884_v34 = vrot.slane %v5868_v12, 9 }
 0x122   : > { %v4164_v7 = vrot.slane %v4163_v60, 4  ;;  %v4174_v46 = vrot.slane %v4173_v48, 4  ;;  %v2410_v52 = vsel %vm7489_vm2, %v2405_v39, %v8065_v11  ;;  %v4662_v56 = vrot.slane %v9368_v2, 5  ;;  %v9369_v11 = vld [vmem:[#allocation17_spill] sm:$0xff]  ;;  %v7181_v39 = vld [vmem:[%s7457_s6 + $0x48] sm:$0xff]  }
 0x123   : > { %v4145_v4 = vsel %vm7489_vm2, %v4140_v40, %v8765_v49  ;;  %v4155_v60 = vsel %vm7489_vm2, %v4150_v14, %v8854_v57  ;;  %v8937_v50 = vcombine.low %v2410_v52, %v2420_v16  ;;  %v4665_v0 = vrot.slane %v9369_v11, 5  ;;  %v5858_v57 = vld [vmem:[%s7457_s6 + $0x18] sm:$0xe]  ;;  %v5869_v16 = vld [vmem:[%s7457_s6 + $0x9c] sm:$0xe] }
 0x124   : > { %6753 = vmatpush3.bf16.msra.mxu1 %v7235_v6  ;;  %v4187_v24 = vor.u32 %v4186_v33, %v4183_v28  ;;  %v4200_v55 = vshll.u32 %v8917_v13, 16  ;;  %v8944_v58 = vsel %vm7735_vm5, %v5884_v34, %v4662_v56  ;;  %v4664_v48 = vrot.slane %v4662_v56, 4  ;;  %v7238_v40 = vld [vmem:[%s9301_s1 + $0x118] sm:$0xff]   ;;  %v9370_v34 = vld [vmem:[#allocation16_spill] sm:$0xff]  ;;  %v7239_v2 = vld [vmem:[%s7457_s6 + $0x20] sm:$0x1] }
 0x125   : > { %6746 = vmatprep.subr.bf16.mxu1 %v7236_v1  ;;  %v4197_v49 = vor.u32 %v4196_v30, %v8919_v53  ;;  %v4179_v23 = vsel %vm7489_vm2, %v4174_v46, %v4178_v18  ;;  %v4592_v12 = vrot.slane %v7237_v47, 5  ;;  %v5847_v6 = vcombine.low %v4145_v4, %v4155_v60  ;;  %v7183_v46 = vld [vmem:[%s7457_s6 + $0x54] sm:$0xff]   ;;  %v5870_v11 = vld [vmem:[%s7457_s6 + $0xa8] sm:$0xe] }
 0x126   : > { %6685 = vmatmul.mubr.bf16.gmra.mrb[20].mxu0 %v8842_v36  ;;  %v4169_v36 = vsel %vm7489_vm2, %v4164_v7, %v8865_v59  ;;  %v4188_v14 = vrot.slane %v4187_v24, 4  ;;  %v4202_v28 = vrot.slane %v4200_v55, 5  ;;  %v5874_v18 = vrot.slane %v5858_v57, 9  ;;  %v5859_v55 = vld [vmem:[%s7457_s6 + $0x24] sm:$0xe] }
 0x127   : > { %6477 = vmatmul.mubr.bf16.gmra.mrb[4].mxu1 %v7178_v3  ;;  %6688 = vmatprep.mubr.bf16.mxu0 %v8852_v22  ;;  %v8958_v22 = vsel %vm7735_vm5, %v4664_v48, %v4665_v0  ;;  %v5885_v33 = vrot.slane %v5869_v16, 9  ;;  %v5848_v3 = vcombine.low %v4169_v36, %v4179_v23  ;;  %v4198_v30 = vrot.slane %v4197_v49, 4  ;;  %v7241_v48 = vld [vmem:[%s7457_s6 + $0x28] sm:$0xf]  ;;  %v7242_v36 = vld [vmem:[%s7457_s6 + $0x34] sm:$0xf] }
 0x128   : > { %6480 = vmatprep.mubr.bf16.mxu1 %v7180_v19  ;;  %6754 = vmatpush3.bf16.msra.mxu1 %v7236_v1  ;;  %v5916_v59 = vcombine.low %v8944_v58, %v8958_v22  ;;  %v4669_v19 = vrot.slane %v9370_v34, 5  ;;  %v4672_v7 = vrot.slane %v8647_v25, 5  ;;  %v4594_v52 = vrot.slane %v4592_v12, 4  ;;  %v7240_v1 = vld [vmem:[%s9301_s1 + $0x120] sm:$0xff]  }
 0x129   : > { %6747 = vmatprep.subr.bf16.mxu1 %v7238_v40  ;;  %v4595_v56 = vrot.slane %v7239_v2, 5  ;;  %v4593_v25 = vsel %vm7735_vm5, %v5874_v18, %v4592_v12  ;;  %v4193_v0 = vsel %vm7489_vm2, %v4188_v14, %v8919_v53  ;;  %v4203_v24 = vsel %vm7489_vm2, %v4198_v30, %v4202_v28  ;;  %v5860_v12 = vld [vmem:[%s7457_s6 + $0x30] sm:$0xe]  ;;  %v7184_v30 = vld [vmem:[%s7457_s6 + $0x60] sm:$0xff]  }
 0x12a   : > { %v8975_v4 = vsel %vm7735_vm5, %v5885_v33, %v4669_v19  ;;  %v4671_v60 = vrot.slane %v4669_v19, 4  ;;  %v4599_v49 = vrot.slane %v7241_v48, 5  ;;  %v4606_v23 = vrot.slane %v7242_v36, 5  ;;  %v7244_v33 = vld [vmem:[%s7457_s6 + $0x2c] sm:$0x1] }
 0x12b   : > { %v4596_v16 = vsel %vm7735_vm5, %v4594_v52, %v4595_v56  ;;  %v5886_v47 = vrot.slane %v5870_v11, 9  ;;  %v5849_v28 = vcombine.low %v4193_v0, %v4203_v24  ;;  %v5875_v18 = vrot.slane %v5859_v55, 9  ;;  %v7186_v52 = vld [vmem:[%s7457_s6 + $0x6c] sm:$0xff]   ;;  %v5871_v11 = vld [vmem:[%s7457_s6 + $0xb4] sm:$0xe] }
 0x12c   : > { %6755 = vmatpush3.bf16.msra.mxu1 %v7238_v40  ;;  %v8989_v57 = vsel %vm7735_vm5, %v4671_v60, %v4672_v7  ;;  %v9371_v40 = vld [vmem:[#allocation19_spill] sm:$0xff]  ;;  %v5906_v34 = vcombine.low %v4593_v25, %v4596_v16  ;;  %v4601_v19 = vrot.slane %v4599_v49, 4  ;;  %v5876_v2 = vrot.slane %v5860_v12, 9  ;;  %v5861_v0 = vld [vmem:[%s7457_s6 + $0x3c] sm:$0xe] }
 0x12d   : > { %6748 = vmatprep.subr.bf16.mxu1 %v7240_v1  ;;  %v5917_v53 = vcombine.low %v8975_v4, %v8989_v57  ;;  %v4676_v14 = vrot.slane %v9371_v40, 5  ;;  %v4608_v56 = vrot.slane %v4606_v23, 4  ;;  %v7246_v24 = vld [vmem:[%s7457_s6 + $0x40] sm:$0xf]  ;;  %v4600_v48 = vsel %vm7735_vm5, %v5875_v18, %v4599_v49  ;;  %v7248_v18 = vld [vmem:[%s7457_s6 + $0x44] sm:$0x1] }
 0x12e   : > { %6689 = vmatmul.mubr.bf16.gmra.mrb[24].mxu0 %v5847_v6  ;;  %v7243_v6 = vld [vmem:[%s9301_s1 + $0x128] sm:$0xff]   ;;  %v4613_v55 = vrot.slane %v7246_v24, 5  ;;  %v4683_v12 = vrot.slane %v8694_v10, 5  ;;  %v4607_v49 = vsel %vm7735_vm5, %v5876_v2, %v4606_v23  ;;  %v7249_v10 = vld [vmem:[%s9301_s1 + $0x138] sm:$0xff]   ;;  %v5872_v23 = vld [vmem:[%s7457_s6 + $0xc0] sm:$0xe] }
 0x12f   : > { %6481 = vmatmul.mubr.bf16.gmra.mrb[8].mxu1 %v7181_v39  ;;  %6692 = vmatprep.mubr.bf16.mxu0 %v5848_v3  ;;  %v4602_v39 = vrot.slane %v7244_v33, 5  ;;  %v4679_v3 = vrot.slane %v8682_v21, 5  ;;  %v9006_v7 = vsel %vm7735_vm5, %v5886_v47, %v4676_v14  ;;  %v7247_v21 = vld [vmem:[%s9301_s1 + $0x130] sm:$0xff]   ;;  %v5887_v47 = vrot.slane %v5871_v11, 9 }
 0x130   : > { %6484 = vmatprep.mubr.bf16.mxu1 %v7183_v46  ;;  %6756 = vmatpush3.bf16.msra.mxu1 %v7240_v1  ;;  %v4678_v46 = vrot.slane %v4676_v14, 4  ;;  %v7245_v1 = vld [vmem:[%s7457_s6 + $0x38] sm:$0x1]  ;;  %v5877_v14 = vrot.slane %v5861_v0, 9  ;;  %v4616_v33 = vrot.slane %v7248_v18, 5  ;;  %v4690_v11 = vrot.slane %v8776_v51, 5 }
 0x131   : > { %6749 = vmatprep.subr.bf16.mxu1 %v7243_v6  ;;  %v4609_v60 = vrot.slane %v7245_v1, 5  ;;  %v4603_v36 = vsel %vm7735_vm5, %v4601_v19, %v4602_v39  ;;  %v4685_v39 = vrot.slane %v4683_v12, 4  ;;  %v5562_v19 = vld [vmem:[%s7457_s6 + $0x6c] sm:$0xf]  ;;  %v7189_v18 = vld [vmem:[%s7457_s6 + $0x90] sm:$0xff]   ;;  %v2441_v20 = vshll.u32 %v7255_v63, 16 }
 0x132   : > { %v9018_v25 = vsel %vm7735_vm5, %v4678_v46, %v4679_v3  ;;  %v5907_v3 = vcombine.low %v4600_v48, %v4603_v36  ;;  %v4614_v1 = vsel %vm7735_vm5, %v5877_v14, %v4613_v55  ;;  %v2374_v0 = vshrl.u32 %v5562_v19, 16  ;;  %v5873_v51 = vld [vmem:[%s7457_s6 + $0xcc] sm:$0xe] }
 0x133   : > { %v5918_v16 = vcombine.low %v9006_v7, %v9018_v25  ;;  %v4610_v40 = vsel %vm7735_vm5, %v4608_v56, %v4609_v60  ;;  %v5888_v56 = vrot.slane %v5872_v23, 9  ;;  %v2377_v24 = vshll.u32 %v5562_v19, 16 }
 0x134   : > { %6757 = vmatpush3.bf16.msra.mxu1 %v7243_v6  ;;  %v4686_v6 = vrot.slane %v8715_v27, 5  ;;  %v9038_v27 = vsel %vm7735_vm5, %v5887_v47, %v4683_v12  ;;  %v4693_v36 = vrot.slane %v8827_v26, 5  ;;  %v4692_v12 = vrot.slane %v4690_v11, 4 }
 0x135   : > { %6750 = vmatprep.subr.bf16.mxu1 %v7247_v21  ;;  %v2379_v26 = vrot.slane %v2377_v24, 5  ;;  %v4700_v23 = vrot.slane %v8917_v13, 5 }
 0x136   : > { %6693 = vmatmul.mubr.bf16.gmra.mrb[28].mxu0 %v5849_v28  ;;  %v4615_v28 = vrot.slane %v4613_v55, 4  ;;  %v9045_v46 = vsel %vm7735_vm5, %v4685_v39, %v4686_v6  ;;  %v9059_v55 = vsel %vm7735_vm5, %v5888_v56, %v4690_v11  ;;  %v4697_v39 = vrot.slane %v8879_v31, 5  ;;  %v7251_v56 = vld [vmem:[%s7457_s6 + $0x74] sm:$0x1] }
 0x137   : > { %6485 = vmatmul.mubr.bf16.gmra.mrb[12].mxu1 %v7184_v30  ;;  %6712 = vmatprep.mubr.bf16.mxu0 %v5906_v34  ;;  %v7187_v30 = vld [vmem:[%s7457_s6 + $0x78] sm:$0xff]   ;;  %v5908_v34 = vcombine.low %v4607_v49, %v4610_v40  ;;  %v5919_v2 = vcombine.low %v9038_v27, %v9045_v46  ;;  %v9064_v49 = vsel %vm7735_vm5, %v4692_v12, %v4693_v36  ;;  %v2376_v40 = vrot.slane %v2374_v0, 4  ;;  %v7252_v0 = vld [vmem:[%s7457_s6 + $0x88] sm:$0xf] }
 0x138   : > { %6488 = vmatprep.mubr.bf16.mxu1 %v7186_v52  ;;  %6758 = vmatpush3.bf16.msra.mxu1 %v7247_v21  ;;  %v7188_v52 = vld [vmem:[%s7457_s6 + $0x84] sm:$0xff]   ;;  %v4617_v60 = vsel %vm7735_vm5, %v4615_v28, %v4616_v33  ;;  %v7250_v21 = vld [vmem:[%s7457_s6 + $0x70] sm:$0xf]  ;;  %v5920_v28 = vcombine.low %v9059_v55, %v9064_v49  ;;  %v4699_v19 = vrot.slane %v4697_v39, 4  ;;  %v2431_v24 = vshll.u32 %v7252_v0, 16 }
 0x139   : > { %6751 = vmatprep.subr.bf16.mxu1 %v7249_v10  ;;  %v2383_v48 = vshll.u32 %v7250_v21, 16  ;;  %v2387_v47 = vshrl.u32 %v7250_v21, 16  ;;  %v5909_v6 = vcombine.low %v4614_v1, %v4617_v60  ;;  %v2393_v1 = vshll.u32 %v7251_v56, 16 }
 0x13a   : > { %v9086_v11 = vsel %vm7735_vm5, %v4699_v19, %v4700_v23  ;;  %v2435_v21 = vshrl.u32 %v7252_v0, 16  ;;  %v7254_v19 = vld [vmem:[%s7457_s6 + $0xa0] sm:$0xf] }
 0x13b   : > { %v9066_v14 = vrot.slane %v2383_v48, 5  ;;  %v2389_v33 = vrot.slane %v2387_v47, 4  ;;  %v2483_v56 = vshrl.u32 %v7254_v19, 16 }
 0x13c   : > { %6759 = vmatpush3.bf16.msra.mxu1 %v7249_v10  ;;  %v5889_v10 = vrot.slane %v5873_v51, 9 }
 0x13d   : > { %v2390_v31 = vor.u32 %v2389_v33, %v9066_v14  ;;  %v2449_v33 = vshll.u32 %v5571_v61, 16 }
 0x13e   : > { %6713 = vmatmul.mubr.bf16.vlgmr.msra.gmra.mrb[0].mxu0 %v5907_v3  ;;  %v7190_v3 = vld [vmem:[%s7457_s6 + $0x9c] sm:$0xff]  }
 0x13f   : > { %6489 = vmatmul.mubr.bf16.gmra.mrb[16].mxu1 %v7187_v30  ;;  %6716 = vmatprep.mubr.bf16.mxu0 %v5908_v34  ;;  %v5568_v30 = vld [vmem:[%s7457_s6 + $0x84] sm:$0xf]  ;;  %v9077_v34 = vsel %vm7735_vm5, %v5889_v10, %v4697_v39  ;;  %v2391_v47 = vrot.slane %v2390_v31, 4  ;;  %v7253_v10 = vld [vmem:[%s7457_s6 + $0x94] sm:$0xf]  ;;  %v2451_v0 = vrot.slane %v2449_v33, 5 }
 0x140   : > { %6492 = vmatprep.mubr.bf16.mxu1 %v7188_v52  ;;  %v2380_v52 = vor.u32 %v2379_v26, %v2376_v40  ;;  %v2422_v13 = vshrl.u32 %v5568_v30, 16  ;;  %v2425_v60 = vshll.u32 %v5568_v30, 16  ;;  %v5921_v48 = vcombine.low %v9077_v34, %v9086_v11 }
 0x141   : > { %v9095_v40 = vrot.slane %v2431_v24, 5  ;;  %v2437_v26 = vrot.slane %v2435_v21, 4  ;;  %v2455_v39 = vshll.u32 %v7253_v10, 16  ;;  %v2459_v23 = vshrl.u32 %v7253_v10, 16  ;;  %v7257_v10 = vld [vmem:[%s7457_s6 + $0xa4] sm:$0x1] }
 0x142   : > { %v2381_v36 = vrot.slane %v2380_v52, 4  ;;  %v2424_v12 = vrot.slane %v2422_v13, 4  ;;  %v2427_v51 = vrot.slane %v2425_v60, 5  ;;  %v2479_v52 = vshll.u32 %v7254_v19, 16  ;;  %v7258_v19 = vld [vmem:[%s7457_s6 + $0xac] sm:$0xf] }
 0x143   : > { %v2438_v13 = vor.u32 %v2437_v26, %v9095_v40  ;;  %v9112_v41 = vrot.slane %v2455_v39, 5  ;;  %v2461_v42 = vrot.slane %v2459_v23, 4  ;;  %v2485_v21 = vrot.slane %v2483_v56, 4  ;;  %v5580_v23 = vld [vmem:[%s7457_s6 + $0xb4] sm:$0xf] }
 0x144   : > { %v2489_v39 = vshll.u32 %v7257_v10, 16  ;;  %v2507_v15 = vshrl.u32 %v7258_v19, 16  ;;  %v2521_v63 = vshll.u32 %v5580_v23, 16 }
 0x145   : > { %v2462_v26 = vor.u32 %v2461_v42, %v9112_v41 }
 0x146   : > { %6717 = vmatmul.mubr.bf16.gmra.mrb[4].mxu0 %v5909_v6  ;;  %v5574_v6 = vld [vmem:[%s7457_s6 + $0x9c] sm:$0xf] }
 0x147   : > { %6493 = vmatmul.mubr.bf16.gmra.mrb[20].mxu1 %v7189_v18  ;;  %6720 = vmatprep.mubr.bf16.mxu0 %v5910_v8  ;;  %v2395_v8 = vrot.slane %v2393_v1, 5  ;;  %v2446_v18 = vshrl.u32 %v5571_v61, 16  ;;  %v2473_v30 = vshll.u32 %v5574_v6, 16  ;;  %v2386_v1 = vsel %vm7489_vm2, %v2381_v36, %v9066_v14  ;;  %v7193_v61 = vld [vmem:[%s7457_s6 + $0xc0] sm:$0xff]  }
 0x148   : > { %6496 = vmatprep.mubr.bf16.mxu1 %v7190_v3  ;;  %v2470_v3 = vshrl.u32 %v5574_v6, 16  ;;  %v9114_v14 = vrot.slane %v2479_v52, 5  ;;  %v2503_v52 = vshll.u32 %v7258_v19, 16 }
 0x149   : > { %v2396_v31 = vsel %vm7489_vm2, %v2391_v47, %v2395_v8  ;;  %v2448_v60 = vrot.slane %v2446_v18, 4  ;;  %v2475_v24 = vrot.slane %v2473_v30, 5  ;;  %v2443_v8 = vrot.slane %v2441_v20, 5  ;;  %v7259_v20 = vld [vmem:[%s7457_s6 + $0xb8] sm:$0xf] }
 0x14a   : > { %v2439_v47 = vrot.slane %v2438_v13, 4  ;;  %v2486_v33 = vor.u32 %v2485_v21, %v9114_v14  ;;  %v2527_v29 = vshll.u32 %v7259_v20, 16  ;;  %v2531_v44 = vshrl.u32 %v7259_v20, 16 }
 0x14c   : > { %v2487_v13 = vrot.slane %v2486_v33, 4 }
 0x14e   : > { %6721 = vmatmul.mubr.bf16.gmra.mrb[8].mxu0 %v5911_v54  ;;  %v2428_v54 = vor.u32 %v2427_v51, %v2424_v12  ;;  %v2452_v12 = vor.u32 %v2451_v0, %v2448_v60  ;;  %v7256_v51 = vld [vmem:[%s7457_s6 + $0x98] sm:$0x1]  ;;  %v2491_v60 = vrot.slane %v2489_v39, 5 }
 0x14f   : > { %6497 = vmatmul.mubr.bf16.gmra.mrb[24].mxu1 %v7191_v45  ;;  %6724 = vmatprep.mubr.bf16.mxu0 %v5912_v17  ;;  %v2472_v17 = vrot.slane %v2470_v3, 4  ;;  %v5610_v45 = vcombine.low %v2386_v1, %v2396_v31  ;;  %v2465_v6 = vshll.u32 %v7256_v51, 16  ;;  %v2518_v31 = vshrl.u32 %v5580_v23, 16 }
 0x150   : > { %6500 = vmatprep.mubr.bf16.mxu1 %v7192_v9  ;;  %v2429_v36 = vrot.slane %v2428_v54, 4  ;;  %v5577_v9 = vld [vmem:[%s7457_s6 + $0xa8] sm:$0xf]  ;;  %v2453_v56 = vrot.slane %v2452_v12, 4  ;;  %v2492_v32 = vsel %vm7489_vm2, %v2487_v13, %v2491_v60 }
 0x151   : > { %v2476_v18 = vor.u32 %v2475_v24, %v2472_v17  ;;  %v2494_v3 = vshrl.u32 %v5577_v9, 16  ;;  %v2497_v30 = vshll.u32 %v5577_v9, 16  ;;  %v2467_v1 = vrot.slane %v2465_v6, 5 }
 0x152   : > { %v2434_v43 = vsel %vm7489_vm2, %v2429_v36, %v9095_v40  ;;  %v2505_v17 = vrot.slane %v2503_v52, 5  ;;  %v2509_v24 = vrot.slane %v2507_v15, 4  ;;  %v2520_v21 = vrot.slane %v2518_v31, 4  ;;  %v5583_v36 = vld [vmem:[%s7457_s6 + $0xc0] sm:$0xf] }
 0x153   : > { %v2477_v54 = vrot.slane %v2476_v18, 4  ;;  %v2496_v0 = vrot.slane %v2494_v3, 4  ;;  %v2499_v42 = vrot.slane %v2497_v30, 5  ;;  %v2542_v9 = vshrl.u32 %v5583_v36, 16  ;;  %v7261_v18 = vld [vmem:[%s7457_s6 + $0xc4] sm:$0xf] }
 0x154   : > { %v2551_v33 = vshll.u32 %v7261_v18, 16 }
 0x155   : > { %v2482_v51 = vsel %vm7489_vm2, %v2477_v54, %v9114_v14  ;;  %v2500_v5 = vor.u32 %v2499_v42, %v2496_v0  ;;  %v2555_v14 = vshrl.u32 %v7261_v18, 16  ;;  %v2544_v19 = vrot.slane %v2542_v9, 4 }
 0x156   : > { %6725 = vmatmul.mubr.bf16.gmra.mrb[12].mxu0 %v5913_v38  ;;  %v2444_v38 = vsel %vm7489_vm2, %v2439_v47, %v2443_v8  ;;  %v2533_v8 = vrot.slane %v2531_v44, 4  ;;  %v2458_v47 = vsel %vm7489_vm2, %v2453_v56, %v9112_v41  ;;  %v7260_v41 = vld [vmem:[%s7457_s6 + $0xb0] sm:$0x1]  ;;  %v5614_v58 = vcombine.low %v2482_v51, %v2492_v32  ;;  %v7263_v44 = vld [vmem:[%s7457_s6 + $0xc8] sm:$0x1] }
 0x157   : > { %6501 = vmatmul.mubr.bf16.gmra.mrb[28].mxu1 %v7193_v61  ;;  %6728 = vmatprep.mubr.bf16.mxu0 %v5914_v35  ;;  %v2463_v35 = vrot.slane %v2462_v26, 4  ;;  %v5612_v40 = vcombine.low %v2434_v43, %v2444_v38  ;;  %v2523_v61 = vrot.slane %v2521_v63, 5  ;;  %v2513_v6 = vshll.u32 %v7260_v41, 16 }
 0x158   : > { %6536 = vmatprep.mubr.bf16.mxu1 %v5610_v45  ;;  %v2529_v45 = vrot.slane %v2527_v29, 5  ;;  %v2545_v26 = vshll.u32 %v5583_v36, 16  ;;  %v2501_v22 = vrot.slane %v2500_v5, 4  ;;  %v2553_v15 = vrot.slane %v2551_v33, 5 }
 0x159   : > { %v2468_v12 = vsel %vm7489_vm2, %v2463_v35, %v2467_v1  ;;  %v2524_v10 = vor.u32 %v2523_v61, %v2520_v21  ;;  %v2515_v30 = vrot.slane %v2513_v6, 5  ;;  %v2557_v43 = vrot.slane %v2555_v14, 4 }
 0x15a   : > { %v2534_v39 = vor.u32 %v2533_v8, %v2529_v45  ;;  %v5613_v3 = vcombine.low %v2458_v47, %v2468_v12  ;;  %v2547_v52 = vrot.slane %v2545_v26, 5  ;;  %v2506_v31 = vsel %vm7489_vm2, %v2501_v22, %v2505_v17  ;;  %v9189_v47 = vld [vmem:[%s9302_s2] ss:$0 sm:$0xff] }
 0x15b   : > { %v2525_v38 = vrot.slane %v2524_v10, 4  ;;  %v2558_v29 = vor.u32 %v2557_v43, %v2553_v15  ;;  %v2561_v35 = vshll.u32 %v7263_v44, 16 }
 0x15c   : > { %v2535_v56 = vrot.slane %v2534_v39, 4  ;;  %v2548_v20 = vor.u32 %v2547_v52, %v2544_v19 }
 0x15d   : > { %v2530_v4 = vsel %vm7489_vm2, %v2525_v38, %v2529_v45  ;;  %v2563_v54 = vrot.slane %v2561_v35, 5 }
 0x15e   : > { %6729 = vmatmul.mubr.bf16.gmra.mrb[16].mxu0 %v5915_v62  ;;  %v2510_v62 = vor.u32 %v2509_v24, %v2505_v17  ;;  %v2549_v25 = vrot.slane %v2548_v20, 4 }
 0x15f   : > { %6537 = vmatmul.mubr.bf16.vlgmr.msra.gmra.mrb[16].mxu1 %v8937_v50  ;;  %6732 = vmatprep.mubr.bf16.mxu0 %v5916_v59  ;;  %v7262_v50 = vld [vmem:[%s7457_s6 + $0xbc] sm:$0x1]  ;;  %s199_s6 = sand.u32 1, %s7326_s13  }
 0x160   : > { %6540 = vmatprep.mubr.bf16.mxu1 %v5612_v40  ;;  %v2537_v23 = vshll.u32 %v7262_v50, 16  ;;  %v2511_v59 = vrot.slane %v2510_v62, 4  ;;  %v2554_v13 = vsel %vm7489_vm2, %v2549_v25, %v2553_v15  ;;  %s5344_s4 = sshll.u32 %s199_s6, 7  ;;  %s9254_s15 = scalar_lea.sflag [#allocation3], %s199_s6 }
 0x161   : > { %s9197_s5 = scalar_lea.vmem [#allocation2], %s5344_s4 }
 0x162   : > { %v2539_v1 = vrot.slane %v2537_v23, 5  ;;  %v2516_v63 = vsel %vm7489_vm2, %v2511_v59, %v2515_v30  ;;  %s5238_s8 = sshll.u32 %s9197_s5, 4  ;;  %s9248_s8 = int_to_ptr.vmem [resolvable:$true] %s5238_s8 }
 0x163   : > { %s7264_s18 = scalar_lea.vmem %s9248_s8, 2048  ;;  %p7271_p1 = scmp.lt.s32.totalorder %s9248_s8, %s7269_s21 }
 0x164   : > { %v2540_v57 = vsel %vm7489_vm2, %v2535_v56, %v2539_v1  ;;  %p7265_p12 = scmp.ne.s32.totalorder %s9248_s8, %s7264_s18  ;;  %p7272_p2 = scmp.lt.s32.totalorder %s7270_s23, %s7264_s18 }
 0x165   : > { %v5616_v7 = vcombine.low %v2530_v4, %v2540_v57 }
 0x166   : > { %6733 = vmatmul.mubr.bf16.gmra.mrb[20].mxu0 %v5917_v53  ;;  %v5615_v53 = vcombine.low %v2506_v31, %v2516_v63  ;;  %p7266_p13 = pnand %p7265_p12, %p7407_p4  ;;  %p7273_p3 = por %p7272_p2, %p7271_p1 }
 0x167   : > { %6541 = vmatmul.mubr.bf16.gmra.mrb[20].mxu1 %v5613_v3  ;;  %6736 = vmatprep.mubr.bf16.mxu0 %v5918_v16  ;;  %v2559_v16 = vrot.slane %v2558_v29, 4 }
 0x168   : > { %6544 = vmatprep.mubr.bf16.mxu1 %v5614_v58  ;;  %p7267_p0 = pneg %p7266_p13 }
 0x169   : > { %v2564_v60 = vsel %vm7489_vm2, %v2559_v16, %v2563_v54 }
 0x16a   : > { %v5617_v0 = vcombine.low %v2554_v13, %v2564_v60  ;;  %p7274_p5 = pnand %p7273_p3, %p7267_p0 }
 0x16e   : > { %6737 = vmatmul.mubr.bf16.gmra.mrb[24].mxu0 %v5919_v2 }
 0x16f   : > { %6545 = vmatmul.mubr.bf16.gmra.mrb[24].mxu1 %v5615_v53  ;;  %6740 = vmatprep.mubr.bf16.mxu0 %v5920_v28 }
 0x170   : > { %6548 = vmatprep.mubr.bf16.mxu1 %v5616_v7 }
 0x176   : > { %6741 = vmatmul.mubr.bf16.gmra.mrb[28].mxu0 %v5921_v48 }
 0x177   : > { %6549 = vmatmul.mubr.bf16.gmra.mrb[28].mxu1 %v5617_v0 }
 0x1f2   : > { %v6474_v27 = vpop.f32.mrb[0].mxu1 }
 0x1f3   : > { %v1974_v46 = vpop.f32.mrb[1].mxu1 }
 0x1f4   : > { %v6475_v2 = vpop.f32.mrb[2].mxu1 }
 0x1f5   : > { %v1977_v42 = vpop.f32.mrb[3].mxu1 }
 0x1fa   : > { %v6478_v55 = vpop.f32.mrb[4].mxu1 }
 0x1fb   : > { %v1990_v49 = vpop.f32.mrb[5].mxu1 }
 0x1fc   : > { %v6479_v28 = vpop.f32.mrb[6].mxu1 }
 0x1fd   : > { %v1993_v17 = vpop.f32.mrb[7].mxu1 }
 0x202   : > { %v6482_v24 = vpop.f32.mrb[8].mxu1 }
 0x203   : > { %v2006_v40 = vpop.f32.mrb[9].mxu1 }
 0x204   : > { %v6483_v37 = vpop.f32.mrb[10].mxu1 }
 0x205   : > { %v2009_v21 = vpop.f32.mrb[11].mxu1 }
 0x20a   : > { %v6486_v61 = vpop.f32.mrb[12].mxu1 }
 0x20b   : > { %v2022_v45 = vpop.f32.mrb[13].mxu1 }
 0x20c   : > { %v6487_v8 = vpop.f32.mrb[14].mxu1 }
 0x20d   : > { %v2025_v34 = vpop.f32.mrb[15].mxu1 }
 0x211   : > { %v6714_v11 = vpop.f32.mrb[0].mxu0 }
 0x212   : > { %v6760_v48 = vadd.f32 %v6714_v11, %v6474_v27  ;;  %v4865_v36 = vpop.f32.mrb[1].mxu0 }
 0x213   : > { %v6761_v12 = vadd.f32 %v4865_v36, %v1974_v46  ;;  %v6715_v51 = vpop.f32.mrb[2].mxu0 }
 0x214   : > { %v6762_v32 = vadd.f32 %v6715_v51, %v6475_v2  ;;  %v4868_v5 = vpop.f32.mrb[3].mxu0  ;;  %v5033_v41 = vadd.f32 %v6760_v48, %v9189_v47 }
 0x215   : > { %v6763_v62 = vadd.f32 %v4868_v5, %v1977_v42  ;;  %v5031_v9 = vadd.f32 %v6761_v12, %v9189_v47 }
 0x216   : > { %v5034_v6 = vadd.f32 %v6762_v32, %v9189_v47 }
 0x217   : > { %v5032_v26 = vadd.f32 %v6763_v62, %v9189_v47 }
 0x218   : > { %v6009_v18 = vpack.c.bf16 %v5034_v6, %v5033_v41 }
 0x219   : > { %v6004_v33 = vpack.c.bf16 %v5032_v26, %v5031_v9  ;;  %v6718_v14 = vpop.f32.mrb[4].mxu0 }
 0x21a   : > { %6081 = vst [vmem:[%s9197_s5 + $0x8] sm:$0xff] %v6009_v18   ;;  %v6764_v10 = vadd.f32 %v6718_v14, %v6478_v55  ;;  %v4881_v39 = vpop.f32.mrb[5].mxu0 }
 0x21b   : > { %6005 = vst [vmem:[%s9197_s5] sm:$0xff] %v6004_v33   ;;  %v6765_v50 = vadd.f32 %v4881_v39, %v1990_v49  ;;  %v6719_v23 = vpop.f32.mrb[6].mxu0 }
 0x21c   : > { %v6766_v3 = vadd.f32 %v6719_v23, %v6479_v28  ;;  %v4884_v58 = vpop.f32.mrb[7].mxu0  ;;  %v5037_v59 = vadd.f32 %v6764_v10, %v9189_v47 }
 0x21d   : > { %v6767_v22 = vadd.f32 %v4884_v58, %v1993_v17  ;;  %v5035_v19 = vadd.f32 %v6765_v50, %v9189_v47 }
 0x21e   : > { %v5038_v30 = vadd.f32 %v6766_v3, %v9189_v47 }
 0x21f   : > { %v5036_v52 = vadd.f32 %v6767_v22, %v9189_v47 }
 0x220   : > { %v6019_v15 = vpack.c.bf16 %v5038_v30, %v5037_v59 }
 0x221   : > { %v6014_v43 = vpack.c.bf16 %v5036_v52, %v5035_v19  ;;  %v6722_v38 = vpop.f32.mrb[8].mxu0 }
 0x222   : > { %6083 = vst [vmem:[%s9197_s5 + $0x18] sm:$0xff] %v6019_v15   ;;  %v6768_v56 = vadd.f32 %v6722_v38, %v6482_v24  ;;  %v4897_v1 = vpop.f32.mrb[9].mxu0 }
 0x223   : > { %6082 = vst [vmem:[%s9197_s5 + $0x10] sm:$0xff] %v6014_v43   ;;  %v6769_v31 = vadd.f32 %v4897_v1, %v2006_v40  ;;  %v6723_v63 = vpop.f32.mrb[10].mxu0 }
 0x224   : > { %v6770_v20 = vadd.f32 %v6723_v63, %v6483_v37  ;;  %v4900_v29 = vpop.f32.mrb[11].mxu0  ;;  %v5041_v35 = vadd.f32 %v6768_v56, %v9189_v47 }
 0x225   : > { %v6771_v44 = vadd.f32 %v4900_v29, %v2009_v21  ;;  %v5039_v57 = vadd.f32 %v6769_v31, %v9189_v47 }
 0x226   : > { %v5042_v4 = vadd.f32 %v6770_v20, %v9189_v47 }
 0x227   : > { %v5040_v53 = vadd.f32 %v6771_v44, %v9189_v47 }
 0x228   : > { %v6029_v7 = vpack.c.bf16 %v5042_v4, %v5041_v35 }
 0x229   : > { %v6024_v25 = vpack.c.bf16 %v5040_v53, %v5039_v57  ;;  %v6726_v16 = vpop.f32.mrb[12].mxu0 }
 0x22a   : > { %6085 = vst [vmem:[%s9197_s5 + $0x28] sm:$0xff] %v6029_v7   ;;  %v6772_v54 = vadd.f32 %v6726_v16, %v6486_v61  ;;  %v4913_v13 = vpop.f32.mrb[13].mxu0 }
 0x22b   : > { %6084 = vst [vmem:[%s9197_s5 + $0x20] sm:$0xff] %v6024_v25   ;;  %v6773_v60 = vadd.f32 %v4913_v13, %v2022_v45  ;;  %v6727_v0 = vpop.f32.mrb[14].mxu0 }
 0x22c   : > { %v6774_v27 = vadd.f32 %v6727_v0, %v6487_v8  ;;  %v4916_v46 = vpop.f32.mrb[15].mxu0  ;;  %v5045_v42 = vadd.f32 %v6772_v54, %v9189_v47 }
 0x22d   : > { %v6775_v2 = vadd.f32 %v4916_v46, %v2025_v34  ;;  %v5043_v49 = vadd.f32 %v6773_v60, %v9189_v47 }
 0x22e   : > { %v5046_v55 = vadd.f32 %v6774_v27, %v9189_v47 }
 0x22f   : > { %v5044_v28 = vadd.f32 %v6775_v2, %v9189_v47 }
 0x230   : > { %v6039_v17 = vpack.c.bf16 %v5046_v55, %v5045_v42 }
 0x231   : > { %v6034_v24 = vpack.c.bf16 %v5044_v28, %v5043_v49  ;;  %v6730_v40 = vpop.f32.mrb[16].mxu0 }
 0x232   : > { %6087 = vst [vmem:[%s9197_s5 + $0x38] sm:$0xff] %v6039_v17   ;;  %v6538_v37 = vpop.f32.mrb[16].mxu1  ;;  %v4929_v21 = vpop.f32.mrb[17].mxu0 }
 0x233   : > { %6086 = vst [vmem:[%s9197_s5 + $0x30] sm:$0xff] %v6034_v24   ;;  %v6776_v61 = vadd.f32 %v6730_v40, %v6538_v37  ;;  %v2792_v45 = vpop.f32.mrb[17].mxu1  ;;  %v6731_v8 = vpop.f32.mrb[18].mxu0 }
 0x234   : > { %v6777_v34 = vadd.f32 %v4929_v21, %v2792_v45  ;;  %v6539_v11 = vpop.f32.mrb[18].mxu1  ;;  %v4932_v48 = vpop.f32.mrb[19].mxu0 }
 0x235   : > { %v6778_v36 = vadd.f32 %v6731_v8, %v6539_v11  ;;  %v2795_v12 = vpop.f32.mrb[19].mxu1  ;;  %v5049_v32 = vadd.f32 %v6776_v61, %v9189_v47 }
 0x236   : > { %v6779_v51 = vadd.f32 %v4932_v48, %v2795_v12  ;;  %v5047_v62 = vadd.f32 %v6777_v34, %v9189_v47 }
 0x237   : > { %v5050_v5 = vadd.f32 %v6778_v36, %v9189_v47 }
 0x238   : > { %v5048_v41 = vadd.f32 %v6779_v51, %v9189_v47 }
 0x239   : > { %v6049_v6 = vpack.c.bf16 %v5050_v5, %v5049_v32  ;;  %v6734_v9 = vpop.f32.mrb[20].mxu0 }
 0x23a   : > { %v6044_v26 = vpack.c.bf16 %v5048_v41, %v5047_v62  ;;  %v6542_v18 = vpop.f32.mrb[20].mxu1  ;;  %v4945_v33 = vpop.f32.mrb[21].mxu0 }
 0x23b   : > { %6089 = vst [vmem:[%s9197_s5 + $0x48] sm:$0xff] %v6049_v6   ;;  %v6780_v14 = vadd.f32 %v6734_v9, %v6542_v18  ;;  %v2808_v10 = vpop.f32.mrb[21].mxu1  ;;  %v6735_v39 = vpop.f32.mrb[22].mxu0 }
 0x23c   : > { %6088 = vst [vmem:[%s9197_s5 + $0x40] sm:$0xff] %v6044_v26   ;;  %v6781_v50 = vadd.f32 %v4945_v33, %v2808_v10  ;;  %v6543_v23 = vpop.f32.mrb[22].mxu1  ;;  %v4948_v3 = vpop.f32.mrb[23].mxu0 }
 0x23d   : > { %v6782_v58 = vadd.f32 %v6735_v39, %v6543_v23  ;;  %v2811_v22 = vpop.f32.mrb[23].mxu1  ;;  %v5053_v30 = vadd.f32 %v6780_v14, %v9189_v47 }
 0x23e   : > { %v6783_v59 = vadd.f32 %v4948_v3, %v2811_v22  ;;  %v5051_v52 = vadd.f32 %v6781_v50, %v9189_v47 }
 0x23f   : > { %v5054_v19 = vadd.f32 %v6782_v58, %v9189_v47 }
 0x240   : > { %v5052_v15 = vadd.f32 %v6783_v59, %v9189_v47 }
 0x241   : > { %v6059_v43 = vpack.c.bf16 %v5054_v19, %v5053_v30  ;;  %v6738_v38 = vpop.f32.mrb[24].mxu0 }
 0x242   : > { %v6054_v56 = vpack.c.bf16 %v5052_v15, %v5051_v52  ;;  %v6546_v1 = vpop.f32.mrb[24].mxu1  ;;  %v4961_v31 = vpop.f32.mrb[25].mxu0 }
 0x243   : > { %6091 = vst [vmem:[%s9197_s5 + $0x58] sm:$0xff] %v6059_v43   ;;  %v6784_v63 = vadd.f32 %v6738_v38, %v6546_v1  ;;  %v2824_v20 = vpop.f32.mrb[25].mxu1  ;;  %v6739_v29 = vpop.f32.mrb[26].mxu0 }
 0x244   : > { %6090 = vst [vmem:[%s9197_s5 + $0x50] sm:$0xff] %v6054_v56   ;;  %v6785_v44 = vadd.f32 %v4961_v31, %v2824_v20  ;;  %v6547_v35 = vpop.f32.mrb[26].mxu1  ;;  %v4964_v4 = vpop.f32.mrb[27].mxu0 }
 0x245   : > { %v6786_v57 = vadd.f32 %v6739_v29, %v6547_v35  ;;  %v2827_v53 = vpop.f32.mrb[27].mxu1  ;;  %v5057_v25 = vadd.f32 %v6784_v63, %v9189_v47 }
 0x246   : > { %v6787_v7 = vadd.f32 %v4964_v4, %v2827_v53  ;;  %v5055_v54 = vadd.f32 %v6785_v44, %v9189_v47 }
 0x247   : > { %v5058_v16 = vadd.f32 %v6786_v57, %v9189_v47 }
 0x248   : > { %v5056_v13 = vadd.f32 %v6787_v7, %v9189_v47 }
 0x249   : > { %v6069_v60 = vpack.c.bf16 %v5058_v16, %v5057_v25  ;;  %v6742_v0 = vpop.f32.mrb[28].mxu0 }
 0x24a   : > { %v6064_v27 = vpack.c.bf16 %v5056_v13, %v5055_v54  ;;  %v6550_v46 = vpop.f32.mrb[28].mxu1  ;;  %v4977_v2 = vpop.f32.mrb[29].mxu0 }
 0x24b   : > { %6093 = vst [vmem:[%s9197_s5 + $0x68] sm:$0xff] %v6069_v60   ;;  %v6788_v42 = vadd.f32 %v6742_v0, %v6550_v46  ;;  %v2840_v55 = vpop.f32.mrb[29].mxu1  ;;  %v6743_v49 = vpop.f32.mrb[30].mxu0 }
 0x24c   : > { %6092 = vst [vmem:[%s9197_s5 + $0x60] sm:$0xff] %v6064_v27   ;;  %v6789_v28 = vadd.f32 %v4977_v2, %v2840_v55  ;;  %v6551_v17 = vpop.f32.mrb[30].mxu1  ;;  %v4980_v24 = vpop.f32.mrb[31].mxu0 }
 0x24d   : > { %v6790_v40 = vadd.f32 %v6743_v49, %v6551_v17  ;;  %v2843_v37 = vpop.f32.mrb[31].mxu1  ;;  %v5061_v61 = vadd.f32 %v6788_v42, %v9189_v47 }
 0x24e   : > { %v6791_v21 = vadd.f32 %v4980_v24, %v2843_v37  ;;  %v5059_v8 = vadd.f32 %v6789_v28, %v9189_v47 }
 0x24f   : > { %v5062_v45 = vadd.f32 %v6790_v40, %v9189_v47 }
 0x250   : > { %v5060_v34 = vadd.f32 %v6791_v21, %v9189_v47 }
 0x251   : > { %v6079_v11 = vpack.c.bf16 %v5062_v45, %v5061_v61 }
 0x252   : > { %v6074_v48 = vpack.c.bf16 %v5060_v34, %v5059_v8 }
 0x253   : > { %6095 = vst [vmem:[%s9197_s5 + $0x78] sm:$0xff] %v6079_v11  }
 0x254   : > { %6094 = vst [vmem:[%s9197_s5 + $0x70] sm:$0xff] %v6074_v48  }
 0x255   : > { %7277 = shalt.err (!%p7274_p5)
}
 0x256   : > { %s7278_s26 = scalar_lea.hbm %s9246_s11, 2048  ;;  %s7282_s6 = scalar_lea.hbm %s9303_s3, 4096 }
 0x257   : > { %p7279_p6 = scmp.ne.s32.totalorder %s9246_s11, %s7278_s26  ;;  %p7283_p10 = scmp.lt.u32.totalorder %s9246_s11, %s9303_s3 }
 0x258   : > { %p7284_p11 = scmp.lt.u32.totalorder %s7282_s6, %s7278_s26  ;;  %p7286_p13 = scmp.lt.u32.totalorder %s7278_s26, %s9246_s11 }
 0x259   : > { %p7280_p7 = pnand %p7279_p6, %p7407_p4 }
 0x25a   : > { %p7285_p12 = por %p7284_p11, %p7283_p10 }
 0x25b   : > { %p7281_p9 = pneg %p7280_p7 }
 0x25c   : > { %p7287_p0 = por %p7286_p13, %p7285_p12 }
 0x25e   : > { %p7288_p1 = pnand %p7287_p0, %p7281_p9 }
 0x260   : > { %7291 = shalt.err (!%p7288_p1)
}
 0x261   : > { %s7345_s4 = smov 64   ;;  %s7346_s5 = smov 4  }
 0x262   : > { %7017 = dma.vmem_to_hbm [thread:$0]  (%p7407_p4), %s9248_s8, 2048, %s9246_s11, %s9254_s15, %s7345_s4, %s7345_s4, %s7346_s5  }
 0x263 PF: > { %p7023_p2 = scmp.ge.s32.totalorder %s7342_s17, 2  ;;  %s5253_s7 = sand.u32 1, %s7322_s12  }
 0x264   : > { %s5254_s9 = scalar_lea.sflag [#allocation3], %s5253_s7 }
 0x265   : > { %p7020_p3 = pnand %p7023_p2, %p7414_p8 }
 0x267   : > { %7317 = dma.done.wait (!%p7020_p3), %s5254_s9, 2048  }
 0x268   : > { %7319 = vsyncadd (!%p7020_p3), %s5254_s9, 4294965248  ;;  %s16_s17 = sadd.s32 1, %s7342_s17   ;;  %s9372_s12 = smov %s7326_s13 }
 0x269   : > { %p13_p5 = scmp.ge.s32.totalorder %s16_s17, 4   ;;  %s9373_s13 = smov %s7330_s14 }
 0x26a   : > { %s9374_s14 = smov %s7420_s25  ;;  %s9375_s15 = smov %s7338_s16 }
 0x26b   : > { %s9376_s16 = smov %s9378_s20  ;;  %15 = sbr.rel (!%p13_p5) target bundleno = 4 (0x4), region = 83 }
 0x272   :  { %5259 = vsyncpa [#allocation3], 1 }
 0x273   :  { %5261 = vsyncpa [#allocation3 + $0x1], 1 }

</bundles_post_ra>
